<compile_context>
chip_gen: v5e
topology: v5e:2x2
jax: 0.10.0
libtpu: 0.0.40
codegen_flags: <defaults>
</compile_context>

<pallas_src>
import math

import jax
import jax.numpy as jnp
from jax.experimental import pallas as pl
from jax.experimental.pallas import tpu as pltpu

NPAD = 128  # lane-padded width of the classifier output block (unmasked store)


# ----------------------------------------------------------------------------------
# Static metadata / sizing helpers
# ----------------------------------------------------------------------------------
def _conv_meta(conv_list, L0):
    meta = []
    L = L0
    for (in_fs, out_fs, kernels, dils, pool_m) in conv_list:
        layers = []
        for (ci, co, K, d) in zip(in_fs, out_fs, kernels, dils):
            pad = d * (K - 1)
            left = pad // 2
            assert left <= L and (pad - left) <= L, "circular pad wider than input"
            layers.append(dict(K=K, d=d, c_in=ci, c_out=co, left=left))
        assert L % pool_m == 0, "MaxPool kernel must divide the length"
        meta.append(dict(layers=layers, pool=pool_m, L_in=L,
                         L_out=L // pool_m, c_out=out_fs[-1]))
        L //= pool_m
    return meta, L


def _vmem_capacity_bytes():
    try:
        return int(pltpu.get_tpu_info().vmem_capacity_bytes)
    except Exception:
        return 64 * 2**20  # conservative default: v7x per-TensorCore capacity


def _per_sample_bytes(meta, L0, C0, lin_widths):
    # Rough per-example live-activation footprint (f32 activations, bf16 taps).
    n = 2 * L0 * C0 * 4                              # double-buffered x tile
    for st in meta:
        L = st['L_in']
        for lm in st['layers']:
            n += L * (lm['K'] * lm['c_in'] * 6 + lm['c_out'] * 12)
        n += L * st['c_out'] * 4                     # shared pooling staging rows
    n += sum(lin_widths) * 8 + 2 * NPAD * 4
    return n


def _pick_batch_tile(B, L0, per_sample, resident, budget):
    divs = [d for d in range(1, B + 1) if B % d == 0]
    fit = [d for d in divs if resident + d * per_sample <= budget] or [1]
    bt = fit[-1]
    # Keep >=2 grid steps (so v7x's second TensorCore gets work) only when every
    # step still feeds the MXU >= 256 rows; on single-TC v5e/v6e extra steps are
    # pure ~0.35us/step loop overhead, and 256 rows keeps them cheap there too.
    smaller = [d for d in fit if d < B]
    if smaller and smaller[-1] * L0 >= 256:
        bt = smaller[-1]
    return bt


# ----------------------------------------------------------------------------------
# Fused kernel: [ConvRelu]* + MaxPool per stack, then [Linear+BN+LeakyReLU]* + head.
# One grid step owns `bt` batch elements; all weights are VMEM-resident.
# ----------------------------------------------------------------------------------
def _make_fused_kernel(meta, n_lin, bt, npad, use_roll):
    n_conv_layers = sum(len(s['layers']) for s in meta)
    n_in = 1 + 3 * n_conv_layers + 3 * n_lin + 2     # x, conv params, lin params, head
    Lp_last = meta[-1]['L_out']
    c_last = meta[-1]['c_out']
    c0 = meta[0]['layers'][0]['c_in']
    L0 = meta[0]['L_in']

    def _circshift(x, s, L):
        # x: (bt, L, C); result[t] = x[(t - s) % L]  (circular 'same' padding tap).
        if s == 0:
            return x
        if use_roll:
            return pltpu.roll(x, shift=s, axis=1)    # XLU rotation, no VMEM traffic
        return jnp.concatenate([x[:, L - s:, :], x[:, :L - s, :]], axis=1)

    def kernel(*refs):
        x_ref = refs[0]
        o_ref = refs[n_in]
        pool = refs[n_in + 1]                        # shared f32 staging buffer
        w = 1                                        # cursor over weight inputs

        # Activations ride as a 2-D (bt*L, C) f32 slab: batch merged into the
        # matmul M dimension, channels on lanes.
        h2 = x_ref[...].reshape(bt * L0, c0)

        for stack in meta:
            L = stack['L_in']
            for lm in stack['layers']:
                K, d, c_in = lm['K'], lm['d'], lm['c_in']
                left = lm['left']
                w_ref, sc_ref, sh_ref = refs[w], refs[w + 1], refs[w + 2]
                w += 3
                h3 = h2.reshape(bt, L, c_in)         # length on sublanes for the shift
                z = None
                for k in range(K):
                    tap = _circshift(h3, (left - k * d) % L, L)
                    tap = tap.astype(jnp.bfloat16).reshape(bt * L, c_in)
                    zk = jnp.dot(tap, w_ref[k], preferred_element_type=jnp.float32)
                    z = zk if z is None else z + zk
                # conv bias + BatchNorm1d (eval) folded into per-channel scale/shift
                h2 = jnp.maximum(z * sc_ref[...] + sh_ref[...], 0.0)   # ReLU, f32

            # MaxPool1d(kernel=m, stride=m): one store + m strided reads.  The
            # merged (bt*L) row index stays batch-major because m | L.
            m = stack['pool']
            Lp = stack['L_out']
            c_out = stack['c_out']
            rows, prow = bt * L, bt * Lp
            pool[0:rows, 0:c_out] = h2
            pooled = pool[pl.ds(0, prow, m), 0:c_out]
            for j in range(1, m):
                pooled = jnp.maximum(pooled, pool[pl.ds(j, prow, m), 0:c_out])
            h2 = pooled                              # (bt*Lp, c_out) f32

        # Flatten fused into the first Linear: stage the pooled map once and
        # accumulate one (bt, C) x (C, f1) matmul per position (weight was
        # reshaped to (Lp, C, f1) in the wrapper, matching torch's channel-major
        # .view(-1, C*L) exactly).  No masked per-position stores, no reload.
        pool[0:bt * Lp_last, 0:c_last] = h2
        w1_ref, sc_ref, sh_ref = refs[w], refs[w + 1], refs[w + 2]
        w += 3
        z = None
        for p in range(Lp_last):
            blk = pool[pl.ds(p, bt, Lp_last), 0:c_last].astype(jnp.bfloat16)
            zp = jnp.dot(blk, w1_ref[p], preferred_element_type=jnp.float32)
            z = zp if z is None else z + zp
        z = z * sc_ref[...] + sh_ref[...]            # linear bias + BN(eval) folded
        h = jnp.maximum(z, 0.01 * z)                 # LeakyReLU(0.01); Dropout=id

        for _ in range(1, n_lin):
            wt_ref, sc_ref, sh_ref = refs[w], refs[w + 1], refs[w + 2]
            w += 3
            z = jnp.dot(h.astype(jnp.bfloat16), wt_ref[...],
                        preferred_element_type=jnp.float32)
            z = z * sc_ref[...] + sh_ref[...]
            h = jnp.maximum(z, 0.01 * z)

        wo_ref, bo_ref = refs[w], refs[w + 1]
        out = jnp.dot(h.astype(jnp.bfloat16), wo_ref[...],
                      preferred_element_type=jnp.float32) + bo_ref[...]
        o_ref[:, 0, :] = out.astype(o_ref.dtype)     # 128-lane padded unmasked store

    return kernel


# ----------------------------------------------------------------------------------
# Wrapper: parameter packing + single pallas_call
# ----------------------------------------------------------------------------------
def sparse_cnn_forward(x, inds, params, conv_list, nclass):
    # TODO(synk): the sparse gather + NCL->NLC transpose are wrapper glue; they could
    # ride the kernel's input DMA via PrefetchScalarGridSpec / pl.Element instead.
    x_sel = x[:, :, inds]
    B, C0, L0 = x_sel.shape
    meta, L_final = _conv_meta(conv_list, L0)
    c_last = meta[-1]['c_out']
    n_lin = len(params['lin'])
    assert n_lin >= 1
    assert meta[0]['layers'][0]['c_in'] == C0
    assert params['lin'][0]['wt'].shape[0] == c_last * L_final

    # NCL -> NLC (length on sublanes, channels on lanes); f32 carried activation,
    # bf16 only for the MXU operands inside the kernel.
    x_nlc = jnp.transpose(x_sel, (0, 2, 1)).astype(jnp.float32)

    # ---- pack resident operands (bf16 matmul operands, f32 scale/shift) ----------
    kin = []
    for sp in params['conv_stacks']:
        for lp in sp['layers']:
            kin.append(jnp.transpose(lp['w'], (0, 2, 1)).astype(jnp.bfloat16))  # (K,Cin,Cout)
            kin.append(lp['scale'].reshape(1, -1).astype(jnp.float32))
            kin.append(lp['shift'].reshape(1, -1).astype(jnp.float32))
    lin_widths = []
    for i, lp in enumerate(params['lin']):
        wt = lp['wt']
        if i == 0:
            # torch flattens channel-major (feature = c*L + p); reshape the first
            # Linear weight to (Lp, C, f) so the flatten fuses into the matmul.
            wt = wt.reshape(c_last, L_final, wt.shape[1]).transpose(1, 0, 2)
        kin.append(wt.astype(jnp.bfloat16))
        kin.append(lp['scale'].reshape(1, -1).astype(jnp.float32))
        kin.append(lp['shift'].reshape(1, -1).astype(jnp.float32))
        lin_widths.append(int(lp['scale'].shape[0]))
    wo, bo = params['out']['wt'], params['out']['b']
    wo_pad = jnp.zeros((wo.shape[0], NPAD), jnp.bfloat16).at[:, :nclass].set(
        wo.astype(jnp.bfloat16))
    bo_pad = jnp.zeros((1, NPAD), jnp.float32).at[:, :nclass].set(bo.reshape(1, -1))
    kin += [wo_pad, bo_pad]

    # ---- tiling + VMEM budget ------------------------------------------------------
    resident = sum(int(math.prod(a.shape)) * a.dtype.itemsize for a in kin)
    vmem_cap = _vmem_capacity_bytes()
    budget = int(0.85 * vmem_cap)                  # headroom for Mosaic internals
    per_sample = _per_sample_bytes(meta, L0, C0, lin_widths)
    bt = _pick_batch_tile(B, L0, per_sample, 2 * resident, budget)
    grid = (B // bt,)

    # one shared f32 staging buffer (pooling + fused-flatten reads), reused per stack
    rows_max = max(bt * st['L_in'] for st in meta)
    cols_max = max(st['c_out'] for st in meta)
    scratch = [pltpu.VMEM((rows_max, cols_max), jnp.float32)]

    # Footprint counts weight double-buffering in case the single-buffer request is
    # not honoured; the limit is capped below physical VMEM.
    pad_rows = -(-rows_max // 8) * 8
    pad_cols = -(-cols_max // 128) * 128
    footprint = (2 * resident + 2 * bt * L0 * C0 * 4 + 2 * bt * NPAD * 4
                 + pad_rows * pad_cols * 4)
    vmem_limit = int(min(budget, max(32 * 2**20, 2 * footprint + 4 * 2**20)))

    def run(use_roll, single_buffer_weights):
        kernel = _make_fused_kernel(meta, n_lin, bt, NPAD, use_roll)
        in_specs = [pl.BlockSpec((bt, L0, C0), lambda b: (b, 0, 0))]
        for arr in kin:
            kwargs = {}
            if single_buffer_weights:
                # Resident weights: constant index_map, fetched once -> single-buffer
                # them to halve their VMEM footprint.
                kwargs['pipeline_mode'] = pl.Buffered(1)
            in_specs.append(
                pl.BlockSpec(arr.shape, lambda b, n=arr.ndim: (0,) * n, **kwargs))
        return pl.pallas_call(
            kernel,
            out_shape=jax.ShapeDtypeStruct((B, 1, NPAD), jnp.float32),
            grid=grid,
            in_specs=in_specs,
            out_specs=pl.BlockSpec((bt, 1, NPAD), lambda b: (b, 0, 0)),
            scratch_shapes=scratch,
            compiler_params=pltpu.CompilerParams(
                dimension_semantics=("parallel",),
                vmem_limit_bytes=vmem_limit),
        )(x_nlc, *kin)

    # Robustness ladder: prefer (pltpu.roll taps, single-buffered weights); fall back
    # to slice+concat circular shifts / default buffering if this Mosaic build
    # rejects either.  All variants are numerically identical.
    last_err = None
    for use_roll in (True, False):
        for single_buf in (True, False):
            try:
                out = run(use_roll, single_buf)
                return out[:, 0, :nclass]
            except Exception as e:                 # lowering/compile failure only
                last_err = e
    raise last_err


# ----------------------------------------------------------------------------------
# Deterministic parameter construction (shapes follow the PyTorch module __init__).
# ----------------------------------------------------------------------------------
def init_params(key, conv_list, lin_list, nclass, L):
    eps = 1e-5
    params = {'conv_stacks': [], 'lin': [], 'out': None}

    for (in_fs, out_fs, kernels, dils, pool_m) in conv_list:
        stack = []
        for (ci, co, K, d) in zip(in_fs, out_fs, kernels, dils):
            key, k1, k2, k3, k4, k5, k6 = jax.random.split(key, 7)
            w = jax.random.normal(k1, (K, co, ci), jnp.float32) / jnp.sqrt(1.0 * ci * K)
            b = 0.1 * jax.random.normal(k2, (co,), jnp.float32)
            gamma = 1.0 + 0.1 * jax.random.normal(k3, (co,), jnp.float32)
            beta = 0.1 * jax.random.normal(k4, (co,), jnp.float32)
            rmean = 0.1 * jax.random.normal(k5, (co,), jnp.float32)
            rvar = 1.0 + 0.1 * jax.random.uniform(k6, (co,), jnp.float32)
            scale = gamma / jnp.sqrt(rvar + eps)
            shift = beta + scale * (b - rmean)           # conv bias + BN(eval) folded
            stack.append({'w': w, 'scale': scale, 'shift': shift})
        params['conv_stacks'].append({'layers': stack, 'pool': pool_m})
        L = L // pool_m

    in_fs, out_fs, pdrops = lin_list
    for (fi, fo, _pd) in zip(in_fs, out_fs, pdrops):
        key, k1, k2, k3, k4, k5, k6 = jax.random.split(key, 7)
        wt = jax.random.normal(k1, (fi, fo), jnp.float32) / jnp.sqrt(1.0 * fi)
        b = 0.1 * jax.random.normal(k2, (fo,), jnp.float32)
        gamma = 1.0 + 0.1 * jax.random.normal(k3, (fo,), jnp.float32)
        beta = 0.1 * jax.random.normal(k4, (fo,), jnp.float32)
        rmean = 0.1 * jax.random.normal(k5, (fo,), jnp.float32)
        rvar = 1.0 + 0.1 * jax.random.uniform(k6, (fo,), jnp.float32)
        scale = gamma / jnp.sqrt(rvar + eps)
        shift = beta + scale * (b - rmean)               # linear bias + BN(eval) folded
        params['lin'].append({'wt': wt, 'scale': scale, 'shift': shift})

    key, k1, k2 = jax.random.split(key, 3)
    f_last = out_fs[-1]
    params['out'] = {
        'wt': jax.random.normal(k1, (f_last, nclass), jnp.float32) / jnp.sqrt(1.0 * f_last),
        'b': 0.1 * jax.random.normal(k2, (nclass,), jnp.float32),
    }
    return params


if __name__ == "__main__":
    key = jax.random.PRNGKey(0)
    B, C0, N_raw = 2, 4, 32
    inds = jnp.arange(0, N_raw, 2)            # 16 "sparse" sample indices
    L = int(inds.shape[0])

    # config['conv']: list of (in_f, out_f, kernel, dilation, maxpool_kernel)
    conv_list = [
        ([4, 8], [8, 8], [3, 3], [1, 2], 2),  # L: 16 -> 8
        ([8],    [16],   [3],    [1],    2),  # L: 8  -> 4
    ]
    # config['lin']: (in_f list, out_f list, pdrop list)
    lin_list = ([16 * 4, 32], [32, 32], [0.5, 0.5])
    nclass = 3

    key, kx, kp = jax.random.split(key, 3)
    x = jax.random.normal(kx, (B, C0, N_raw), jnp.float32)
    params = init_params(kp, conv_list, lin_list, nclass, L)

    out = sparse_cnn_forward(x, inds, params, conv_list, nclass)
    jax.block_until_ready(out)
    assert out.shape == (B, nclass), out.shape
    print("KERNEL_OK")
</pallas_src>

<mosaic_0001>
module attributes {stable_mosaic.version = 11 : i64} {
  func.func @kernel(%arg0: i32, %arg1: memref<2x16x4xf32, #tpu.memory_space<vmem>>, %arg2: memref<3x4x8xbf16, #tpu.memory_space<vmem>>, %arg3: memref<1x8xf32, #tpu.memory_space<vmem>>, %arg4: memref<1x8xf32, #tpu.memory_space<vmem>>, %arg5: memref<3x8x8xbf16, #tpu.memory_space<vmem>>, %arg6: memref<1x8xf32, #tpu.memory_space<vmem>>, %arg7: memref<1x8xf32, #tpu.memory_space<vmem>>, %arg8: memref<3x8x16xbf16, #tpu.memory_space<vmem>>, %arg9: memref<1x16xf32, #tpu.memory_space<vmem>>, %arg10: memref<1x16xf32, #tpu.memory_space<vmem>>, %arg11: memref<4x16x32xbf16, #tpu.memory_space<vmem>>, %arg12: memref<1x32xf32, #tpu.memory_space<vmem>>, %arg13: memref<1x32xf32, #tpu.memory_space<vmem>>, %arg14: memref<32x32xbf16, #tpu.memory_space<vmem>>, %arg15: memref<1x32xf32, #tpu.memory_space<vmem>>, %arg16: memref<1x32xf32, #tpu.memory_space<vmem>>, %arg17: memref<32x128xbf16, #tpu.memory_space<vmem>>, %arg18: memref<1x128xf32, #tpu.memory_space<vmem>>, %arg19: memref<2x1x128xf32, #tpu.memory_space<vmem>>, %arg20: memref<32x16xf32, #tpu.memory_space<vmem>>) attributes {dimension_semantics = [#tpu.dimension_semantics<parallel>], iteration_bounds = array<i64: 1>, scalar_prefetch = 0 : i64, scratch_operands = 1 : i64, tpu.core_type = #tpu.core_type<tc>, window_params = [{transform_indices = @transform_0, window_bounds = array<i64: 2, 16, 4>}, {pipeline_mode = #tpu.pipeline_mode<synchronous>, transform_indices = @transform_1, window_bounds = array<i64: 3, 4, 8>}, {pipeline_mode = #tpu.pipeline_mode<synchronous>, transform_indices = @transform_2, window_bounds = array<i64: 1, 8>}, {pipeline_mode = #tpu.pipeline_mode<synchronous>, transform_indices = @transform_3, window_bounds = array<i64: 1, 8>}, {pipeline_mode = #tpu.pipeline_mode<synchronous>, transform_indices = @transform_4, window_bounds = array<i64: 3, 8, 8>}, {pipeline_mode = #tpu.pipeline_mode<synchronous>, transform_indices = @transform_5, window_bounds = array<i64: 1, 8>}, {pipeline_mode = #tpu.pipeline_mode<synchronous>, transform_indices = @transform_6, window_bounds = array<i64: 1, 8>}, {pipeline_mode = #tpu.pipeline_mode<synchronous>, transform_indices = @transform_7, window_bounds = array<i64: 3, 8, 16>}, {pipeline_mode = #tpu.pipeline_mode<synchronous>, transform_indices = @transform_8, window_bounds = array<i64: 1, 16>}, {pipeline_mode = #tpu.pipeline_mode<synchronous>, transform_indices = @transform_9, window_bounds = array<i64: 1, 16>}, {pipeline_mode = #tpu.pipeline_mode<synchronous>, transform_indices = @transform_10, window_bounds = array<i64: 4, 16, 32>}, {pipeline_mode = #tpu.pipeline_mode<synchronous>, transform_indices = @transform_11, window_bounds = array<i64: 1, 32>}, {pipeline_mode = #tpu.pipeline_mode<synchronous>, transform_indices = @transform_12, window_bounds = array<i64: 1, 32>}, {pipeline_mode = #tpu.pipeline_mode<synchronous>, transform_indices = @transform_13, window_bounds = array<i64: 32, 32>}, {pipeline_mode = #tpu.pipeline_mode<synchronous>, transform_indices = @transform_14, window_bounds = array<i64: 1, 32>}, {pipeline_mode = #tpu.pipeline_mode<synchronous>, transform_indices = @transform_15, window_bounds = array<i64: 1, 32>}, {pipeline_mode = #tpu.pipeline_mode<synchronous>, transform_indices = @transform_16, window_bounds = array<i64: 32, 128>}, {pipeline_mode = #tpu.pipeline_mode<synchronous>, transform_indices = @transform_17, window_bounds = array<i64: 1, 128>}, {transform_indices = @transform_18, window_bounds = array<i64: 2, 1, 128>}]} {
    %c0 = arith.constant 0 : index
    %c0_0 = arith.constant 0 : index
    %c0_1 = arith.constant 0 : index
    %0 = vector.load %arg1[%c0, %c0_0, %c0_1] : memref<2x16x4xf32, #tpu.memory_space<vmem>>, vector<2x16x4xf32>
    %1 = vector.shape_cast %0 : vector<2x16x4xf32> to vector<32x4xf32>
    %2 = vector.shape_cast %1 : vector<32x4xf32> to vector<2x16x4xf32>
    %c1_i32 = arith.constant 1 : i32
    %3 = tpu.dynamic_rotate %2 by %c1_i32 dim 1 : vector<2x16x4xf32>, i32 -> vector<2x16x4xf32>
    %4 = arith.truncf %3 : vector<2x16x4xf32> to vector<2x16x4xbf16>
    %5 = vector.shape_cast %4 : vector<2x16x4xbf16> to vector<32x4xbf16>
    %c0_2 = arith.constant 0 : index
    %c0_3 = arith.constant 0 : index
    %c0_4 = arith.constant 0 : index
    %6 = vector.load %arg2[%c0_2, %c0_3, %c0_4] : memref<3x4x8xbf16, #tpu.memory_space<vmem>>, vector<1x4x8xbf16>
    %7 = vector.shape_cast %6 : vector<1x4x8xbf16> to vector<4x8xbf16>
    %cst = arith.constant dense<0.000000e+00> : vector<32x8xf32>
    %8 = tpu.matmul %5, %7, %cst {dimension_numbers = #tpu.dot_dimension_numbers<[1], [0], [0], [1], [0, 0, 1, 1], [], []>} : vector<32x4xbf16>, vector<4x8xbf16>, vector<32x8xf32> -> vector<32x8xf32>
    %9 = arith.truncf %2 : vector<2x16x4xf32> to vector<2x16x4xbf16>
    %10 = vector.shape_cast %9 : vector<2x16x4xbf16> to vector<32x4xbf16>
    %c1 = arith.constant 1 : index
    %c0_5 = arith.constant 0 : index
    %c0_6 = arith.constant 0 : index
    %11 = vector.load %arg2[%c1, %c0_5, %c0_6] : memref<3x4x8xbf16, #tpu.memory_space<vmem>>, vector<1x4x8xbf16>
    %12 = vector.shape_cast %11 : vector<1x4x8xbf16> to vector<4x8xbf16>
    %cst_7 = arith.constant dense<0.000000e+00> : vector<32x8xf32>
    %13 = tpu.matmul %10, %12, %cst_7 {dimension_numbers = #tpu.dot_dimension_numbers<[1], [0], [0], [1], [0, 0, 1, 1], [], []>} : vector<32x4xbf16>, vector<4x8xbf16>, vector<32x8xf32> -> vector<32x8xf32>
    %14 = arith.addf %8, %13 : vector<32x8xf32>
    %c15_i32 = arith.constant 15 : i32
    %15 = tpu.dynamic_rotate %2 by %c15_i32 dim 1 : vector<2x16x4xf32>, i32 -> vector<2x16x4xf32>
    %16 = arith.truncf %15 : vector<2x16x4xf32> to vector<2x16x4xbf16>
    %17 = vector.shape_cast %16 : vector<2x16x4xbf16> to vector<32x4xbf16>
    %c2 = arith.constant 2 : index
    %c0_8 = arith.constant 0 : index
    %c0_9 = arith.constant 0 : index
    %18 = vector.load %arg2[%c2, %c0_8, %c0_9] : memref<3x4x8xbf16, #tpu.memory_space<vmem>>, vector<1x4x8xbf16>
    %19 = vector.shape_cast %18 : vector<1x4x8xbf16> to vector<4x8xbf16>
    %cst_10 = arith.constant dense<0.000000e+00> : vector<32x8xf32>
    %20 = tpu.matmul %17, %19, %cst_10 {dimension_numbers = #tpu.dot_dimension_numbers<[1], [0], [0], [1], [0, 0, 1, 1], [], []>} : vector<32x4xbf16>, vector<4x8xbf16>, vector<32x8xf32> -> vector<32x8xf32>
    %21 = arith.addf %14, %20 : vector<32x8xf32>
    %c0_11 = arith.constant 0 : index
    %c0_12 = arith.constant 0 : index
    %22 = vector.load %arg3[%c0_11, %c0_12] : memref<1x8xf32, #tpu.memory_space<vmem>>, vector<1x8xf32>
    %23 = vector.broadcast %22 : vector<1x8xf32> to vector<32x8xf32>
    %24 = arith.mulf %21, %23 : vector<32x8xf32>
    %c0_13 = arith.constant 0 : index
    %c0_14 = arith.constant 0 : index
    %25 = vector.load %arg4[%c0_13, %c0_14] : memref<1x8xf32, #tpu.memory_space<vmem>>, vector<1x8xf32>
    %26 = vector.broadcast %25 : vector<1x8xf32> to vector<32x8xf32>
    %27 = arith.addf %24, %26 : vector<32x8xf32>
    %cst_15 = arith.constant 0.000000e+00 : f32
    %28 = vector.broadcast %cst_15 : f32 to vector<32x8xf32>
    %29 = arith.maximumf %27, %28 : vector<32x8xf32>
    %30 = vector.shape_cast %29 : vector<32x8xf32> to vector<2x16x8xf32>
    %c2_i32 = arith.constant 2 : i32
    %31 = tpu.dynamic_rotate %30 by %c2_i32 dim 1 : vector<2x16x8xf32>, i32 -> vector<2x16x8xf32>
    %32 = arith.truncf %31 : vector<2x16x8xf32> to vector<2x16x8xbf16>
    %33 = vector.shape_cast %32 : vector<2x16x8xbf16> to vector<32x8xbf16>
    %c0_16 = arith.constant 0 : index
    %c0_17 = arith.constant 0 : index
    %c0_18 = arith.constant 0 : index
    %34 = vector.load %arg5[%c0_16, %c0_17, %c0_18] : memref<3x8x8xbf16, #tpu.memory_space<vmem>>, vector<1x8x8xbf16>
    %35 = vector.shape_cast %34 : vector<1x8x8xbf16> to vector<8x8xbf16>
    %cst_19 = arith.constant dense<0.000000e+00> : vector<32x8xf32>
    %36 = tpu.matmul %33, %35, %cst_19 {dimension_numbers = #tpu.dot_dimension_numbers<[1], [0], [0], [1], [0, 0, 1, 1], [], []>} : vector<32x8xbf16>, vector<8x8xbf16>, vector<32x8xf32> -> vector<32x8xf32>
    %37 = arith.truncf %30 : vector<2x16x8xf32> to vector<2x16x8xbf16>
    %38 = vector.shape_cast %37 : vector<2x16x8xbf16> to vector<32x8xbf16>
    %c1_20 = arith.constant 1 : index
    %c0_21 = arith.constant 0 : index
    %c0_22 = arith.constant 0 : index
    %39 = vector.load %arg5[%c1_20, %c0_21, %c0_22] : memref<3x8x8xbf16, #tpu.memory_space<vmem>>, vector<1x8x8xbf16>
    %40 = vector.shape_cast %39 : vector<1x8x8xbf16> to vector<8x8xbf16>
    %cst_23 = arith.constant dense<0.000000e+00> : vector<32x8xf32>
    %41 = tpu.matmul %38, %40, %cst_23 {dimension_numbers = #tpu.dot_dimension_numbers<[1], [0], [0], [1], [0, 0, 1, 1], [], []>} : vector<32x8xbf16>, vector<8x8xbf16>, vector<32x8xf32> -> vector<32x8xf32>
    %42 = arith.addf %36, %41 : vector<32x8xf32>
    %c14_i32 = arith.constant 14 : i32
    %43 = tpu.dynamic_rotate %30 by %c14_i32 dim 1 : vector<2x16x8xf32>, i32 -> vector<2x16x8xf32>
    %44 = arith.truncf %43 : vector<2x16x8xf32> to vector<2x16x8xbf16>
    %45 = vector.shape_cast %44 : vector<2x16x8xbf16> to vector<32x8xbf16>
    %c2_24 = arith.constant 2 : index
    %c0_25 = arith.constant 0 : index
    %c0_26 = arith.constant 0 : index
    %46 = vector.load %arg5[%c2_24, %c0_25, %c0_26] : memref<3x8x8xbf16, #tpu.memory_space<vmem>>, vector<1x8x8xbf16>
    %47 = vector.shape_cast %46 : vector<1x8x8xbf16> to vector<8x8xbf16>
    %cst_27 = arith.constant dense<0.000000e+00> : vector<32x8xf32>
    %48 = tpu.matmul %45, %47, %cst_27 {dimension_numbers = #tpu.dot_dimension_numbers<[1], [0], [0], [1], [0, 0, 1, 1], [], []>} : vector<32x8xbf16>, vector<8x8xbf16>, vector<32x8xf32> -> vector<32x8xf32>
    %49 = arith.addf %42, %48 : vector<32x8xf32>
    %c0_28 = arith.constant 0 : index
    %c0_29 = arith.constant 0 : index
    %50 = vector.load %arg6[%c0_28, %c0_29] : memref<1x8xf32, #tpu.memory_space<vmem>>, vector<1x8xf32>
    %51 = vector.broadcast %50 : vector<1x8xf32> to vector<32x8xf32>
    %52 = arith.mulf %49, %51 : vector<32x8xf32>
    %c0_30 = arith.constant 0 : index
    %c0_31 = arith.constant 0 : index
    %53 = vector.load %arg7[%c0_30, %c0_31] : memref<1x8xf32, #tpu.memory_space<vmem>>, vector<1x8xf32>
    %54 = vector.broadcast %53 : vector<1x8xf32> to vector<32x8xf32>
    %55 = arith.addf %52, %54 : vector<32x8xf32>
    %cst_32 = arith.constant 0.000000e+00 : f32
    %56 = vector.broadcast %cst_32 : f32 to vector<32x8xf32>
    %57 = arith.maximumf %55, %56 : vector<32x8xf32>
    %c0_33 = arith.constant 0 : index
    %c0_34 = arith.constant 0 : index
    %58 = vector.load %arg20[%c0_33, %c0_34] : memref<32x16xf32, #tpu.memory_space<vmem>>, vector<32x8xf32>
    tpu.vector_store %arg20[%c0_33, %c0_34], %57 {strides = array<i32>} : memref<32x16xf32, #tpu.memory_space<vmem>>, vector<32x8xf32>,
    %c0_35 = arith.constant 0 : index
    %c0_36 = arith.constant 0 : index
    %59 = tpu.strided_load %arg20[%c0_35, %c0_36] {strides = array<i32: 2, 1>} : memref<32x16xf32, #tpu.memory_space<vmem>>, vector<16x8xf32>
    %c1_37 = arith.constant 1 : index
    %c0_38 = arith.constant 0 : index
    %60 = tpu.strided_load %arg20[%c1_37, %c0_38] {strides = array<i32: 2, 1>} : memref<32x16xf32, #tpu.memory_space<vmem>>, vector<16x8xf32>
    %61 = arith.maximumf %59, %60 : vector<16x8xf32>
    %62 = vector.shape_cast %61 : vector<16x8xf32> to vector<2x8x8xf32>
    %c1_i32_39 = arith.constant 1 : i32
    %63 = tpu.dynamic_rotate %62 by %c1_i32_39 dim 1 : vector<2x8x8xf32>, i32 -> vector<2x8x8xf32>
    %64 = arith.truncf %63 : vector<2x8x8xf32> to vector<2x8x8xbf16>
    %65 = vector.shape_cast %64 : vector<2x8x8xbf16> to vector<16x8xbf16>
    %c0_40 = arith.constant 0 : index
    %c0_41 = arith.constant 0 : index
    %c0_42 = arith.constant 0 : index
    %66 = vector.load %arg8[%c0_40, %c0_41, %c0_42] : memref<3x8x16xbf16, #tpu.memory_space<vmem>>, vector<1x8x16xbf16>
    %67 = vector.shape_cast %66 : vector<1x8x16xbf16> to vector<8x16xbf16>
    %cst_43 = arith.constant dense<0.000000e+00> : vector<16x16xf32>
    %68 = tpu.matmul %65, %67, %cst_43 {dimension_numbers = #tpu.dot_dimension_numbers<[1], [0], [0], [1], [0, 0, 1, 1], [], []>} : vector<16x8xbf16>, vector<8x16xbf16>, vector<16x16xf32> -> vector<16x16xf32>
    %69 = arith.truncf %62 : vector<2x8x8xf32> to vector<2x8x8xbf16>
    %70 = vector.shape_cast %69 : vector<2x8x8xbf16> to vector<16x8xbf16>
    %c1_44 = arith.constant 1 : index
    %c0_45 = arith.constant 0 : index
    %c0_46 = arith.constant 0 : index
    %71 = vector.load %arg8[%c1_44, %c0_45, %c0_46] : memref<3x8x16xbf16, #tpu.memory_space<vmem>>, vector<1x8x16xbf16>
    %72 = vector.shape_cast %71 : vector<1x8x16xbf16> to vector<8x16xbf16>
    %cst_47 = arith.constant dense<0.000000e+00> : vector<16x16xf32>
    %73 = tpu.matmul %70, %72, %cst_47 {dimension_numbers = #tpu.dot_dimension_numbers<[1], [0], [0], [1], [0, 0, 1, 1], [], []>} : vector<16x8xbf16>, vector<8x16xbf16>, vector<16x16xf32> -> vector<16x16xf32>
    %74 = arith.addf %68, %73 : vector<16x16xf32>
    %c7_i32 = arith.constant 7 : i32
    %75 = tpu.dynamic_rotate %62 by %c7_i32 dim 1 : vector<2x8x8xf32>, i32 -> vector<2x8x8xf32>
    %76 = arith.truncf %75 : vector<2x8x8xf32> to vector<2x8x8xbf16>
    %77 = vector.shape_cast %76 : vector<2x8x8xbf16> to vector<16x8xbf16>
    %c2_48 = arith.constant 2 : index
    %c0_49 = arith.constant 0 : index
    %c0_50 = arith.constant 0 : index
    %78 = vector.load %arg8[%c2_48, %c0_49, %c0_50] : memref<3x8x16xbf16, #tpu.memory_space<vmem>>, vector<1x8x16xbf16>
    %79 = vector.shape_cast %78 : vector<1x8x16xbf16> to vector<8x16xbf16>
    %cst_51 = arith.constant dense<0.000000e+00> : vector<16x16xf32>
    %80 = tpu.matmul %77, %79, %cst_51 {dimension_numbers = #tpu.dot_dimension_numbers<[1], [0], [0], [1], [0, 0, 1, 1], [], []>} : vector<16x8xbf16>, vector<8x16xbf16>, vector<16x16xf32> -> vector<16x16xf32>
    %81 = arith.addf %74, %80 : vector<16x16xf32>
    %c0_52 = arith.constant 0 : index
    %c0_53 = arith.constant 0 : index
    %82 = vector.load %arg9[%c0_52, %c0_53] : memref<1x16xf32, #tpu.memory_space<vmem>>, vector<1x16xf32>
    %83 = vector.broadcast %82 : vector<1x16xf32> to vector<16x16xf32>
    %84 = arith.mulf %81, %83 : vector<16x16xf32>
    %c0_54 = arith.constant 0 : index
    %c0_55 = arith.constant 0 : index
    %85 = vector.load %arg10[%c0_54, %c0_55] : memref<1x16xf32, #tpu.memory_space<vmem>>, vector<1x16xf32>
    %86 = vector.broadcast %85 : vector<1x16xf32> to vector<16x16xf32>
    %87 = arith.addf %84, %86 : vector<16x16xf32>
    %cst_56 = arith.constant 0.000000e+00 : f32
    %88 = vector.broadcast %cst_56 : f32 to vector<16x16xf32>
    %89 = arith.maximumf %87, %88 : vector<16x16xf32>
    %c0_57 = arith.constant 0 : index
    %c0_58 = arith.constant 0 : index
    %90 = vector.load %arg20[%c0_57, %c0_58] : memref<32x16xf32, #tpu.memory_space<vmem>>, vector<16x16xf32>
    tpu.vector_store %arg20[%c0_57, %c0_58], %89 {strides = array<i32>} : memref<32x16xf32, #tpu.memory_space<vmem>>, vector<16x16xf32>,
    %c0_59 = arith.constant 0 : index
    %c0_60 = arith.constant 0 : index
    %91 = tpu.strided_load %arg20[%c0_59, %c0_60] {strides = array<i32: 2, 1>} : memref<32x16xf32, #tpu.memory_space<vmem>>, vector<8x16xf32>
    %c1_61 = arith.constant 1 : index
    %c0_62 = arith.constant 0 : index
    %92 = tpu.strided_load %arg20[%c1_61, %c0_62] {strides = array<i32: 2, 1>} : memref<32x16xf32, #tpu.memory_space<vmem>>, vector<8x16xf32>
    %93 = arith.maximumf %91, %92 : vector<8x16xf32>
    %c0_63 = arith.constant 0 : index
    %c0_64 = arith.constant 0 : index
    %94 = vector.load %arg20[%c0_63, %c0_64] : memref<32x16xf32, #tpu.memory_space<vmem>>, vector<8x16xf32>
    tpu.vector_store %arg20[%c0_63, %c0_64], %93 {strides = array<i32>} : memref<32x16xf32, #tpu.memory_space<vmem>>, vector<8x16xf32>,
    %c0_65 = arith.constant 0 : index
    %c0_66 = arith.constant 0 : index
    %95 = tpu.strided_load %arg20[%c0_65, %c0_66] {strides = array<i32: 4, 1>} : memref<32x16xf32, #tpu.memory_space<vmem>>, vector<2x16xf32>
    %96 = arith.truncf %95 : vector<2x16xf32> to vector<2x16xbf16>
    %c0_67 = arith.constant 0 : index
    %c0_68 = arith.constant 0 : index
    %c0_69 = arith.constant 0 : index
    %97 = vector.load %arg11[%c0_67, %c0_68, %c0_69] : memref<4x16x32xbf16, #tpu.memory_space<vmem>>, vector<1x16x32xbf16>
    %98 = vector.shape_cast %97 : vector<1x16x32xbf16> to vector<16x32xbf16>
    %cst_70 = arith.constant dense<0.000000e+00> : vector<2x32xf32>
    %99 = tpu.matmul %96, %98, %cst_70 {dimension_numbers = #tpu.dot_dimension_numbers<[1], [0], [0], [1], [0, 0, 1, 1], [], []>} : vector<2x16xbf16>, vector<16x32xbf16>, vector<2x32xf32> -> vector<2x32xf32>
    %c1_71 = arith.constant 1 : index
    %c0_72 = arith.constant 0 : index
    %100 = tpu.strided_load %arg20[%c1_71, %c0_72] {strides = array<i32: 4, 1>} : memref<32x16xf32, #tpu.memory_space<vmem>>, vector<2x16xf32>
    %101 = arith.truncf %100 : vector<2x16xf32> to vector<2x16xbf16>
    %c1_73 = arith.constant 1 : index
    %c0_74 = arith.constant 0 : index
    %c0_75 = arith.constant 0 : index
    %102 = vector.load %arg11[%c1_73, %c0_74, %c0_75] : memref<4x16x32xbf16, #tpu.memory_space<vmem>>, vector<1x16x32xbf16>
    %103 = vector.shape_cast %102 : vector<1x16x32xbf16> to vector<16x32xbf16>
    %cst_76 = arith.constant dense<0.000000e+00> : vector<2x32xf32>
    %104 = tpu.matmul %101, %103, %cst_76 {dimension_numbers = #tpu.dot_dimension_numbers<[1], [0], [0], [1], [0, 0, 1, 1], [], []>} : vector<2x16xbf16>, vector<16x32xbf16>, vector<2x32xf32> -> vector<2x32xf32>
    %105 = arith.addf %99, %104 : vector<2x32xf32>
    %c2_77 = arith.constant 2 : index
    %c0_78 = arith.constant 0 : index
    %106 = tpu.strided_load %arg20[%c2_77, %c0_78] {strides = array<i32: 4, 1>} : memref<32x16xf32, #tpu.memory_space<vmem>>, vector<2x16xf32>
    %107 = arith.truncf %106 : vector<2x16xf32> to vector<2x16xbf16>
    %c2_79 = arith.constant 2 : index
    %c0_80 = arith.constant 0 : index
    %c0_81 = arith.constant 0 : index
    %108 = vector.load %arg11[%c2_79, %c0_80, %c0_81] : memref<4x16x32xbf16, #tpu.memory_space<vmem>>, vector<1x16x32xbf16>
    %109 = vector.shape_cast %108 : vector<1x16x32xbf16> to vector<16x32xbf16>
    %cst_82 = arith.constant dense<0.000000e+00> : vector<2x32xf32>
    %110 = tpu.matmul %107, %109, %cst_82 {dimension_numbers = #tpu.dot_dimension_numbers<[1], [0], [0], [1], [0, 0, 1, 1], [], []>} : vector<2x16xbf16>, vector<16x32xbf16>, vector<2x32xf32> -> vector<2x32xf32>
    %111 = arith.addf %105, %110 : vector<2x32xf32>
    %c3 = arith.constant 3 : index
    %c0_83 = arith.constant 0 : index
    %112 = tpu.strided_load %arg20[%c3, %c0_83] {strides = array<i32: 4, 1>} : memref<32x16xf32, #tpu.memory_space<vmem>>, vector<2x16xf32>
    %113 = arith.truncf %112 : vector<2x16xf32> to vector<2x16xbf16>
    %c3_84 = arith.constant 3 : index
    %c0_85 = arith.constant 0 : index
    %c0_86 = arith.constant 0 : index
    %114 = vector.load %arg11[%c3_84, %c0_85, %c0_86] : memref<4x16x32xbf16, #tpu.memory_space<vmem>>, vector<1x16x32xbf16>
    %115 = vector.shape_cast %114 : vector<1x16x32xbf16> to vector<16x32xbf16>
    %cst_87 = arith.constant dense<0.000000e+00> : vector<2x32xf32>
    %116 = tpu.matmul %113, %115, %cst_87 {dimension_numbers = #tpu.dot_dimension_numbers<[1], [0], [0], [1], [0, 0, 1, 1], [], []>} : vector<2x16xbf16>, vector<16x32xbf16>, vector<2x32xf32> -> vector<2x32xf32>
    %117 = arith.addf %111, %116 : vector<2x32xf32>
    %c0_88 = arith.constant 0 : index
    %c0_89 = arith.constant 0 : index
    %118 = vector.load %arg12[%c0_88, %c0_89] : memref<1x32xf32, #tpu.memory_space<vmem>>, vector<1x32xf32>
    %119 = vector.broadcast %118 : vector<1x32xf32> to vector<2x32xf32>
    %120 = arith.mulf %117, %119 : vector<2x32xf32>
    %c0_90 = arith.constant 0 : index
    %c0_91 = arith.constant 0 : index
    %121 = vector.load %arg13[%c0_90, %c0_91] : memref<1x32xf32, #tpu.memory_space<vmem>>, vector<1x32xf32>
    %122 = vector.broadcast %121 : vector<1x32xf32> to vector<2x32xf32>
    %123 = arith.addf %120, %122 : vector<2x32xf32>
    %cst_92 = arith.constant 0.00999999977 : f32
    %124 = vector.broadcast %cst_92 : f32 to vector<2x32xf32>
    %125 = arith.mulf %124, %123 : vector<2x32xf32>
    %126 = arith.maximumf %123, %125 : vector<2x32xf32>
    %127 = arith.truncf %126 : vector<2x32xf32> to vector<2x32xbf16>
    %c0_93 = arith.constant 0 : index
    %c0_94 = arith.constant 0 : index
    %128 = vector.load %arg14[%c0_93, %c0_94] : memref<32x32xbf16, #tpu.memory_space<vmem>>, vector<32x32xbf16>
    %cst_95 = arith.constant dense<0.000000e+00> : vector<2x32xf32>
    %129 = tpu.matmul %127, %128, %cst_95 {dimension_numbers = #tpu.dot_dimension_numbers<[1], [0], [0], [1], [0, 0, 1, 1], [], []>} : vector<2x32xbf16>, vector<32x32xbf16>, vector<2x32xf32> -> vector<2x32xf32>
    %c0_96 = arith.constant 0 : index
    %c0_97 = arith.constant 0 : index
    %130 = vector.load %arg15[%c0_96, %c0_97] : memref<1x32xf32, #tpu.memory_space<vmem>>, vector<1x32xf32>
    %131 = vector.broadcast %130 : vector<1x32xf32> to vector<2x32xf32>
    %132 = arith.mulf %129, %131 : vector<2x32xf32>
    %c0_98 = arith.constant 0 : index
    %c0_99 = arith.constant 0 : index
    %133 = vector.load %arg16[%c0_98, %c0_99] : memref<1x32xf32, #tpu.memory_space<vmem>>, vector<1x32xf32>
    %134 = vector.broadcast %133 : vector<1x32xf32> to vector<2x32xf32>
    %135 = arith.addf %132, %134 : vector<2x32xf32>
    %cst_100 = arith.constant 0.00999999977 : f32
    %136 = vector.broadcast %cst_100 : f32 to vector<2x32xf32>
    %137 = arith.mulf %136, %135 : vector<2x32xf32>
    %138 = arith.maximumf %135, %137 : vector<2x32xf32>
    %139 = arith.truncf %138 : vector<2x32xf32> to vector<2x32xbf16>
    %c0_101 = arith.constant 0 : index
    %c0_102 = arith.constant 0 : index
    %140 = vector.load %arg17[%c0_101, %c0_102] : memref<32x128xbf16, #tpu.memory_space<vmem>>, vector<32x128xbf16>
    %cst_103 = arith.constant dense<0.000000e+00> : vector<2x128xf32>
    %141 = tpu.matmul %139, %140, %cst_103 {dimension_numbers = #tpu.dot_dimension_numbers<[1], [0], [0], [1], [0, 0, 1, 1], [], []>} : vector<2x32xbf16>, vector<32x128xbf16>, vector<2x128xf32> -> vector<2x128xf32>
    %c0_104 = arith.constant 0 : index
    %c0_105 = arith.constant 0 : index
    %142 = vector.load %arg18[%c0_104, %c0_105] : memref<1x128xf32, #tpu.memory_space<vmem>>, vector<1x128xf32>
    %143 = vector.broadcast %142 : vector<1x128xf32> to vector<2x128xf32>
    %144 = arith.addf %141, %143 : vector<2x128xf32>
    %c0_106 = arith.constant 0 : index
    %c0_107 = arith.constant 0 : index
    %c0_108 = arith.constant 0 : index
    %145 = vector.load %arg19[%c0_106, %c0_107, %c0_108] : memref<2x1x128xf32, #tpu.memory_space<vmem>>, vector<2x1x128xf32>
    %146 = vector.shape_cast %145 : vector<2x1x128xf32> to vector<2x128xf32>
    %147 = vector.shape_cast %144 : vector<2x128xf32> to vector<2x1x128xf32>
    tpu.vector_store %arg19[%c0_106, %c0_107, %c0_108], %147 {strides = array<i32>} : memref<2x1x128xf32, #tpu.memory_space<vmem>>, vector<2x1x128xf32>,
    return
  }
  func.func @transform_0(%arg0: i32) -> (i32, i32, i32) {
    %c0_i32 = arith.constant 0 : i32
    %c0_i32_0 = arith.constant 0 : i32
    %c0_i32_1 = arith.constant 0 : i32
    return %arg0, %c0_i32, %c0_i32_0 : i32, i32, i32
  }
  func.func @transform_1(%arg0: i32) -> (i32, i32, i32) {
    %c0_i32 = arith.constant 0 : i32
    %c0_i32_0 = arith.constant 0 : i32
    %c0_i32_1 = arith.constant 0 : i32
    %c0_i32_2 = arith.constant 0 : i32
    return %c0_i32, %c0_i32_0, %c0_i32_1 : i32, i32, i32
  }
  func.func @transform_2(%arg0: i32) -> (i32, i32) {
    %c0_i32 = arith.constant 0 : i32
    %c0_i32_0 = arith.constant 0 : i32
    %c0_i32_1 = arith.constant 0 : i32
    return %c0_i32, %c0_i32_0 : i32, i32
  }
  func.func @transform_3(%arg0: i32) -> (i32, i32) {
    %c0_i32 = arith.constant 0 : i32
    %c0_i32_0 = arith.constant 0 : i32
    %c0_i32_1 = arith.constant 0 : i32
    return %c0_i32, %c0_i32_0 : i32, i32
  }
  func.func @transform_4(%arg0: i32) -> (i32, i32, i32) {
    %c0_i32 = arith.constant 0 : i32
    %c0_i32_0 = arith.constant 0 : i32
    %c0_i32_1 = arith.constant 0 : i32
    %c0_i32_2 = arith.constant 0 : i32
    return %c0_i32, %c0_i32_0, %c0_i32_1 : i32, i32, i32
  }
  func.func @transform_5(%arg0: i32) -> (i32, i32) {
    %c0_i32 = arith.constant 0 : i32
    %c0_i32_0 = arith.constant 0 : i32
    %c0_i32_1 = arith.constant 0 : i32
    return %c0_i32, %c0_i32_0 : i32, i32
  }
  func.func @transform_6(%arg0: i32) -> (i32, i32) {
    %c0_i32 = arith.constant 0 : i32
    %c0_i32_0 = arith.constant 0 : i32
    %c0_i32_1 = arith.constant 0 : i32
    return %c0_i32, %c0_i32_0 : i32, i32
  }
  func.func @transform_7(%arg0: i32) -> (i32, i32, i32) {
    %c0_i32 = arith.constant 0 : i32
    %c0_i32_0 = arith.constant 0 : i32
    %c0_i32_1 = arith.constant 0 : i32
    %c0_i32_2 = arith.constant 0 : i32
    return %c0_i32, %c0_i32_0, %c0_i32_1 : i32, i32, i32
  }
  func.func @transform_8(%arg0: i32) -> (i32, i32) {
    %c0_i32 = arith.constant 0 : i32
    %c0_i32_0 = arith.constant 0 : i32
    %c0_i32_1 = arith.constant 0 : i32
    return %c0_i32, %c0_i32_0 : i32, i32
  }
  func.func @transform_9(%arg0: i32) -> (i32, i32) {
    %c0_i32 = arith.constant 0 : i32
    %c0_i32_0 = arith.constant 0 : i32
    %c0_i32_1 = arith.constant 0 : i32
    return %c0_i32, %c0_i32_0 : i32, i32
  }
  func.func @transform_10(%arg0: i32) -> (i32, i32, i32) {
    %c0_i32 = arith.constant 0 : i32
    %c0_i32_0 = arith.constant 0 : i32
    %c0_i32_1 = arith.constant 0 : i32
    %c0_i32_2 = arith.constant 0 : i32
    return %c0_i32, %c0_i32_0, %c0_i32_1 : i32, i32, i32
  }
  func.func @transform_11(%arg0: i32) -> (i32, i32) {
    %c0_i32 = arith.constant 0 : i32
    %c0_i32_0 = arith.constant 0 : i32
    %c0_i32_1 = arith.constant 0 : i32
    return %c0_i32, %c0_i32_0 : i32, i32
  }
  func.func @transform_12(%arg0: i32) -> (i32, i32) {
    %c0_i32 = arith.constant 0 : i32
    %c0_i32_0 = arith.constant 0 : i32
    %c0_i32_1 = arith.constant 0 : i32
    return %c0_i32, %c0_i32_0 : i32, i32
  }
  func.func @transform_13(%arg0: i32) -> (i32, i32) {
    %c0_i32 = arith.constant 0 : i32
    %c0_i32_0 = arith.constant 0 : i32
    %c0_i32_1 = arith.constant 0 : i32
    return %c0_i32, %c0_i32_0 : i32, i32
  }
  func.func @transform_14(%arg0: i32) -> (i32, i32) {
    %c0_i32 = arith.constant 0 : i32
    %c0_i32_0 = arith.constant 0 : i32
    %c0_i32_1 = arith.constant 0 : i32
    return %c0_i32, %c0_i32_0 : i32, i32
  }
  func.func @transform_15(%arg0: i32) -> (i32, i32) {
    %c0_i32 = arith.constant 0 : i32
    %c0_i32_0 = arith.constant 0 : i32
    %c0_i32_1 = arith.constant 0 : i32
    return %c0_i32, %c0_i32_0 : i32, i32
  }
  func.func @transform_16(%arg0: i32) -> (i32, i32) {
    %c0_i32 = arith.constant 0 : i32
    %c0_i32_0 = arith.constant 0 : i32
    %c0_i32_1 = arith.constant 0 : i32
    return %c0_i32, %c0_i32_0 : i32, i32
  }
  func.func @transform_17(%arg0: i32) -> (i32, i32) {
    %c0_i32 = arith.constant 0 : i32
    %c0_i32_0 = arith.constant 0 : i32
    %c0_i32_1 = arith.constant 0 : i32
    return %c0_i32, %c0_i32_0 : i32, i32
  }
  func.func @transform_18(%arg0: i32) -> (i32, i32, i32) {
    %c0_i32 = arith.constant 0 : i32
    %c0_i32_0 = arith.constant 0 : i32
    %c0_i32_1 = arith.constant 0 : i32
    return %arg0, %c0_i32, %c0_i32_0 : i32, i32, i32
  }
}

module attributes {stable_mosaic.version = 11 : i64} {
  func.func @kernel(%arg0: i32, %arg1: memref<2x16x4xf32, #tpu.memory_space<vmem>>, %arg2: memref<3x4x8xbf16, #tpu.memory_space<vmem>>, %arg3: memref<1x8xf32, #tpu.memory_space<vmem>>, %arg4: memref<1x8xf32, #tpu.memory_space<vmem>>, %arg5: memref<3x8x8xbf16, #tpu.memory_space<vmem>>, %arg6: memref<1x8xf32, #tpu.memory_space<vmem>>, %arg7: memref<1x8xf32, #tpu.memory_space<vmem>>, %arg8: memref<3x8x16xbf16, #tpu.memory_space<vmem>>, %arg9: memref<1x16xf32, #tpu.memory_space<vmem>>, %arg10: memref<1x16xf32, #tpu.memory_space<vmem>>, %arg11: memref<4x16x32xbf16, #tpu.memory_space<vmem>>, %arg12: memref<1x32xf32, #tpu.memory_space<vmem>>, %arg13: memref<1x32xf32, #tpu.memory_space<vmem>>, %arg14: memref<32x32xbf16, #tpu.memory_space<vmem>>, %arg15: memref<1x32xf32, #tpu.memory_space<vmem>>, %arg16: memref<1x32xf32, #tpu.memory_space<vmem>>, %arg17: memref<32x128xbf16, #tpu.memory_space<vmem>>, %arg18: memref<1x128xf32, #tpu.memory_space<vmem>>, %arg19: memref<2x1x128xf32, #tpu.memory_space<vmem>>, %arg20: memref<32x16xf32, #tpu.memory_space<vmem>>) attributes {dimension_semantics = [#tpu.dimension_semantics<parallel>], iteration_bounds = array<i64: 1>, scalar_prefetch = 0 : i64, scratch_operands = 1 : i64, tpu.core_type = #tpu.core_type<tc>, window_params = [{transform_indices = @transform_0, window_bounds = array<i64: 2, 16, 4>}, {pipeline_mode = #tpu.pipeline_mode<synchronous>, transform_indices = @transform_1, window_bounds = array<i64: 3, 4, 8>}, {pipeline_mode = #tpu.pipeline_mode<synchronous>, transform_indices = @transform_2, window_bounds = array<i64: 1, 8>}, {pipeline_mode = #tpu.pipeline_mode<synchronous>, transform_indices = @transform_3, window_bounds = array<i64: 1, 8>}, {pipeline_mode = #tpu.pipeline_mode<synchronous>, transform_indices = @transform_4, window_bounds = array<i64: 3, 8, 8>}, {pipeline_mode = #tpu.pipeline_mode<synchronous>, transform_indices = @transform_5, window_bounds = array<i64: 1, 8>}, {pipeline_mode = #tpu.pipeline_mode<synchronous>, transform_indices = @transform_6, window_bounds = array<i64: 1, 8>}, {pipeline_mode = #tpu.pipeline_mode<synchronous>, transform_indices = @transform_7, window_bounds = array<i64: 3, 8, 16>}, {pipeline_mode = #tpu.pipeline_mode<synchronous>, transform_indices = @transform_8, window_bounds = array<i64: 1, 16>}, {pipeline_mode = #tpu.pipeline_mode<synchronous>, transform_indices = @transform_9, window_bounds = array<i64: 1, 16>}, {pipeline_mode = #tpu.pipeline_mode<synchronous>, transform_indices = @transform_10, window_bounds = array<i64: 4, 16, 32>}, {pipeline_mode = #tpu.pipeline_mode<synchronous>, transform_indices = @transform_11, window_bounds = array<i64: 1, 32>}, {pipeline_mode = #tpu.pipeline_mode<synchronous>, transform_indices = @transform_12, window_bounds = array<i64: 1, 32>}, {pipeline_mode = #tpu.pipeline_mode<synchronous>, transform_indices = @transform_13, window_bounds = array<i64: 32, 32>}, {pipeline_mode = #tpu.pipeline_mode<synchronous>, transform_indices = @transform_14, window_bounds = array<i64: 1, 32>}, {pipeline_mode = #tpu.pipeline_mode<synchronous>, transform_indices = @transform_15, window_bounds = array<i64: 1, 32>}, {pipeline_mode = #tpu.pipeline_mode<synchronous>, transform_indices = @transform_16, window_bounds = array<i64: 32, 128>}, {pipeline_mode = #tpu.pipeline_mode<synchronous>, transform_indices = @transform_17, window_bounds = array<i64: 1, 128>}, {transform_indices = @transform_18, window_bounds = array<i64: 2, 1, 128>}]} {
    %c0 = arith.constant 0 : index
    %c0_0 = arith.constant 0 : index
    %c0_1 = arith.constant 0 : index
    %0 = vector.load %arg1[%c0, %c0_0, %c0_1] : memref<2x16x4xf32, #tpu.memory_space<vmem>>, vector<2x16x4xf32>
    %1 = vector.shape_cast %0 : vector<2x16x4xf32> to vector<32x4xf32>
    %2 = vector.shape_cast %1 : vector<32x4xf32> to vector<2x16x4xf32>
    %c1_i32 = arith.constant 1 : i32
    %3 = tpu.dynamic_rotate %2 by %c1_i32 dim 1 : vector<2x16x4xf32>, i32 -> vector<2x16x4xf32>
    %4 = arith.truncf %3 : vector<2x16x4xf32> to vector<2x16x4xbf16>
    %5 = vector.shape_cast %4 : vector<2x16x4xbf16> to vector<32x4xbf16>
    %c0_2 = arith.constant 0 : index
    %c0_3 = arith.constant 0 : index
    %c0_4 = arith.constant 0 : index
    %6 = vector.load %arg2[%c0_2, %c0_3, %c0_4] : memref<3x4x8xbf16, #tpu.memory_space<vmem>>, vector<1x4x8xbf16>
    %7 = vector.shape_cast %6 : vector<1x4x8xbf16> to vector<4x8xbf16>
    %cst = arith.constant dense<0.000000e+00> : vector<32x8xf32>
    %8 = tpu.matmul %5, %7, %cst {dimension_numbers = #tpu.dot_dimension_numbers<[1], [0], [0], [1], [0, 0, 1, 1], [], []>} : vector<32x4xbf16>, vector<4x8xbf16>, vector<32x8xf32> -> vector<32x8xf32>
    %9 = arith.truncf %2 : vector<2x16x4xf32> to vector<2x16x4xbf16>
    %10 = vector.shape_cast %9 : vector<2x16x4xbf16> to vector<32x4xbf16>
    %c1 = arith.constant 1 : index
    %c0_5 = arith.constant 0 : index
    %c0_6 = arith.constant 0 : index
    %11 = vector.load %arg2[%c1, %c0_5, %c0_6] : memref<3x4x8xbf16, #tpu.memory_space<vmem>>, vector<1x4x8xbf16>
    %12 = vector.shape_cast %11 : vector<1x4x8xbf16> to vector<4x8xbf16>
    %cst_7 = arith.constant dense<0.000000e+00> : vector<32x8xf32>
    %13 = tpu.matmul %10, %12, %cst_7 {dimension_numbers = #tpu.dot_dimension_numbers<[1], [0], [0], [1], [0, 0, 1, 1], [], []>} : vector<32x4xbf16>, vector<4x8xbf16>, vector<32x8xf32> -> vector<32x8xf32>
    %14 = arith.addf %8, %13 : vector<32x8xf32>
    %c15_i32 = arith.constant 15 : i32
    %15 = tpu.dynamic_rotate %2 by %c15_i32 dim 1 : vector<2x16x4xf32>, i32 -> vector<2x16x4xf32>
    %16 = arith.truncf %15 : vector<2x16x4xf32> to vector<2x16x4xbf16>
    %17 = vector.shape_cast %16 : vector<2x16x4xbf16> to vector<32x4xbf16>
    %c2 = arith.constant 2 : index
    %c0_8 = arith.constant 0 : index
    %c0_9 = arith.constant 0 : index
    %18 = vector.load %arg2[%c2, %c0_8, %c0_9] : memref<3x4x8xbf16, #tpu.memory_space<vmem>>, vector<1x4x8xbf16>
    %19 = vector.shape_cast %18 : vector<1x4x8xbf16> to vector<4x8xbf16>
    %cst_10 = arith.constant dense<0.000000e+00> : vector<32x8xf32>
    %20 = tpu.matmul %17, %19, %cst_10 {dimension_numbers = #tpu.dot_dimension_numbers<[1], [0], [0], [1], [0, 0, 1, 1], [], []>} : vector<32x4xbf16>, vector<4x8xbf16>, vector<32x8xf32> -> vector<32x8xf32>
    %21 = arith.addf %14, %20 : vector<32x8xf32>
    %c0_11 = arith.constant 0 : index
    %c0_12 = arith.constant 0 : index
    %22 = vector.load %arg3[%c0_11, %c0_12] : memref<1x8xf32, #tpu.memory_space<vmem>>, vector<1x8xf32>
    %23 = vector.broadcast %22 : vector<1x8xf32> to vector<32x8xf32>
    %24 = arith.mulf %21, %23 : vector<32x8xf32>
    %c0_13 = arith.constant 0 : index
    %c0_14 = arith.constant 0 : index
    %25 = vector.load %arg4[%c0_13, %c0_14] : memref<1x8xf32, #tpu.memory_space<vmem>>, vector<1x8xf32>
    %26 = vector.broadcast %25 : vector<1x8xf32> to vector<32x8xf32>
    %27 = arith.addf %24, %26 : vector<32x8xf32>
    %cst_15 = arith.constant 0.000000e+00 : f32
    %28 = vector.broadcast %cst_15 : f32 to vector<32x8xf32>
    %29 = arith.maximumf %27, %28 : vector<32x8xf32>
    %30 = vector.shape_cast %29 : vector<32x8xf32> to vector<2x16x8xf32>
    %c2_i32 = arith.constant 2 : i32
    %31 = tpu.dynamic_rotate %30 by %c2_i32 dim 1 : vector<2x16x8xf32>, i32 -> vector<2x16x8xf32>
    %32 = arith.truncf %31 : vector<2x16x8xf32> to vector<2x16x8xbf16>
    %33 = vector.shape_cast %32 : vector<2x16x8xbf16> to vector<32x8xbf16>
    %c0_16 = arith.constant 0 : index
    %c0_17 = arith.constant 0 : index
    %c0_18 = arith.constant 0 : index
    %34 = vector.load %arg5[%c0_16, %c0_17, %c0_18] : memref<3x8x8xbf16, #tpu.memory_space<vmem>>, vector<1x8x8xbf16>
    %35 = vector.shape_cast %34 : vector<1x8x8xbf16> to vector<8x8xbf16>
    %cst_19 = arith.constant dense<0.000000e+00> : vector<32x8xf32>
    %36 = tpu.matmul %33, %35, %cst_19 {dimension_numbers = #tpu.dot_dimension_numbers<[1], [0], [0], [1], [0, 0, 1, 1], [], []>} : vector<32x8xbf16>, vector<8x8xbf16>, vector<32x8xf32> -> vector<32x8xf32>
    %37 = arith.truncf %30 : vector<2x16x8xf32> to vector<2x16x8xbf16>
    %38 = vector.shape_cast %37 : vector<2x16x8xbf16> to vector<32x8xbf16>
    %c1_20 = arith.constant 1 : index
    %c0_21 = arith.constant 0 : index
    %c0_22 = arith.constant 0 : index
    %39 = vector.load %arg5[%c1_20, %c0_21, %c0_22] : memref<3x8x8xbf16, #tpu.memory_space<vmem>>, vector<1x8x8xbf16>
    %40 = vector.shape_cast %39 : vector<1x8x8xbf16> to vector<8x8xbf16>
    %cst_23 = arith.constant dense<0.000000e+00> : vector<32x8xf32>
    %41 = tpu.matmul %38, %40, %cst_23 {dimension_numbers = #tpu.dot_dimension_numbers<[1], [0], [0], [1], [0, 0, 1, 1], [], []>} : vector<32x8xbf16>, vector<8x8xbf16>, vector<32x8xf32> -> vector<32x8xf32>
    %42 = arith.addf %36, %41 : vector<32x8xf32>
    %c14_i32 = arith.constant 14 : i32
    %43 = tpu.dynamic_rotate %30 by %c14_i32 dim 1 : vector<2x16x8xf32>, i32 -> vector<2x16x8xf32>
    %44 = arith.truncf %43 : vector<2x16x8xf32> to vector<2x16x8xbf16>
    %45 = vector.shape_cast %44 : vector<2x16x8xbf16> to vector<32x8xbf16>
    %c2_24 = arith.constant 2 : index
    %c0_25 = arith.constant 0 : index
    %c0_26 = arith.constant 0 : index
    %46 = vector.load %arg5[%c2_24, %c0_25, %c0_26] : memref<3x8x8xbf16, #tpu.memory_space<vmem>>, vector<1x8x8xbf16>
    %47 = vector.shape_cast %46 : vector<1x8x8xbf16> to vector<8x8xbf16>
    %cst_27 = arith.constant dense<0.000000e+00> : vector<32x8xf32>
    %48 = tpu.matmul %45, %47, %cst_27 {dimension_numbers = #tpu.dot_dimension_numbers<[1], [0], [0], [1], [0, 0, 1, 1], [], []>} : vector<32x8xbf16>, vector<8x8xbf16>, vector<32x8xf32> -> vector<32x8xf32>
    %49 = arith.addf %42, %48 : vector<32x8xf32>
    %c0_28 = arith.constant 0 : index
    %c0_29 = arith.constant 0 : index
    %50 = vector.load %arg6[%c0_28, %c0_29] : memref<1x8xf32, #tpu.memory_space<vmem>>, vector<1x8xf32>
    %51 = vector.broadcast %50 : vector<1x8xf32> to vector<32x8xf32>
    %52 = arith.mulf %49, %51 : vector<32x8xf32>
    %c0_30 = arith.constant 0 : index
    %c0_31 = arith.constant 0 : index
    %53 = vector.load %arg7[%c0_30, %c0_31] : memref<1x8xf32, #tpu.memory_space<vmem>>, vector<1x8xf32>
    %54 = vector.broadcast %53 : vector<1x8xf32> to vector<32x8xf32>
    %55 = arith.addf %52, %54 : vector<32x8xf32>
    %cst_32 = arith.constant 0.000000e+00 : f32
    %56 = vector.broadcast %cst_32 : f32 to vector<32x8xf32>
    %57 = arith.maximumf %55, %56 : vector<32x8xf32>
    %c0_33 = arith.constant 0 : index
    %c0_34 = arith.constant 0 : index
    %58 = vector.load %arg20[%c0_33, %c0_34] : memref<32x16xf32, #tpu.memory_space<vmem>>, vector<32x8xf32>
    tpu.vector_store %arg20[%c0_33, %c0_34], %57 {strides = array<i32>} : memref<32x16xf32, #tpu.memory_space<vmem>>, vector<32x8xf32>,
    %c0_35 = arith.constant 0 : index
    %c0_36 = arith.constant 0 : index
    %59 = tpu.strided_load %arg20[%c0_35, %c0_36] {strides = array<i32: 2, 1>} : memref<32x16xf32, #tpu.memory_space<vmem>>, vector<16x8xf32>
    %c1_37 = arith.constant 1 : index
    %c0_38 = arith.constant 0 : index
    %60 = tpu.strided_load %arg20[%c1_37, %c0_38] {strides = array<i32: 2, 1>} : memref<32x16xf32, #tpu.memory_space<vmem>>, vector<16x8xf32>
    %61 = arith.maximumf %59, %60 : vector<16x8xf32>
    %62 = vector.shape_cast %61 : vector<16x8xf32> to vector<2x8x8xf32>
    %c1_i32_39 = arith.constant 1 : i32
    %63 = tpu.dynamic_rotate %62 by %c1_i32_39 dim 1 : vector<2x8x8xf32>, i32 -> vector<2x8x8xf32>
    %64 = arith.truncf %63 : vector<2x8x8xf32> to vector<2x8x8xbf16>
    %65 = vector.shape_cast %64 : vector<2x8x8xbf16> to vector<16x8xbf16>
    %c0_40 = arith.constant 0 : index
    %c0_41 = arith.constant 0 : index
    %c0_42 = arith.constant 0 : index
    %66 = vector.load %arg8[%c0_40, %c0_41, %c0_42] : memref<3x8x16xbf16, #tpu.memory_space<vmem>>, vector<1x8x16xbf16>
    %67 = vector.shape_cast %66 : vector<1x8x16xbf16> to vector<8x16xbf16>
    %cst_43 = arith.constant dense<0.000000e+00> : vector<16x16xf32>
    %68 = tpu.matmul %65, %67, %cst_43 {dimension_numbers = #tpu.dot_dimension_numbers<[1], [0], [0], [1], [0, 0, 1, 1], [], []>} : vector<16x8xbf16>, vector<8x16xbf16>, vector<16x16xf32> -> vector<16x16xf32>
    %69 = arith.truncf %62 : vector<2x8x8xf32> to vector<2x8x8xbf16>
    %70 = vector.shape_cast %69 : vector<2x8x8xbf16> to vector<16x8xbf16>
    %c1_44 = arith.constant 1 : index
    %c0_45 = arith.constant 0 : index
    %c0_46 = arith.constant 0 : index
    %71 = vector.load %arg8[%c1_44, %c0_45, %c0_46] : memref<3x8x16xbf16, #tpu.memory_space<vmem>>, vector<1x8x16xbf16>
    %72 = vector.shape_cast %71 : vector<1x8x16xbf16> to vector<8x16xbf16>
    %cst_47 = arith.constant dense<0.000000e+00> : vector<16x16xf32>
    %73 = tpu.matmul %70, %72, %cst_47 {dimension_numbers = #tpu.dot_dimension_numbers<[1], [0], [0], [1], [0, 0, 1, 1], [], []>} : vector<16x8xbf16>, vector<8x16xbf16>, vector<16x16xf32> -> vector<16x16xf32>
    %74 = arith.addf %68, %73 : vector<16x16xf32>
    %c7_i32 = arith.constant 7 : i32
    %75 = tpu.dynamic_rotate %62 by %c7_i32 dim 1 : vector<2x8x8xf32>, i32 -> vector<2x8x8xf32>
    %76 = arith.truncf %75 : vector<2x8x8xf32> to vector<2x8x8xbf16>
    %77 = vector.shape_cast %76 : vector<2x8x8xbf16> to vector<16x8xbf16>
    %c2_48 = arith.constant 2 : index
    %c0_49 = arith.constant 0 : index
    %c0_50 = arith.constant 0 : index
    %78 = vector.load %arg8[%c2_48, %c0_49, %c0_50] : memref<3x8x16xbf16, #tpu.memory_space<vmem>>, vector<1x8x16xbf16>
    %79 = vector.shape_cast %78 : vector<1x8x16xbf16> to vector<8x16xbf16>
    %cst_51 = arith.constant dense<0.000000e+00> : vector<16x16xf32>
    %80 = tpu.matmul %77, %79, %cst_51 {dimension_numbers = #tpu.dot_dimension_numbers<[1], [0], [0], [1], [0, 0, 1, 1], [], []>} : vector<16x8xbf16>, vector<8x16xbf16>, vector<16x16xf32> -> vector<16x16xf32>
    %81 = arith.addf %74, %80 : vector<16x16xf32>
    %c0_52 = arith.constant 0 : index
    %c0_53 = arith.constant 0 : index
    %82 = vector.load %arg9[%c0_52, %c0_53] : memref<1x16xf32, #tpu.memory_space<vmem>>, vector<1x16xf32>
    %83 = vector.broadcast %82 : vector<1x16xf32> to vector<16x16xf32>
    %84 = arith.mulf %81, %83 : vector<16x16xf32>
    %c0_54 = arith.constant 0 : index
    %c0_55 = arith.constant 0 : index
    %85 = vector.load %arg10[%c0_54, %c0_55] : memref<1x16xf32, #tpu.memory_space<vmem>>, vector<1x16xf32>
    %86 = vector.broadcast %85 : vector<1x16xf32> to vector<16x16xf32>
    %87 = arith.addf %84, %86 : vector<16x16xf32>
    %cst_56 = arith.constant 0.000000e+00 : f32
    %88 = vector.broadcast %cst_56 : f32 to vector<16x16xf32>
    %89 = arith.maximumf %87, %88 : vector<16x16xf32>
    %c0_57 = arith.constant 0 : index
    %c0_58 = arith.constant 0 : index
    %90 = vector.load %arg20[%c0_57, %c0_58] : memref<32x16xf32, #tpu.memory_space<vmem>>, vector<16x16xf32>
    tpu.vector_store %arg20[%c0_57, %c0_58], %89 {strides = array<i32>} : memref<32x16xf32, #tpu.memory_space<vmem>>, vector<16x16xf32>,
    %c0_59 = arith.constant 0 : index
    %c0_60 = arith.constant 0 : index
    %91 = tpu.strided_load %arg20[%c0_59, %c0_60] {strides = array<i32: 2, 1>} : memref<32x16xf32, #tpu.memory_space<vmem>>, vector<8x16xf32>
    %c1_61 = arith.constant 1 : index
    %c0_62 = arith.constant 0 : index
    %92 = tpu.strided_load %arg20[%c1_61, %c0_62] {strides = array<i32: 2, 1>} : memref<32x16xf32, #tpu.memory_space<vmem>>, vector<8x16xf32>
    %93 = arith.maximumf %91, %92 : vector<8x16xf32>
    %c0_63 = arith.constant 0 : index
    %c0_64 = arith.constant 0 : index
    %94 = vector.load %arg20[%c0_63, %c0_64] : memref<32x16xf32, #tpu.memory_space<vmem>>, vector<8x16xf32>
    tpu.vector_store %arg20[%c0_63, %c0_64], %93 {strides = array<i32>} : memref<32x16xf32, #tpu.memory_space<vmem>>, vector<8x16xf32>,
    %c0_65 = arith.constant 0 : index
    %c0_66 = arith.constant 0 : index
    %95 = tpu.strided_load %arg20[%c0_65, %c0_66] {strides = array<i32: 4, 1>} : memref<32x16xf32, #tpu.memory_space<vmem>>, vector<2x16xf32>
    %96 = arith.truncf %95 : vector<2x16xf32> to vector<2x16xbf16>
    %c0_67 = arith.constant 0 : index
    %c0_68 = arith.constant 0 : index
    %c0_69 = arith.constant 0 : index
    %97 = vector.load %arg11[%c0_67, %c0_68, %c0_69] : memref<4x16x32xbf16, #tpu.memory_space<vmem>>, vector<1x16x32xbf16>
    %98 = vector.shape_cast %97 : vector<1x16x32xbf16> to vector<16x32xbf16>
    %cst_70 = arith.constant dense<0.000000e+00> : vector<2x32xf32>
    %99 = tpu.matmul %96, %98, %cst_70 {dimension_numbers = #tpu.dot_dimension_numbers<[1], [0], [0], [1], [0, 0, 1, 1], [], []>} : vector<2x16xbf16>, vector<16x32xbf16>, vector<2x32xf32> -> vector<2x32xf32>
    %c1_71 = arith.constant 1 : index
    %c0_72 = arith.constant 0 : index
    %100 = tpu.strided_load %arg20[%c1_71, %c0_72] {strides = array<i32: 4, 1>} : memref<32x16xf32, #tpu.memory_space<vmem>>, vector<2x16xf32>
    %101 = arith.truncf %100 : vector<2x16xf32> to vector<2x16xbf16>
    %c1_73 = arith.constant 1 : index
    %c0_74 = arith.constant 0 : index
    %c0_75 = arith.constant 0 : index
    %102 = vector.load %arg11[%c1_73, %c0_74, %c0_75] : memref<4x16x32xbf16, #tpu.memory_space<vmem>>, vector<1x16x32xbf16>
    %103 = vector.shape_cast %102 : vector<1x16x32xbf16> to vector<16x32xbf16>
    %cst_76 = arith.constant dense<0.000000e+00> : vector<2x32xf32>
    %104 = tpu.matmul %101, %103, %cst_76 {dimension_numbers = #tpu.dot_dimension_numbers<[1], [0], [0], [1], [0, 0, 1, 1], [], []>} : vector<2x16xbf16>, vector<16x32xbf16>, vector<2x32xf32> -> vector<2x32xf32>
    %105 = arith.addf %99, %104 : vector<2x32xf32>
    %c2_77 = arith.constant 2 : index
    %c0_78 = arith.constant 0 : index
    %106 = tpu.strided_load %arg20[%c2_77, %c0_78] {strides = array<i32: 4, 1>} : memref<32x16xf32, #tpu.memory_space<vmem>>, vector<2x16xf32>
    %107 = arith.truncf %106 : vector<2x16xf32> to vector<2x16xbf16>
    %c2_79 = arith.constant 2 : index
    %c0_80 = arith.constant 0 : index
    %c0_81 = arith.constant 0 : index
    %108 = vector.load %arg11[%c2_79, %c0_80, %c0_81] : memref<4x16x32xbf16, #tpu.memory_space<vmem>>, vector<1x16x32xbf16>
    %109 = vector.shape_cast %108 : vector<1x16x32xbf16> to vector<16x32xbf16>
    %cst_82 = arith.constant dense<0.000000e+00> : vector<2x32xf32>
    %110 = tpu.matmul %107, %109, %cst_82 {dimension_numbers = #tpu.dot_dimension_numbers<[1], [0], [0], [1], [0, 0, 1, 1], [], []>} : vector<2x16xbf16>, vector<16x32xbf16>, vector<2x32xf32> -> vector<2x32xf32>
    %111 = arith.addf %105, %110 : vector<2x32xf32>
    %c3 = arith.constant 3 : index
    %c0_83 = arith.constant 0 : index
    %112 = tpu.strided_load %arg20[%c3, %c0_83] {strides = array<i32: 4, 1>} : memref<32x16xf32, #tpu.memory_space<vmem>>, vector<2x16xf32>
    %113 = arith.truncf %112 : vector<2x16xf32> to vector<2x16xbf16>
    %c3_84 = arith.constant 3 : index
    %c0_85 = arith.constant 0 : index
    %c0_86 = arith.constant 0 : index
    %114 = vector.load %arg11[%c3_84, %c0_85, %c0_86] : memref<4x16x32xbf16, #tpu.memory_space<vmem>>, vector<1x16x32xbf16>
    %115 = vector.shape_cast %114 : vector<1x16x32xbf16> to vector<16x32xbf16>
    %cst_87 = arith.constant dense<0.000000e+00> : vector<2x32xf32>
    %116 = tpu.matmul %113, %115, %cst_87 {dimension_numbers = #tpu.dot_dimension_numbers<[1], [0], [0], [1], [0, 0, 1, 1], [], []>} : vector<2x16xbf16>, vector<16x32xbf16>, vector<2x32xf32> -> vector<2x32xf32>
    %117 = arith.addf %111, %116 : vector<2x32xf32>
    %c0_88 = arith.constant 0 : index
    %c0_89 = arith.constant 0 : index
    %118 = vector.load %arg12[%c0_88, %c0_89] : memref<1x32xf32, #tpu.memory_space<vmem>>, vector<1x32xf32>
    %119 = vector.broadcast %118 : vector<1x32xf32> to vector<2x32xf32>
    %120 = arith.mulf %117, %119 : vector<2x32xf32>
    %c0_90 = arith.constant 0 : index
    %c0_91 = arith.constant 0 : index
    %121 = vector.load %arg13[%c0_90, %c0_91] : memref<1x32xf32, #tpu.memory_space<vmem>>, vector<1x32xf32>
    %122 = vector.broadcast %121 : vector<1x32xf32> to vector<2x32xf32>
    %123 = arith.addf %120, %122 : vector<2x32xf32>
    %cst_92 = arith.constant 0.00999999977 : f32
    %124 = vector.broadcast %cst_92 : f32 to vector<2x32xf32>
    %125 = arith.mulf %124, %123 : vector<2x32xf32>
    %126 = arith.maximumf %123, %125 : vector<2x32xf32>
    %127 = arith.truncf %126 : vector<2x32xf32> to vector<2x32xbf16>
    %c0_93 = arith.constant 0 : index
    %c0_94 = arith.constant 0 : index
    %128 = vector.load %arg14[%c0_93, %c0_94] : memref<32x32xbf16, #tpu.memory_space<vmem>>, vector<32x32xbf16>
    %cst_95 = arith.constant dense<0.000000e+00> : vector<2x32xf32>
    %129 = tpu.matmul %127, %128, %cst_95 {dimension_numbers = #tpu.dot_dimension_numbers<[1], [0], [0], [1], [0, 0, 1, 1], [], []>} : vector<2x32xbf16>, vector<32x32xbf16>, vector<2x32xf32> -> vector<2x32xf32>
    %c0_96 = arith.constant 0 : index
    %c0_97 = arith.constant 0 : index
    %130 = vector.load %arg15[%c0_96, %c0_97] : memref<1x32xf32, #tpu.memory_space<vmem>>, vector<1x32xf32>
    %131 = vector.broadcast %130 : vector<1x32xf32> to vector<2x32xf32>
    %132 = arith.mulf %129, %131 : vector<2x32xf32>
    %c0_98 = arith.constant 0 : index
    %c0_99 = arith.constant 0 : index
    %133 = vector.load %arg16[%c0_98, %c0_99] : memref<1x32xf32, #tpu.memory_space<vmem>>, vector<1x32xf32>
    %134 = vector.broadcast %133 : vector<1x32xf32> to vector<2x32xf32>
    %135 = arith.addf %132, %134 : vector<2x32xf32>
    %cst_100 = arith.constant 0.00999999977 : f32
    %136 = vector.broadcast %cst_100 : f32 to vector<2x32xf32>
    %137 = arith.mulf %136, %135 : vector<2x32xf32>
    %138 = arith.maximumf %135, %137 : vector<2x32xf32>
    %139 = arith.truncf %138 : vector<2x32xf32> to vector<2x32xbf16>
    %c0_101 = arith.constant 0 : index
    %c0_102 = arith.constant 0 : index
    %140 = vector.load %arg17[%c0_101, %c0_102] : memref<32x128xbf16, #tpu.memory_space<vmem>>, vector<32x128xbf16>
    %cst_103 = arith.constant dense<0.000000e+00> : vector<2x128xf32>
    %141 = tpu.matmul %139, %140, %cst_103 {dimension_numbers = #tpu.dot_dimension_numbers<[1], [0], [0], [1], [0, 0, 1, 1], [], []>} : vector<2x32xbf16>, vector<32x128xbf16>, vector<2x128xf32> -> vector<2x128xf32>
    %c0_104 = arith.constant 0 : index
    %c0_105 = arith.constant 0 : index
    %142 = vector.load %arg18[%c0_104, %c0_105] : memref<1x128xf32, #tpu.memory_space<vmem>>, vector<1x128xf32>
    %143 = vector.broadcast %142 : vector<1x128xf32> to vector<2x128xf32>
    %144 = arith.addf %141, %143 : vector<2x128xf32>
    %c0_106 = arith.constant 0 : index
    %c0_107 = arith.constant 0 : index
    %c0_108 = arith.constant 0 : index
    %145 = vector.load %arg19[%c0_106, %c0_107, %c0_108] : memref<2x1x128xf32, #tpu.memory_space<vmem>>, vector<2x1x128xf32>
    %146 = vector.shape_cast %145 : vector<2x1x128xf32> to vector<2x128xf32>
    %147 = vector.shape_cast %144 : vector<2x128xf32> to vector<2x1x128xf32>
    tpu.vector_store %arg19[%c0_106, %c0_107, %c0_108], %147 {strides = array<i32>} : memref<2x1x128xf32, #tpu.memory_space<vmem>>, vector<2x1x128xf32>,
    return
  }
  func.func @transform_0(%arg0: i32) -> (i32, i32, i32) {
    %c0_i32 = arith.constant 0 : i32
    %c0_i32_0 = arith.constant 0 : i32
    %c0_i32_1 = arith.constant 0 : i32
    return %arg0, %c0_i32, %c0_i32_0 : i32, i32, i32
  }
  func.func @transform_1(%arg0: i32) -> (i32, i32, i32) {
    %c0_i32 = arith.constant 0 : i32
    %c0_i32_0 = arith.constant 0 : i32
    %c0_i32_1 = arith.constant 0 : i32
    %c0_i32_2 = arith.constant 0 : i32
    return %c0_i32, %c0_i32_0, %c0_i32_1 : i32, i32, i32
  }
  func.func @transform_2(%arg0: i32) -> (i32, i32) {
    %c0_i32 = arith.constant 0 : i32
    %c0_i32_0 = arith.constant 0 : i32
    %c0_i32_1 = arith.constant 0 : i32
    return %c0_i32, %c0_i32_0 : i32, i32
  }
  func.func @transform_3(%arg0: i32) -> (i32, i32) {
    %c0_i32 = arith.constant 0 : i32
    %c0_i32_0 = arith.constant 0 : i32
    %c0_i32_1 = arith.constant 0 : i32
    return %c0_i32, %c0_i32_0 : i32, i32
  }
  func.func @transform_4(%arg0: i32) -> (i32, i32, i32) {
    %c0_i32 = arith.constant 0 : i32
    %c0_i32_0 = arith.constant 0 : i32
    %c0_i32_1 = arith.constant 0 : i32
    %c0_i32_2 = arith.constant 0 : i32
    return %c0_i32, %c0_i32_0, %c0_i32_1 : i32, i32, i32
  }
  func.func @transform_5(%arg0: i32) -> (i32, i32) {
    %c0_i32 = arith.constant 0 : i32
    %c0_i32_0 = arith.constant 0 : i32
    %c0_i32_1 = arith.constant 0 : i32
    return %c0_i32, %c0_i32_0 : i32, i32
  }
  func.func @transform_6(%arg0: i32) -> (i32, i32) {
    %c0_i32 = arith.constant 0 : i32
    %c0_i32_0 = arith.constant 0 : i32
    %c0_i32_1 = arith.constant 0 : i32
    return %c0_i32, %c0_i32_0 : i32, i32
  }
  func.func @transform_7(%arg0: i32) -> (i32, i32, i32) {
    %c0_i32 = arith.constant 0 : i32
    %c0_i32_0 = arith.constant 0 : i32
    %c0_i32_1 = arith.constant 0 : i32
    %c0_i32_2 = arith.constant 0 : i32
    return %c0_i32, %c0_i32_0, %c0_i32_1 : i32, i32, i32
  }
  func.func @transform_8(%arg0: i32) -> (i32, i32) {
    %c0_i32 = arith.constant 0 : i32
    %c0_i32_0 = arith.constant 0 : i32
    %c0_i32_1 = arith.constant 0 : i32
    return %c0_i32, %c0_i32_0 : i32, i32
  }
  func.func @transform_9(%arg0: i32) -> (i32, i32) {
    %c0_i32 = arith.constant 0 : i32
    %c0_i32_0 = arith.constant 0 : i32
    %c0_i32_1 = arith.constant 0 : i32
    return %c0_i32, %c0_i32_0 : i32, i32
  }
  func.func @transform_10(%arg0: i32) -> (i32, i32, i32) {
    %c0_i32 = arith.constant 0 : i32
    %c0_i32_0 = arith.constant 0 : i32
    %c0_i32_1 = arith.constant 0 : i32
    %c0_i32_2 = arith.constant 0 : i32
    return %c0_i32, %c0_i32_0, %c0_i32_1 : i32, i32, i32
  }
  func.func @transform_11(%arg0: i32) -> (i32, i32) {
    %c0_i32 = arith.constant 0 : i32
    %c0_i32_0 = arith.constant 0 : i32
    %c0_i32_1 = arith.constant 0 : i32
    return %c0_i32, %c0_i32_0 : i32, i32
  }
  func.func @transform_12(%arg0: i32) -> (i32, i32) {
    %c0_i32 = arith.constant 0 : i32
    %c0_i32_0 = arith.constant 0 : i32
    %c0_i32_1 = arith.constant 0 : i32
    return %c0_i32, %c0_i32_0 : i32, i32
  }
  func.func @transform_13(%arg0: i32) -> (i32, i32) {
    %c0_i32 = arith.constant 0 : i32
    %c0_i32_0 = arith.constant 0 : i32
    %c0_i32_1 = arith.constant 0 : i32
    return %c0_i32, %c0_i32_0 : i32, i32
  }
  func.func @transform_14(%arg0: i32) -> (i32, i32) {
    %c0_i32 = arith.constant 0 : i32
    %c0_i32_0 = arith.constant 0 : i32
    %c0_i32_1 = arith.constant 0 : i32
    return %c0_i32, %c0_i32_0 : i32, i32
  }
  func.func @transform_15(%arg0: i32) -> (i32, i32) {
    %c0_i32 = arith.constant 0 : i32
    %c0_i32_0 = arith.constant 0 : i32
    %c0_i32_1 = arith.constant 0 : i32
    return %c0_i32, %c0_i32_0 : i32, i32
  }
  func.func @transform_16(%arg0: i32) -> (i32, i32) {
    %c0_i32 = arith.constant 0 : i32
    %c0_i32_0 = arith.constant 0 : i32
    %c0_i32_1 = arith.constant 0 : i32
    return %c0_i32, %c0_i32_0 : i32, i32
  }
  func.func @transform_17(%arg0: i32) -> (i32, i32) {
    %c0_i32 = arith.constant 0 : i32
    %c0_i32_0 = arith.constant 0 : i32
    %c0_i32_1 = arith.constant 0 : i32
    return %c0_i32, %c0_i32_0 : i32, i32
  }
  func.func @transform_18(%arg0: i32) -> (i32, i32, i32) {
    %c0_i32 = arith.constant 0 : i32
    %c0_i32_0 = arith.constant 0 : i32
    %c0_i32_1 = arith.constant 0 : i32
    return %arg0, %c0_i32, %c0_i32_0 : i32, i32, i32
  }
}

module attributes {stable_mosaic.version = 11 : i64} {
  func.func @kernel(%arg0: i32, %arg1: memref<2x16x4xf32, #tpu.memory_space<vmem>>, %arg2: memref<3x4x8xbf16, #tpu.memory_space<vmem>>, %arg3: memref<1x8xf32, #tpu.memory_space<vmem>>, %arg4: memref<1x8xf32, #tpu.memory_space<vmem>>, %arg5: memref<3x8x8xbf16, #tpu.memory_space<vmem>>, %arg6: memref<1x8xf32, #tpu.memory_space<vmem>>, %arg7: memref<1x8xf32, #tpu.memory_space<vmem>>, %arg8: memref<3x8x16xbf16, #tpu.memory_space<vmem>>, %arg9: memref<1x16xf32, #tpu.memory_space<vmem>>, %arg10: memref<1x16xf32, #tpu.memory_space<vmem>>, %arg11: memref<4x16x32xbf16, #tpu.memory_space<vmem>>, %arg12: memref<1x32xf32, #tpu.memory_space<vmem>>, %arg13: memref<1x32xf32, #tpu.memory_space<vmem>>, %arg14: memref<32x32xbf16, #tpu.memory_space<vmem>>, %arg15: memref<1x32xf32, #tpu.memory_space<vmem>>, %arg16: memref<1x32xf32, #tpu.memory_space<vmem>>, %arg17: memref<32x128xbf16, #tpu.memory_space<vmem>>, %arg18: memref<1x128xf32, #tpu.memory_space<vmem>>, %arg19: memref<2x1x128xf32, #tpu.memory_space<vmem>>, %arg20: memref<32x16xf32, #tpu.memory_space<vmem>>) attributes {dimension_semantics = [#tpu.dimension_semantics<parallel>], iteration_bounds = array<i64: 1>, scalar_prefetch = 0 : i64, scratch_operands = 1 : i64, tpu.core_type = #tpu.core_type<tc>, window_params = [{transform_indices = @transform_0, window_bounds = array<i64: 2, 16, 4>}, {pipeline_mode = #tpu.pipeline_mode<synchronous>, transform_indices = @transform_1, window_bounds = array<i64: 3, 4, 8>}, {pipeline_mode = #tpu.pipeline_mode<synchronous>, transform_indices = @transform_2, window_bounds = array<i64: 1, 8>}, {pipeline_mode = #tpu.pipeline_mode<synchronous>, transform_indices = @transform_3, window_bounds = array<i64: 1, 8>}, {pipeline_mode = #tpu.pipeline_mode<synchronous>, transform_indices = @transform_4, window_bounds = array<i64: 3, 8, 8>}, {pipeline_mode = #tpu.pipeline_mode<synchronous>, transform_indices = @transform_5, window_bounds = array<i64: 1, 8>}, {pipeline_mode = #tpu.pipeline_mode<synchronous>, transform_indices = @transform_6, window_bounds = array<i64: 1, 8>}, {pipeline_mode = #tpu.pipeline_mode<synchronous>, transform_indices = @transform_7, window_bounds = array<i64: 3, 8, 16>}, {pipeline_mode = #tpu.pipeline_mode<synchronous>, transform_indices = @transform_8, window_bounds = array<i64: 1, 16>}, {pipeline_mode = #tpu.pipeline_mode<synchronous>, transform_indices = @transform_9, window_bounds = array<i64: 1, 16>}, {pipeline_mode = #tpu.pipeline_mode<synchronous>, transform_indices = @transform_10, window_bounds = array<i64: 4, 16, 32>}, {pipeline_mode = #tpu.pipeline_mode<synchronous>, transform_indices = @transform_11, window_bounds = array<i64: 1, 32>}, {pipeline_mode = #tpu.pipeline_mode<synchronous>, transform_indices = @transform_12, window_bounds = array<i64: 1, 32>}, {pipeline_mode = #tpu.pipeline_mode<synchronous>, transform_indices = @transform_13, window_bounds = array<i64: 32, 32>}, {pipeline_mode = #tpu.pipeline_mode<synchronous>, transform_indices = @transform_14, window_bounds = array<i64: 1, 32>}, {pipeline_mode = #tpu.pipeline_mode<synchronous>, transform_indices = @transform_15, window_bounds = array<i64: 1, 32>}, {pipeline_mode = #tpu.pipeline_mode<synchronous>, transform_indices = @transform_16, window_bounds = array<i64: 32, 128>}, {pipeline_mode = #tpu.pipeline_mode<synchronous>, transform_indices = @transform_17, window_bounds = array<i64: 1, 128>}, {transform_indices = @transform_18, window_bounds = array<i64: 2, 1, 128>}]} {
    %c0 = arith.constant 0 : index
    %c0_0 = arith.constant 0 : index
    %c0_1 = arith.constant 0 : index
    %0 = vector.load %arg1[%c0, %c0_0, %c0_1] : memref<2x16x4xf32, #tpu.memory_space<vmem>>, vector<2x16x4xf32>
    %1 = vector.shape_cast %0 : vector<2x16x4xf32> to vector<32x4xf32>
    %2 = vector.shape_cast %1 : vector<32x4xf32> to vector<2x16x4xf32>
    %3 = vector.extract_strided_slice %2 {offsets = [0, 15, 0], sizes = [2, 1, 4], strides = [1, 1, 1]} : vector<2x16x4xf32> to vector<2x1x4xf32>
    %4 = vector.extract_strided_slice %2 {offsets = [0, 0, 0], sizes = [2, 15, 4], strides = [1, 1, 1]} : vector<2x16x4xf32> to vector<2x15x4xf32>
    %5 = tpu.concatenate %3, %4 in 1 : vector<2x1x4xf32>, vector<2x15x4xf32> -> vector<2x16x4xf32>
    %6 = arith.truncf %5 : vector<2x16x4xf32> to vector<2x16x4xbf16>
    %7 = vector.shape_cast %6 : vector<2x16x4xbf16> to vector<32x4xbf16>
    %c0_2 = arith.constant 0 : index
    %c0_3 = arith.constant 0 : index
    %c0_4 = arith.constant 0 : index
    %8 = vector.load %arg2[%c0_2, %c0_3, %c0_4] : memref<3x4x8xbf16, #tpu.memory_space<vmem>>, vector<1x4x8xbf16>
    %9 = vector.shape_cast %8 : vector<1x4x8xbf16> to vector<4x8xbf16>
    %cst = arith.constant dense<0.000000e+00> : vector<32x8xf32>
    %10 = tpu.matmul %7, %9, %cst {dimension_numbers = #tpu.dot_dimension_numbers<[1], [0], [0], [1], [0, 0, 1, 1], [], []>} : vector<32x4xbf16>, vector<4x8xbf16>, vector<32x8xf32> -> vector<32x8xf32>
    %11 = arith.truncf %2 : vector<2x16x4xf32> to vector<2x16x4xbf16>
    %12 = vector.shape_cast %11 : vector<2x16x4xbf16> to vector<32x4xbf16>
    %c1 = arith.constant 1 : index
    %c0_5 = arith.constant 0 : index
    %c0_6 = arith.constant 0 : index
    %13 = vector.load %arg2[%c1, %c0_5, %c0_6] : memref<3x4x8xbf16, #tpu.memory_space<vmem>>, vector<1x4x8xbf16>
    %14 = vector.shape_cast %13 : vector<1x4x8xbf16> to vector<4x8xbf16>
    %cst_7 = arith.constant dense<0.000000e+00> : vector<32x8xf32>
    %15 = tpu.matmul %12, %14, %cst_7 {dimension_numbers = #tpu.dot_dimension_numbers<[1], [0], [0], [1], [0, 0, 1, 1], [], []>} : vector<32x4xbf16>, vector<4x8xbf16>, vector<32x8xf32> -> vector<32x8xf32>
    %16 = arith.addf %10, %15 : vector<32x8xf32>
    %17 = vector.extract_strided_slice %2 {offsets = [0, 1, 0], sizes = [2, 15, 4], strides = [1, 1, 1]} : vector<2x16x4xf32> to vector<2x15x4xf32>
    %18 = vector.extract_strided_slice %2 {offsets = [0, 0, 0], sizes = [2, 1, 4], strides = [1, 1, 1]} : vector<2x16x4xf32> to vector<2x1x4xf32>
    %19 = tpu.concatenate %17, %18 in 1 : vector<2x15x4xf32>, vector<2x1x4xf32> -> vector<2x16x4xf32>
    %20 = arith.truncf %19 : vector<2x16x4xf32> to vector<2x16x4xbf16>
    %21 = vector.shape_cast %20 : vector<2x16x4xbf16> to vector<32x4xbf16>
    %c2 = arith.constant 2 : index
    %c0_8 = arith.constant 0 : index
    %c0_9 = arith.constant 0 : index
    %22 = vector.load %arg2[%c2, %c0_8, %c0_9] : memref<3x4x8xbf16, #tpu.memory_space<vmem>>, vector<1x4x8xbf16>
    %23 = vector.shape_cast %22 : vector<1x4x8xbf16> to vector<4x8xbf16>
    %cst_10 = arith.constant dense<0.000000e+00> : vector<32x8xf32>
    %24 = tpu.matmul %21, %23, %cst_10 {dimension_numbers = #tpu.dot_dimension_numbers<[1], [0], [0], [1], [0, 0, 1, 1], [], []>} : vector<32x4xbf16>, vector<4x8xbf16>, vector<32x8xf32> -> vector<32x8xf32>
    %25 = arith.addf %16, %24 : vector<32x8xf32>
    %c0_11 = arith.constant 0 : index
    %c0_12 = arith.constant 0 : index
    %26 = vector.load %arg3[%c0_11, %c0_12] : memref<1x8xf32, #tpu.memory_space<vmem>>, vector<1x8xf32>
    %27 = vector.broadcast %26 : vector<1x8xf32> to vector<32x8xf32>
    %28 = arith.mulf %25, %27 : vector<32x8xf32>
    %c0_13 = arith.constant 0 : index
    %c0_14 = arith.constant 0 : index
    %29 = vector.load %arg4[%c0_13, %c0_14] : memref<1x8xf32, #tpu.memory_space<vmem>>, vector<1x8xf32>
    %30 = vector.broadcast %29 : vector<1x8xf32> to vector<32x8xf32>
    %31 = arith.addf %28, %30 : vector<32x8xf32>
    %cst_15 = arith.constant 0.000000e+00 : f32
    %32 = vector.broadcast %cst_15 : f32 to vector<32x8xf32>
    %33 = arith.maximumf %31, %32 : vector<32x8xf32>
    %34 = vector.shape_cast %33 : vector<32x8xf32> to vector<2x16x8xf32>
    %35 = vector.extract_strided_slice %34 {offsets = [0, 14, 0], sizes = [2, 2, 8], strides = [1, 1, 1]} : vector<2x16x8xf32> to vector<2x2x8xf32>
    %36 = vector.extract_strided_slice %34 {offsets = [0, 0, 0], sizes = [2, 14, 8], strides = [1, 1, 1]} : vector<2x16x8xf32> to vector<2x14x8xf32>
    %37 = tpu.concatenate %35, %36 in 1 : vector<2x2x8xf32>, vector<2x14x8xf32> -> vector<2x16x8xf32>
    %38 = arith.truncf %37 : vector<2x16x8xf32> to vector<2x16x8xbf16>
    %39 = vector.shape_cast %38 : vector<2x16x8xbf16> to vector<32x8xbf16>
    %c0_16 = arith.constant 0 : index
    %c0_17 = arith.constant 0 : index
    %c0_18 = arith.constant 0 : index
    %40 = vector.load %arg5[%c0_16, %c0_17, %c0_18] : memref<3x8x8xbf16, #tpu.memory_space<vmem>>, vector<1x8x8xbf16>
    %41 = vector.shape_cast %40 : vector<1x8x8xbf16> to vector<8x8xbf16>
    %cst_19 = arith.constant dense<0.000000e+00> : vector<32x8xf32>
    %42 = tpu.matmul %39, %41, %cst_19 {dimension_numbers = #tpu.dot_dimension_numbers<[1], [0], [0], [1], [0, 0, 1, 1], [], []>} : vector<32x8xbf16>, vector<8x8xbf16>, vector<32x8xf32> -> vector<32x8xf32>
    %43 = arith.truncf %34 : vector<2x16x8xf32> to vector<2x16x8xbf16>
    %44 = vector.shape_cast %43 : vector<2x16x8xbf16> to vector<32x8xbf16>
    %c1_20 = arith.constant 1 : index
    %c0_21 = arith.constant 0 : index
    %c0_22 = arith.constant 0 : index
    %45 = vector.load %arg5[%c1_20, %c0_21, %c0_22] : memref<3x8x8xbf16, #tpu.memory_space<vmem>>, vector<1x8x8xbf16>
    %46 = vector.shape_cast %45 : vector<1x8x8xbf16> to vector<8x8xbf16>
    %cst_23 = arith.constant dense<0.000000e+00> : vector<32x8xf32>
    %47 = tpu.matmul %44, %46, %cst_23 {dimension_numbers = #tpu.dot_dimension_numbers<[1], [0], [0], [1], [0, 0, 1, 1], [], []>} : vector<32x8xbf16>, vector<8x8xbf16>, vector<32x8xf32> -> vector<32x8xf32>
    %48 = arith.addf %42, %47 : vector<32x8xf32>
    %49 = vector.extract_strided_slice %34 {offsets = [0, 2, 0], sizes = [2, 14, 8], strides = [1, 1, 1]} : vector<2x16x8xf32> to vector<2x14x8xf32>
    %50 = vector.extract_strided_slice %34 {offsets = [0, 0, 0], sizes = [2, 2, 8], strides = [1, 1, 1]} : vector<2x16x8xf32> to vector<2x2x8xf32>
    %51 = tpu.concatenate %49, %50 in 1 : vector<2x14x8xf32>, vector<2x2x8xf32> -> vector<2x16x8xf32>
    %52 = arith.truncf %51 : vector<2x16x8xf32> to vector<2x16x8xbf16>
    %53 = vector.shape_cast %52 : vector<2x16x8xbf16> to vector<32x8xbf16>
    %c2_24 = arith.constant 2 : index
    %c0_25 = arith.constant 0 : index
    %c0_26 = arith.constant 0 : index
    %54 = vector.load %arg5[%c2_24, %c0_25, %c0_26] : memref<3x8x8xbf16, #tpu.memory_space<vmem>>, vector<1x8x8xbf16>
    %55 = vector.shape_cast %54 : vector<1x8x8xbf16> to vector<8x8xbf16>
    %cst_27 = arith.constant dense<0.000000e+00> : vector<32x8xf32>
    %56 = tpu.matmul %53, %55, %cst_27 {dimension_numbers = #tpu.dot_dimension_numbers<[1], [0], [0], [1], [0, 0, 1, 1], [], []>} : vector<32x8xbf16>, vector<8x8xbf16>, vector<32x8xf32> -> vector<32x8xf32>
    %57 = arith.addf %48, %56 : vector<32x8xf32>
    %c0_28 = arith.constant 0 : index
    %c0_29 = arith.constant 0 : index
    %58 = vector.load %arg6[%c0_28, %c0_29] : memref<1x8xf32, #tpu.memory_space<vmem>>, vector<1x8xf32>
    %59 = vector.broadcast %58 : vector<1x8xf32> to vector<32x8xf32>
    %60 = arith.mulf %57, %59 : vector<32x8xf32>
    %c0_30 = arith.constant 0 : index
    %c0_31 = arith.constant 0 : index
    %61 = vector.load %arg7[%c0_30, %c0_31] : memref<1x8xf32, #tpu.memory_space<vmem>>, vector<1x8xf32>
    %62 = vector.broadcast %61 : vector<1x8xf32> to vector<32x8xf32>
    %63 = arith.addf %60, %62 : vector<32x8xf32>
    %cst_32 = arith.constant 0.000000e+00 : f32
    %64 = vector.broadcast %cst_32 : f32 to vector<32x8xf32>
    %65 = arith.maximumf %63, %64 : vector<32x8xf32>
    %c0_33 = arith.constant 0 : index
    %c0_34 = arith.constant 0 : index
    %66 = vector.load %arg20[%c0_33, %c0_34] : memref<32x16xf32, #tpu.memory_space<vmem>>, vector<32x8xf32>
    tpu.vector_store %arg20[%c0_33, %c0_34], %65 {strides = array<i32>} : memref<32x16xf32, #tpu.memory_space<vmem>>, vector<32x8xf32>,
    %c0_35 = arith.constant 0 : index
    %c0_36 = arith.constant 0 : index
    %67 = tpu.strided_load %arg20[%c0_35, %c0_36] {strides = array<i32: 2, 1>} : memref<32x16xf32, #tpu.memory_space<vmem>>, vector<16x8xf32>
    %c1_37 = arith.constant 1 : index
    %c0_38 = arith.constant 0 : index
    %68 = tpu.strided_load %arg20[%c1_37, %c0_38] {strides = array<i32: 2, 1>} : memref<32x16xf32, #tpu.memory_space<vmem>>, vector<16x8xf32>
    %69 = arith.maximumf %67, %68 : vector<16x8xf32>
    %70 = vector.shape_cast %69 : vector<16x8xf32> to vector<2x8x8xf32>
    %71 = vector.extract_strided_slice %70 {offsets = [0, 7, 0], sizes = [2, 1, 8], strides = [1, 1, 1]} : vector<2x8x8xf32> to vector<2x1x8xf32>
    %72 = vector.extract_strided_slice %70 {offsets = [0, 0, 0], sizes = [2, 7, 8], strides = [1, 1, 1]} : vector<2x8x8xf32> to vector<2x7x8xf32>
    %73 = tpu.concatenate %71, %72 in 1 : vector<2x1x8xf32>, vector<2x7x8xf32> -> vector<2x8x8xf32>
    %74 = arith.truncf %73 : vector<2x8x8xf32> to vector<2x8x8xbf16>
    %75 = vector.shape_cast %74 : vector<2x8x8xbf16> to vector<16x8xbf16>
    %c0_39 = arith.constant 0 : index
    %c0_40 = arith.constant 0 : index
    %c0_41 = arith.constant 0 : index
    %76 = vector.load %arg8[%c0_39, %c0_40, %c0_41] : memref<3x8x16xbf16, #tpu.memory_space<vmem>>, vector<1x8x16xbf16>
    %77 = vector.shape_cast %76 : vector<1x8x16xbf16> to vector<8x16xbf16>
    %cst_42 = arith.constant dense<0.000000e+00> : vector<16x16xf32>
    %78 = tpu.matmul %75, %77, %cst_42 {dimension_numbers = #tpu.dot_dimension_numbers<[1], [0], [0], [1], [0, 0, 1, 1], [], []>} : vector<16x8xbf16>, vector<8x16xbf16>, vector<16x16xf32> -> vector<16x16xf32>
    %79 = arith.truncf %70 : vector<2x8x8xf32> to vector<2x8x8xbf16>
    %80 = vector.shape_cast %79 : vector<2x8x8xbf16> to vector<16x8xbf16>
    %c1_43 = arith.constant 1 : index
    %c0_44 = arith.constant 0 : index
    %c0_45 = arith.constant 0 : index
    %81 = vector.load %arg8[%c1_43, %c0_44, %c0_45] : memref<3x8x16xbf16, #tpu.memory_space<vmem>>, vector<1x8x16xbf16>
    %82 = vector.shape_cast %81 : vector<1x8x16xbf16> to vector<8x16xbf16>
    %cst_46 = arith.constant dense<0.000000e+00> : vector<16x16xf32>
    %83 = tpu.matmul %80, %82, %cst_46 {dimension_numbers = #tpu.dot_dimension_numbers<[1], [0], [0], [1], [0, 0, 1, 1], [], []>} : vector<16x8xbf16>, vector<8x16xbf16>, vector<16x16xf32> -> vector<16x16xf32>
    %84 = arith.addf %78, %83 : vector<16x16xf32>
    %85 = vector.extract_strided_slice %70 {offsets = [0, 1, 0], sizes = [2, 7, 8], strides = [1, 1, 1]} : vector<2x8x8xf32> to vector<2x7x8xf32>
    %86 = vector.extract_strided_slice %70 {offsets = [0, 0, 0], sizes = [2, 1, 8], strides = [1, 1, 1]} : vector<2x8x8xf32> to vector<2x1x8xf32>
    %87 = tpu.concatenate %85, %86 in 1 : vector<2x7x8xf32>, vector<2x1x8xf32> -> vector<2x8x8xf32>
    %88 = arith.truncf %87 : vector<2x8x8xf32> to vector<2x8x8xbf16>
    %89 = vector.shape_cast %88 : vector<2x8x8xbf16> to vector<16x8xbf16>
    %c2_47 = arith.constant 2 : index
    %c0_48 = arith.constant 0 : index
    %c0_49 = arith.constant 0 : index
    %90 = vector.load %arg8[%c2_47, %c0_48, %c0_49] : memref<3x8x16xbf16, #tpu.memory_space<vmem>>, vector<1x8x16xbf16>
    %91 = vector.shape_cast %90 : vector<1x8x16xbf16> to vector<8x16xbf16>
    %cst_50 = arith.constant dense<0.000000e+00> : vector<16x16xf32>
    %92 = tpu.matmul %89, %91, %cst_50 {dimension_numbers = #tpu.dot_dimension_numbers<[1], [0], [0], [1], [0, 0, 1, 1], [], []>} : vector<16x8xbf16>, vector<8x16xbf16>, vector<16x16xf32> -> vector<16x16xf32>
    %93 = arith.addf %84, %92 : vector<16x16xf32>
    %c0_51 = arith.constant 0 : index
    %c0_52 = arith.constant 0 : index
    %94 = vector.load %arg9[%c0_51, %c0_52] : memref<1x16xf32, #tpu.memory_space<vmem>>, vector<1x16xf32>
    %95 = vector.broadcast %94 : vector<1x16xf32> to vector<16x16xf32>
    %96 = arith.mulf %93, %95 : vector<16x16xf32>
    %c0_53 = arith.constant 0 : index
    %c0_54 = arith.constant 0 : index
    %97 = vector.load %arg10[%c0_53, %c0_54] : memref<1x16xf32, #tpu.memory_space<vmem>>, vector<1x16xf32>
    %98 = vector.broadcast %97 : vector<1x16xf32> to vector<16x16xf32>
    %99 = arith.addf %96, %98 : vector<16x16xf32>
    %cst_55 = arith.constant 0.000000e+00 : f32
    %100 = vector.broadcast %cst_55 : f32 to vector<16x16xf32>
    %101 = arith.maximumf %99, %100 : vector<16x16xf32>
    %c0_56 = arith.constant 0 : index
    %c0_57 = arith.constant 0 : index
    %102 = vector.load %arg20[%c0_56, %c0_57] : memref<32x16xf32, #tpu.memory_space<vmem>>, vector<16x16xf32>
    tpu.vector_store %arg20[%c0_56, %c0_57], %101 {strides = array<i32>} : memref<32x16xf32, #tpu.memory_space<vmem>>, vector<16x16xf32>,
    %c0_58 = arith.constant 0 : index
    %c0_59 = arith.constant 0 : index
    %103 = tpu.strided_load %arg20[%c0_58, %c0_59] {strides = array<i32: 2, 1>} : memref<32x16xf32, #tpu.memory_space<vmem>>, vector<8x16xf32>
    %c1_60 = arith.constant 1 : index
    %c0_61 = arith.constant 0 : index
    %104 = tpu.strided_load %arg20[%c1_60, %c0_61] {strides = array<i32: 2, 1>} : memref<32x16xf32, #tpu.memory_space<vmem>>, vector<8x16xf32>
    %105 = arith.maximumf %103, %104 : vector<8x16xf32>
    %c0_62 = arith.constant 0 : index
    %c0_63 = arith.constant 0 : index
    %106 = vector.load %arg20[%c0_62, %c0_63] : memref<32x16xf32, #tpu.memory_space<vmem>>, vector<8x16xf32>
    tpu.vector_store %arg20[%c0_62, %c0_63], %105 {strides = array<i32>} : memref<32x16xf32, #tpu.memory_space<vmem>>, vector<8x16xf32>,
    %c0_64 = arith.constant 0 : index
    %c0_65 = arith.constant 0 : index
    %107 = tpu.strided_load %arg20[%c0_64, %c0_65] {strides = array<i32: 4, 1>} : memref<32x16xf32, #tpu.memory_space<vmem>>, vector<2x16xf32>
    %108 = arith.truncf %107 : vector<2x16xf32> to vector<2x16xbf16>
    %c0_66 = arith.constant 0 : index
    %c0_67 = arith.constant 0 : index
    %c0_68 = arith.constant 0 : index
    %109 = vector.load %arg11[%c0_66, %c0_67, %c0_68] : memref<4x16x32xbf16, #tpu.memory_space<vmem>>, vector<1x16x32xbf16>
    %110 = vector.shape_cast %109 : vector<1x16x32xbf16> to vector<16x32xbf16>
    %cst_69 = arith.constant dense<0.000000e+00> : vector<2x32xf32>
    %111 = tpu.matmul %108, %110, %cst_69 {dimension_numbers = #tpu.dot_dimension_numbers<[1], [0], [0], [1], [0, 0, 1, 1], [], []>} : vector<2x16xbf16>, vector<16x32xbf16>, vector<2x32xf32> -> vector<2x32xf32>
    %c1_70 = arith.constant 1 : index
    %c0_71 = arith.constant 0 : index
    %112 = tpu.strided_load %arg20[%c1_70, %c0_71] {strides = array<i32: 4, 1>} : memref<32x16xf32, #tpu.memory_space<vmem>>, vector<2x16xf32>
    %113 = arith.truncf %112 : vector<2x16xf32> to vector<2x16xbf16>
    %c1_72 = arith.constant 1 : index
    %c0_73 = arith.constant 0 : index
    %c0_74 = arith.constant 0 : index
    %114 = vector.load %arg11[%c1_72, %c0_73, %c0_74] : memref<4x16x32xbf16, #tpu.memory_space<vmem>>, vector<1x16x32xbf16>
    %115 = vector.shape_cast %114 : vector<1x16x32xbf16> to vector<16x32xbf16>
    %cst_75 = arith.constant dense<0.000000e+00> : vector<2x32xf32>
    %116 = tpu.matmul %113, %115, %cst_75 {dimension_numbers = #tpu.dot_dimension_numbers<[1], [0], [0], [1], [0, 0, 1, 1], [], []>} : vector<2x16xbf16>, vector<16x32xbf16>, vector<2x32xf32> -> vector<2x32xf32>
    %117 = arith.addf %111, %116 : vector<2x32xf32>
    %c2_76 = arith.constant 2 : index
    %c0_77 = arith.constant 0 : index
    %118 = tpu.strided_load %arg20[%c2_76, %c0_77] {strides = array<i32: 4, 1>} : memref<32x16xf32, #tpu.memory_space<vmem>>, vector<2x16xf32>
    %119 = arith.truncf %118 : vector<2x16xf32> to vector<2x16xbf16>
    %c2_78 = arith.constant 2 : index
    %c0_79 = arith.constant 0 : index
    %c0_80 = arith.constant 0 : index
    %120 = vector.load %arg11[%c2_78, %c0_79, %c0_80] : memref<4x16x32xbf16, #tpu.memory_space<vmem>>, vector<1x16x32xbf16>
    %121 = vector.shape_cast %120 : vector<1x16x32xbf16> to vector<16x32xbf16>
    %cst_81 = arith.constant dense<0.000000e+00> : vector<2x32xf32>
    %122 = tpu.matmul %119, %121, %cst_81 {dimension_numbers = #tpu.dot_dimension_numbers<[1], [0], [0], [1], [0, 0, 1, 1], [], []>} : vector<2x16xbf16>, vector<16x32xbf16>, vector<2x32xf32> -> vector<2x32xf32>
    %123 = arith.addf %117, %122 : vector<2x32xf32>
    %c3 = arith.constant 3 : index
    %c0_82 = arith.constant 0 : index
    %124 = tpu.strided_load %arg20[%c3, %c0_82] {strides = array<i32: 4, 1>} : memref<32x16xf32, #tpu.memory_space<vmem>>, vector<2x16xf32>
    %125 = arith.truncf %124 : vector<2x16xf32> to vector<2x16xbf16>
    %c3_83 = arith.constant 3 : index
    %c0_84 = arith.constant 0 : index
    %c0_85 = arith.constant 0 : index
    %126 = vector.load %arg11[%c3_83, %c0_84, %c0_85] : memref<4x16x32xbf16, #tpu.memory_space<vmem>>, vector<1x16x32xbf16>
    %127 = vector.shape_cast %126 : vector<1x16x32xbf16> to vector<16x32xbf16>
    %cst_86 = arith.constant dense<0.000000e+00> : vector<2x32xf32>
    %128 = tpu.matmul %125, %127, %cst_86 {dimension_numbers = #tpu.dot_dimension_numbers<[1], [0], [0], [1], [0, 0, 1, 1], [], []>} : vector<2x16xbf16>, vector<16x32xbf16>, vector<2x32xf32> -> vector<2x32xf32>
    %129 = arith.addf %123, %128 : vector<2x32xf32>
    %c0_87 = arith.constant 0 : index
    %c0_88 = arith.constant 0 : index
    %130 = vector.load %arg12[%c0_87, %c0_88] : memref<1x32xf32, #tpu.memory_space<vmem>>, vector<1x32xf32>
    %131 = vector.broadcast %130 : vector<1x32xf32> to vector<2x32xf32>
    %132 = arith.mulf %129, %131 : vector<2x32xf32>
    %c0_89 = arith.constant 0 : index
    %c0_90 = arith.constant 0 : index
    %133 = vector.load %arg13[%c0_89, %c0_90] : memref<1x32xf32, #tpu.memory_space<vmem>>, vector<1x32xf32>
    %134 = vector.broadcast %133 : vector<1x32xf32> to vector<2x32xf32>
    %135 = arith.addf %132, %134 : vector<2x32xf32>
    %cst_91 = arith.constant 0.00999999977 : f32
    %136 = vector.broadcast %cst_91 : f32 to vector<2x32xf32>
    %137 = arith.mulf %136, %135 : vector<2x32xf32>
    %138 = arith.maximumf %135, %137 : vector<2x32xf32>
    %139 = arith.truncf %138 : vector<2x32xf32> to vector<2x32xbf16>
    %c0_92 = arith.constant 0 : index
    %c0_93 = arith.constant 0 : index
    %140 = vector.load %arg14[%c0_92, %c0_93] : memref<32x32xbf16, #tpu.memory_space<vmem>>, vector<32x32xbf16>
    %cst_94 = arith.constant dense<0.000000e+00> : vector<2x32xf32>
    %141 = tpu.matmul %139, %140, %cst_94 {dimension_numbers = #tpu.dot_dimension_numbers<[1], [0], [0], [1], [0, 0, 1, 1], [], []>} : vector<2x32xbf16>, vector<32x32xbf16>, vector<2x32xf32> -> vector<2x32xf32>
    %c0_95 = arith.constant 0 : index
    %c0_96 = arith.constant 0 : index
    %142 = vector.load %arg15[%c0_95, %c0_96] : memref<1x32xf32, #tpu.memory_space<vmem>>, vector<1x32xf32>
    %143 = vector.broadcast %142 : vector<1x32xf32> to vector<2x32xf32>
    %144 = arith.mulf %141, %143 : vector<2x32xf32>
    %c0_97 = arith.constant 0 : index
    %c0_98 = arith.constant 0 : index
    %145 = vector.load %arg16[%c0_97, %c0_98] : memref<1x32xf32, #tpu.memory_space<vmem>>, vector<1x32xf32>
    %146 = vector.broadcast %145 : vector<1x32xf32> to vector<2x32xf32>
    %147 = arith.addf %144, %146 : vector<2x32xf32>
    %cst_99 = arith.constant 0.00999999977 : f32
    %148 = vector.broadcast %cst_99 : f32 to vector<2x32xf32>
    %149 = arith.mulf %148, %147 : vector<2x32xf32>
    %150 = arith.maximumf %147, %149 : vector<2x32xf32>
    %151 = arith.truncf %150 : vector<2x32xf32> to vector<2x32xbf16>
    %c0_100 = arith.constant 0 : index
    %c0_101 = arith.constant 0 : index
    %152 = vector.load %arg17[%c0_100, %c0_101] : memref<32x128xbf16, #tpu.memory_space<vmem>>, vector<32x128xbf16>
    %cst_102 = arith.constant dense<0.000000e+00> : vector<2x128xf32>
    %153 = tpu.matmul %151, %152, %cst_102 {dimension_numbers = #tpu.dot_dimension_numbers<[1], [0], [0], [1], [0, 0, 1, 1], [], []>} : vector<2x32xbf16>, vector<32x128xbf16>, vector<2x128xf32> -> vector<2x128xf32>
    %c0_103 = arith.constant 0 : index
    %c0_104 = arith.constant 0 : index
    %154 = vector.load %arg18[%c0_103, %c0_104] : memref<1x128xf32, #tpu.memory_space<vmem>>, vector<1x128xf32>
    %155 = vector.broadcast %154 : vector<1x128xf32> to vector<2x128xf32>
    %156 = arith.addf %153, %155 : vector<2x128xf32>
    %c0_105 = arith.constant 0 : index
    %c0_106 = arith.constant 0 : index
    %c0_107 = arith.constant 0 : index
    %157 = vector.load %arg19[%c0_105, %c0_106, %c0_107] : memref<2x1x128xf32, #tpu.memory_space<vmem>>, vector<2x1x128xf32>
    %158 = vector.shape_cast %157 : vector<2x1x128xf32> to vector<2x128xf32>
    %159 = vector.shape_cast %156 : vector<2x128xf32> to vector<2x1x128xf32>
    tpu.vector_store %arg19[%c0_105, %c0_106, %c0_107], %159 {strides = array<i32>} : memref<2x1x128xf32, #tpu.memory_space<vmem>>, vector<2x1x128xf32>,
    return
  }
  func.func @transform_0(%arg0: i32) -> (i32, i32, i32) {
    %c0_i32 = arith.constant 0 : i32
    %c0_i32_0 = arith.constant 0 : i32
    %c0_i32_1 = arith.constant 0 : i32
    return %arg0, %c0_i32, %c0_i32_0 : i32, i32, i32
  }
  func.func @transform_1(%arg0: i32) -> (i32, i32, i32) {
    %c0_i32 = arith.constant 0 : i32
    %c0_i32_0 = arith.constant 0 : i32
    %c0_i32_1 = arith.constant 0 : i32
    %c0_i32_2 = arith.constant 0 : i32
    return %c0_i32, %c0_i32_0, %c0_i32_1 : i32, i32, i32
  }
  func.func @transform_2(%arg0: i32) -> (i32, i32) {
    %c0_i32 = arith.constant 0 : i32
    %c0_i32_0 = arith.constant 0 : i32
    %c0_i32_1 = arith.constant 0 : i32
    return %c0_i32, %c0_i32_0 : i32, i32
  }
  func.func @transform_3(%arg0: i32) -> (i32, i32) {
    %c0_i32 = arith.constant 0 : i32
    %c0_i32_0 = arith.constant 0 : i32
    %c0_i32_1 = arith.constant 0 : i32
    return %c0_i32, %c0_i32_0 : i32, i32
  }
  func.func @transform_4(%arg0: i32) -> (i32, i32, i32) {
    %c0_i32 = arith.constant 0 : i32
    %c0_i32_0 = arith.constant 0 : i32
    %c0_i32_1 = arith.constant 0 : i32
    %c0_i32_2 = arith.constant 0 : i32
    return %c0_i32, %c0_i32_0, %c0_i32_1 : i32, i32, i32
  }
  func.func @transform_5(%arg0: i32) -> (i32, i32) {
    %c0_i32 = arith.constant 0 : i32
    %c0_i32_0 = arith.constant 0 : i32
    %c0_i32_1 = arith.constant 0 : i32
    return %c0_i32, %c0_i32_0 : i32, i32
  }
  func.func @transform_6(%arg0: i32) -> (i32, i32) {
    %c0_i32 = arith.constant 0 : i32
    %c0_i32_0 = arith.constant 0 : i32
    %c0_i32_1 = arith.constant 0 : i32
    return %c0_i32, %c0_i32_0 : i32, i32
  }
  func.func @transform_7(%arg0: i32) -> (i32, i32, i32) {
    %c0_i32 = arith.constant 0 : i32
    %c0_i32_0 = arith.constant 0 : i32
    %c0_i32_1 = arith.constant 0 : i32
    %c0_i32_2 = arith.constant 0 : i32
    return %c0_i32, %c0_i32_0, %c0_i32_1 : i32, i32, i32
  }
  func.func @transform_8(%arg0: i32) -> (i32, i32) {
    %c0_i32 = arith.constant 0 : i32
    %c0_i32_0 = arith.constant 0 : i32
    %c0_i32_1 = arith.constant 0 : i32
    return %c0_i32, %c0_i32_0 : i32, i32
  }
  func.func @transform_9(%arg0: i32) -> (i32, i32) {
    %c0_i32 = arith.constant 0 : i32
    %c0_i32_0 = arith.constant 0 : i32
    %c0_i32_1 = arith.constant 0 : i32
    return %c0_i32, %c0_i32_0 : i32, i32
  }
  func.func @transform_10(%arg0: i32) -> (i32, i32, i32) {
    %c0_i32 = arith.constant 0 : i32
    %c0_i32_0 = arith.constant 0 : i32
    %c0_i32_1 = arith.constant 0 : i32
    %c0_i32_2 = arith.constant 0 : i32
    return %c0_i32, %c0_i32_0, %c0_i32_1 : i32, i32, i32
  }
  func.func @transform_11(%arg0: i32) -> (i32, i32) {
    %c0_i32 = arith.constant 0 : i32
    %c0_i32_0 = arith.constant 0 : i32
    %c0_i32_1 = arith.constant 0 : i32
    return %c0_i32, %c0_i32_0 : i32, i32
  }
  func.func @transform_12(%arg0: i32) -> (i32, i32) {
    %c0_i32 = arith.constant 0 : i32
    %c0_i32_0 = arith.constant 0 : i32
    %c0_i32_1 = arith.constant 0 : i32
    return %c0_i32, %c0_i32_0 : i32, i32
  }
  func.func @transform_13(%arg0: i32) -> (i32, i32) {
    %c0_i32 = arith.constant 0 : i32
    %c0_i32_0 = arith.constant 0 : i32
    %c0_i32_1 = arith.constant 0 : i32
    return %c0_i32, %c0_i32_0 : i32, i32
  }
  func.func @transform_14(%arg0: i32) -> (i32, i32) {
    %c0_i32 = arith.constant 0 : i32
    %c0_i32_0 = arith.constant 0 : i32
    %c0_i32_1 = arith.constant 0 : i32
    return %c0_i32, %c0_i32_0 : i32, i32
  }
  func.func @transform_15(%arg0: i32) -> (i32, i32) {
    %c0_i32 = arith.constant 0 : i32
    %c0_i32_0 = arith.constant 0 : i32
    %c0_i32_1 = arith.constant 0 : i32
    return %c0_i32, %c0_i32_0 : i32, i32
  }
  func.func @transform_16(%arg0: i32) -> (i32, i32) {
    %c0_i32 = arith.constant 0 : i32
    %c0_i32_0 = arith.constant 0 : i32
    %c0_i32_1 = arith.constant 0 : i32
    return %c0_i32, %c0_i32_0 : i32, i32
  }
  func.func @transform_17(%arg0: i32) -> (i32, i32) {
    %c0_i32 = arith.constant 0 : i32
    %c0_i32_0 = arith.constant 0 : i32
    %c0_i32_1 = arith.constant 0 : i32
    return %c0_i32, %c0_i32_0 : i32, i32
  }
  func.func @transform_18(%arg0: i32) -> (i32, i32, i32) {
    %c0_i32 = arith.constant 0 : i32
    %c0_i32_0 = arith.constant 0 : i32
    %c0_i32_1 = arith.constant 0 : i32
    return %arg0, %c0_i32, %c0_i32_0 : i32, i32, i32
  }
}

module attributes {stable_mosaic.version = 11 : i64} {
  func.func @kernel(%arg0: i32, %arg1: memref<2x16x4xf32, #tpu.memory_space<vmem>>, %arg2: memref<3x4x8xbf16, #tpu.memory_space<vmem>>, %arg3: memref<1x8xf32, #tpu.memory_space<vmem>>, %arg4: memref<1x8xf32, #tpu.memory_space<vmem>>, %arg5: memref<3x8x8xbf16, #tpu.memory_space<vmem>>, %arg6: memref<1x8xf32, #tpu.memory_space<vmem>>, %arg7: memref<1x8xf32, #tpu.memory_space<vmem>>, %arg8: memref<3x8x16xbf16, #tpu.memory_space<vmem>>, %arg9: memref<1x16xf32, #tpu.memory_space<vmem>>, %arg10: memref<1x16xf32, #tpu.memory_space<vmem>>, %arg11: memref<4x16x32xbf16, #tpu.memory_space<vmem>>, %arg12: memref<1x32xf32, #tpu.memory_space<vmem>>, %arg13: memref<1x32xf32, #tpu.memory_space<vmem>>, %arg14: memref<32x32xbf16, #tpu.memory_space<vmem>>, %arg15: memref<1x32xf32, #tpu.memory_space<vmem>>, %arg16: memref<1x32xf32, #tpu.memory_space<vmem>>, %arg17: memref<32x128xbf16, #tpu.memory_space<vmem>>, %arg18: memref<1x128xf32, #tpu.memory_space<vmem>>, %arg19: memref<2x1x128xf32, #tpu.memory_space<vmem>>, %arg20: memref<32x16xf32, #tpu.memory_space<vmem>>) attributes {dimension_semantics = [#tpu.dimension_semantics<parallel>], iteration_bounds = array<i64: 1>, scalar_prefetch = 0 : i64, scratch_operands = 1 : i64, tpu.core_type = #tpu.core_type<tc>, window_params = [{transform_indices = @transform_0, window_bounds = array<i64: 2, 16, 4>}, {pipeline_mode = #tpu.pipeline_mode<synchronous>, transform_indices = @transform_1, window_bounds = array<i64: 3, 4, 8>}, {pipeline_mode = #tpu.pipeline_mode<synchronous>, transform_indices = @transform_2, window_bounds = array<i64: 1, 8>}, {pipeline_mode = #tpu.pipeline_mode<synchronous>, transform_indices = @transform_3, window_bounds = array<i64: 1, 8>}, {pipeline_mode = #tpu.pipeline_mode<synchronous>, transform_indices = @transform_4, window_bounds = array<i64: 3, 8, 8>}, {pipeline_mode = #tpu.pipeline_mode<synchronous>, transform_indices = @transform_5, window_bounds = array<i64: 1, 8>}, {pipeline_mode = #tpu.pipeline_mode<synchronous>, transform_indices = @transform_6, window_bounds = array<i64: 1, 8>}, {pipeline_mode = #tpu.pipeline_mode<synchronous>, transform_indices = @transform_7, window_bounds = array<i64: 3, 8, 16>}, {pipeline_mode = #tpu.pipeline_mode<synchronous>, transform_indices = @transform_8, window_bounds = array<i64: 1, 16>}, {pipeline_mode = #tpu.pipeline_mode<synchronous>, transform_indices = @transform_9, window_bounds = array<i64: 1, 16>}, {pipeline_mode = #tpu.pipeline_mode<synchronous>, transform_indices = @transform_10, window_bounds = array<i64: 4, 16, 32>}, {pipeline_mode = #tpu.pipeline_mode<synchronous>, transform_indices = @transform_11, window_bounds = array<i64: 1, 32>}, {pipeline_mode = #tpu.pipeline_mode<synchronous>, transform_indices = @transform_12, window_bounds = array<i64: 1, 32>}, {pipeline_mode = #tpu.pipeline_mode<synchronous>, transform_indices = @transform_13, window_bounds = array<i64: 32, 32>}, {pipeline_mode = #tpu.pipeline_mode<synchronous>, transform_indices = @transform_14, window_bounds = array<i64: 1, 32>}, {pipeline_mode = #tpu.pipeline_mode<synchronous>, transform_indices = @transform_15, window_bounds = array<i64: 1, 32>}, {pipeline_mode = #tpu.pipeline_mode<synchronous>, transform_indices = @transform_16, window_bounds = array<i64: 32, 128>}, {pipeline_mode = #tpu.pipeline_mode<synchronous>, transform_indices = @transform_17, window_bounds = array<i64: 1, 128>}, {transform_indices = @transform_18, window_bounds = array<i64: 2, 1, 128>}]} {
    %c0 = arith.constant 0 : index
    %c0_0 = arith.constant 0 : index
    %c0_1 = arith.constant 0 : index
    %0 = vector.load %arg1[%c0, %c0_0, %c0_1] : memref<2x16x4xf32, #tpu.memory_space<vmem>>, vector<2x16x4xf32>
    %1 = vector.shape_cast %0 : vector<2x16x4xf32> to vector<32x4xf32>
    %2 = vector.shape_cast %1 : vector<32x4xf32> to vector<2x16x4xf32>
    %3 = vector.extract_strided_slice %2 {offsets = [0, 15, 0], sizes = [2, 1, 4], strides = [1, 1, 1]} : vector<2x16x4xf32> to vector<2x1x4xf32>
    %4 = vector.extract_strided_slice %2 {offsets = [0, 0, 0], sizes = [2, 15, 4], strides = [1, 1, 1]} : vector<2x16x4xf32> to vector<2x15x4xf32>
    %5 = tpu.concatenate %3, %4 in 1 : vector<2x1x4xf32>, vector<2x15x4xf32> -> vector<2x16x4xf32>
    %6 = arith.truncf %5 : vector<2x16x4xf32> to vector<2x16x4xbf16>
    %7 = vector.shape_cast %6 : vector<2x16x4xbf16> to vector<32x4xbf16>
    %c0_2 = arith.constant 0 : index
    %c0_3 = arith.constant 0 : index
    %c0_4 = arith.constant 0 : index
    %8 = vector.load %arg2[%c0_2, %c0_3, %c0_4] : memref<3x4x8xbf16, #tpu.memory_space<vmem>>, vector<1x4x8xbf16>
    %9 = vector.shape_cast %8 : vector<1x4x8xbf16> to vector<4x8xbf16>
    %cst = arith.constant dense<0.000000e+00> : vector<32x8xf32>
    %10 = tpu.matmul %7, %9, %cst {dimension_numbers = #tpu.dot_dimension_numbers<[1], [0], [0], [1], [0, 0, 1, 1], [], []>} : vector<32x4xbf16>, vector<4x8xbf16>, vector<32x8xf32> -> vector<32x8xf32>
    %11 = arith.truncf %2 : vector<2x16x4xf32> to vector<2x16x4xbf16>
    %12 = vector.shape_cast %11 : vector<2x16x4xbf16> to vector<32x4xbf16>
    %c1 = arith.constant 1 : index
    %c0_5 = arith.constant 0 : index
    %c0_6 = arith.constant 0 : index
    %13 = vector.load %arg2[%c1, %c0_5, %c0_6] : memref<3x4x8xbf16, #tpu.memory_space<vmem>>, vector<1x4x8xbf16>
    %14 = vector.shape_cast %13 : vector<1x4x8xbf16> to vector<4x8xbf16>
    %cst_7 = arith.constant dense<0.000000e+00> : vector<32x8xf32>
    %15 = tpu.matmul %12, %14, %cst_7 {dimension_numbers = #tpu.dot_dimension_numbers<[1], [0], [0], [1], [0, 0, 1, 1], [], []>} : vector<32x4xbf16>, vector<4x8xbf16>, vector<32x8xf32> -> vector<32x8xf32>
    %16 = arith.addf %10, %15 : vector<32x8xf32>
    %17 = vector.extract_strided_slice %2 {offsets = [0, 1, 0], sizes = [2, 15, 4], strides = [1, 1, 1]} : vector<2x16x4xf32> to vector<2x15x4xf32>
    %18 = vector.extract_strided_slice %2 {offsets = [0, 0, 0], sizes = [2, 1, 4], strides = [1, 1, 1]} : vector<2x16x4xf32> to vector<2x1x4xf32>
    %19 = tpu.concatenate %17, %18 in 1 : vector<2x15x4xf32>, vector<2x1x4xf32> -> vector<2x16x4xf32>
    %20 = arith.truncf %19 : vector<2x16x4xf32> to vector<2x16x4xbf16>
    %21 = vector.shape_cast %20 : vector<2x16x4xbf16> to vector<32x4xbf16>
    %c2 = arith.constant 2 : index
    %c0_8 = arith.constant 0 : index
    %c0_9 = arith.constant 0 : index
    %22 = vector.load %arg2[%c2, %c0_8, %c0_9] : memref<3x4x8xbf16, #tpu.memory_space<vmem>>, vector<1x4x8xbf16>
    %23 = vector.shape_cast %22 : vector<1x4x8xbf16> to vector<4x8xbf16>
    %cst_10 = arith.constant dense<0.000000e+00> : vector<32x8xf32>
    %24 = tpu.matmul %21, %23, %cst_10 {dimension_numbers = #tpu.dot_dimension_numbers<[1], [0], [0], [1], [0, 0, 1, 1], [], []>} : vector<32x4xbf16>, vector<4x8xbf16>, vector<32x8xf32> -> vector<32x8xf32>
    %25 = arith.addf %16, %24 : vector<32x8xf32>
    %c0_11 = arith.constant 0 : index
    %c0_12 = arith.constant 0 : index
    %26 = vector.load %arg3[%c0_11, %c0_12] : memref<1x8xf32, #tpu.memory_space<vmem>>, vector<1x8xf32>
    %27 = vector.broadcast %26 : vector<1x8xf32> to vector<32x8xf32>
    %28 = arith.mulf %25, %27 : vector<32x8xf32>
    %c0_13 = arith.constant 0 : index
    %c0_14 = arith.constant 0 : index
    %29 = vector.load %arg4[%c0_13, %c0_14] : memref<1x8xf32, #tpu.memory_space<vmem>>, vector<1x8xf32>
    %30 = vector.broadcast %29 : vector<1x8xf32> to vector<32x8xf32>
    %31 = arith.addf %28, %30 : vector<32x8xf32>
    %cst_15 = arith.constant 0.000000e+00 : f32
    %32 = vector.broadcast %cst_15 : f32 to vector<32x8xf32>
    %33 = arith.maximumf %31, %32 : vector<32x8xf32>
    %34 = vector.shape_cast %33 : vector<32x8xf32> to vector<2x16x8xf32>
    %35 = vector.extract_strided_slice %34 {offsets = [0, 14, 0], sizes = [2, 2, 8], strides = [1, 1, 1]} : vector<2x16x8xf32> to vector<2x2x8xf32>
    %36 = vector.extract_strided_slice %34 {offsets = [0, 0, 0], sizes = [2, 14, 8], strides = [1, 1, 1]} : vector<2x16x8xf32> to vector<2x14x8xf32>
    %37 = tpu.concatenate %35, %36 in 1 : vector<2x2x8xf32>, vector<2x14x8xf32> -> vector<2x16x8xf32>
    %38 = arith.truncf %37 : vector<2x16x8xf32> to vector<2x16x8xbf16>
    %39 = vector.shape_cast %38 : vector<2x16x8xbf16> to vector<32x8xbf16>
    %c0_16 = arith.constant 0 : index
    %c0_17 = arith.constant 0 : index
    %c0_18 = arith.constant 0 : index
    %40 = vector.load %arg5[%c0_16, %c0_17, %c0_18] : memref<3x8x8xbf16, #tpu.memory_space<vmem>>, vector<1x8x8xbf16>
    %41 = vector.shape_cast %40 : vector<1x8x8xbf16> to vector<8x8xbf16>
    %cst_19 = arith.constant dense<0.000000e+00> : vector<32x8xf32>
    %42 = tpu.matmul %39, %41, %cst_19 {dimension_numbers = #tpu.dot_dimension_numbers<[1], [0], [0], [1], [0, 0, 1, 1], [], []>} : vector<32x8xbf16>, vector<8x8xbf16>, vector<32x8xf32> -> vector<32x8xf32>
    %43 = arith.truncf %34 : vector<2x16x8xf32> to vector<2x16x8xbf16>
    %44 = vector.shape_cast %43 : vector<2x16x8xbf16> to vector<32x8xbf16>
    %c1_20 = arith.constant 1 : index
    %c0_21 = arith.constant 0 : index
    %c0_22 = arith.constant 0 : index
    %45 = vector.load %arg5[%c1_20, %c0_21, %c0_22] : memref<3x8x8xbf16, #tpu.memory_space<vmem>>, vector<1x8x8xbf16>
    %46 = vector.shape_cast %45 : vector<1x8x8xbf16> to vector<8x8xbf16>
    %cst_23 = arith.constant dense<0.000000e+00> : vector<32x8xf32>
    %47 = tpu.matmul %44, %46, %cst_23 {dimension_numbers = #tpu.dot_dimension_numbers<[1], [0], [0], [1], [0, 0, 1, 1], [], []>} : vector<32x8xbf16>, vector<8x8xbf16>, vector<32x8xf32> -> vector<32x8xf32>
    %48 = arith.addf %42, %47 : vector<32x8xf32>
    %49 = vector.extract_strided_slice %34 {offsets = [0, 2, 0], sizes = [2, 14, 8], strides = [1, 1, 1]} : vector<2x16x8xf32> to vector<2x14x8xf32>
    %50 = vector.extract_strided_slice %34 {offsets = [0, 0, 0], sizes = [2, 2, 8], strides = [1, 1, 1]} : vector<2x16x8xf32> to vector<2x2x8xf32>
    %51 = tpu.concatenate %49, %50 in 1 : vector<2x14x8xf32>, vector<2x2x8xf32> -> vector<2x16x8xf32>
    %52 = arith.truncf %51 : vector<2x16x8xf32> to vector<2x16x8xbf16>
    %53 = vector.shape_cast %52 : vector<2x16x8xbf16> to vector<32x8xbf16>
    %c2_24 = arith.constant 2 : index
    %c0_25 = arith.constant 0 : index
    %c0_26 = arith.constant 0 : index
    %54 = vector.load %arg5[%c2_24, %c0_25, %c0_26] : memref<3x8x8xbf16, #tpu.memory_space<vmem>>, vector<1x8x8xbf16>
    %55 = vector.shape_cast %54 : vector<1x8x8xbf16> to vector<8x8xbf16>
    %cst_27 = arith.constant dense<0.000000e+00> : vector<32x8xf32>
    %56 = tpu.matmul %53, %55, %cst_27 {dimension_numbers = #tpu.dot_dimension_numbers<[1], [0], [0], [1], [0, 0, 1, 1], [], []>} : vector<32x8xbf16>, vector<8x8xbf16>, vector<32x8xf32> -> vector<32x8xf32>
    %57 = arith.addf %48, %56 : vector<32x8xf32>
    %c0_28 = arith.constant 0 : index
    %c0_29 = arith.constant 0 : index
    %58 = vector.load %arg6[%c0_28, %c0_29] : memref<1x8xf32, #tpu.memory_space<vmem>>, vector<1x8xf32>
    %59 = vector.broadcast %58 : vector<1x8xf32> to vector<32x8xf32>
    %60 = arith.mulf %57, %59 : vector<32x8xf32>
    %c0_30 = arith.constant 0 : index
    %c0_31 = arith.constant 0 : index
    %61 = vector.load %arg7[%c0_30, %c0_31] : memref<1x8xf32, #tpu.memory_space<vmem>>, vector<1x8xf32>
    %62 = vector.broadcast %61 : vector<1x8xf32> to vector<32x8xf32>
    %63 = arith.addf %60, %62 : vector<32x8xf32>
    %cst_32 = arith.constant 0.000000e+00 : f32
    %64 = vector.broadcast %cst_32 : f32 to vector<32x8xf32>
    %65 = arith.maximumf %63, %64 : vector<32x8xf32>
    %c0_33 = arith.constant 0 : index
    %c0_34 = arith.constant 0 : index
    %66 = vector.load %arg20[%c0_33, %c0_34] : memref<32x16xf32, #tpu.memory_space<vmem>>, vector<32x8xf32>
    tpu.vector_store %arg20[%c0_33, %c0_34], %65 {strides = array<i32>} : memref<32x16xf32, #tpu.memory_space<vmem>>, vector<32x8xf32>,
    %c0_35 = arith.constant 0 : index
    %c0_36 = arith.constant 0 : index
    %67 = tpu.strided_load %arg20[%c0_35, %c0_36] {strides = array<i32: 2, 1>} : memref<32x16xf32, #tpu.memory_space<vmem>>, vector<16x8xf32>
    %c1_37 = arith.constant 1 : index
    %c0_38 = arith.constant 0 : index
    %68 = tpu.strided_load %arg20[%c1_37, %c0_38] {strides = array<i32: 2, 1>} : memref<32x16xf32, #tpu.memory_space<vmem>>, vector<16x8xf32>
    %69 = arith.maximumf %67, %68 : vector<16x8xf32>
    %70 = vector.shape_cast %69 : vector<16x8xf32> to vector<2x8x8xf32>
    %71 = vector.extract_strided_slice %70 {offsets = [0, 7, 0], sizes = [2, 1, 8], strides = [1, 1, 1]} : vector<2x8x8xf32> to vector<2x1x8xf32>
    %72 = vector.extract_strided_slice %70 {offsets = [0, 0, 0], sizes = [2, 7, 8], strides = [1, 1, 1]} : vector<2x8x8xf32> to vector<2x7x8xf32>
    %73 = tpu.concatenate %71, %72 in 1 : vector<2x1x8xf32>, vector<2x7x8xf32> -> vector<2x8x8xf32>
    %74 = arith.truncf %73 : vector<2x8x8xf32> to vector<2x8x8xbf16>
    %75 = vector.shape_cast %74 : vector<2x8x8xbf16> to vector<16x8xbf16>
    %c0_39 = arith.constant 0 : index
    %c0_40 = arith.constant 0 : index
    %c0_41 = arith.constant 0 : index
    %76 = vector.load %arg8[%c0_39, %c0_40, %c0_41] : memref<3x8x16xbf16, #tpu.memory_space<vmem>>, vector<1x8x16xbf16>
    %77 = vector.shape_cast %76 : vector<1x8x16xbf16> to vector<8x16xbf16>
    %cst_42 = arith.constant dense<0.000000e+00> : vector<16x16xf32>
    %78 = tpu.matmul %75, %77, %cst_42 {dimension_numbers = #tpu.dot_dimension_numbers<[1], [0], [0], [1], [0, 0, 1, 1], [], []>} : vector<16x8xbf16>, vector<8x16xbf16>, vector<16x16xf32> -> vector<16x16xf32>
    %79 = arith.truncf %70 : vector<2x8x8xf32> to vector<2x8x8xbf16>
    %80 = vector.shape_cast %79 : vector<2x8x8xbf16> to vector<16x8xbf16>
    %c1_43 = arith.constant 1 : index
    %c0_44 = arith.constant 0 : index
    %c0_45 = arith.constant 0 : index
    %81 = vector.load %arg8[%c1_43, %c0_44, %c0_45] : memref<3x8x16xbf16, #tpu.memory_space<vmem>>, vector<1x8x16xbf16>
    %82 = vector.shape_cast %81 : vector<1x8x16xbf16> to vector<8x16xbf16>
    %cst_46 = arith.constant dense<0.000000e+00> : vector<16x16xf32>
    %83 = tpu.matmul %80, %82, %cst_46 {dimension_numbers = #tpu.dot_dimension_numbers<[1], [0], [0], [1], [0, 0, 1, 1], [], []>} : vector<16x8xbf16>, vector<8x16xbf16>, vector<16x16xf32> -> vector<16x16xf32>
    %84 = arith.addf %78, %83 : vector<16x16xf32>
    %85 = vector.extract_strided_slice %70 {offsets = [0, 1, 0], sizes = [2, 7, 8], strides = [1, 1, 1]} : vector<2x8x8xf32> to vector<2x7x8xf32>
    %86 = vector.extract_strided_slice %70 {offsets = [0, 0, 0], sizes = [2, 1, 8], strides = [1, 1, 1]} : vector<2x8x8xf32> to vector<2x1x8xf32>
    %87 = tpu.concatenate %85, %86 in 1 : vector<2x7x8xf32>, vector<2x1x8xf32> -> vector<2x8x8xf32>
    %88 = arith.truncf %87 : vector<2x8x8xf32> to vector<2x8x8xbf16>
    %89 = vector.shape_cast %88 : vector<2x8x8xbf16> to vector<16x8xbf16>
    %c2_47 = arith.constant 2 : index
    %c0_48 = arith.constant 0 : index
    %c0_49 = arith.constant 0 : index
    %90 = vector.load %arg8[%c2_47, %c0_48, %c0_49] : memref<3x8x16xbf16, #tpu.memory_space<vmem>>, vector<1x8x16xbf16>
    %91 = vector.shape_cast %90 : vector<1x8x16xbf16> to vector<8x16xbf16>
    %cst_50 = arith.constant dense<0.000000e+00> : vector<16x16xf32>
    %92 = tpu.matmul %89, %91, %cst_50 {dimension_numbers = #tpu.dot_dimension_numbers<[1], [0], [0], [1], [0, 0, 1, 1], [], []>} : vector<16x8xbf16>, vector<8x16xbf16>, vector<16x16xf32> -> vector<16x16xf32>
    %93 = arith.addf %84, %92 : vector<16x16xf32>
    %c0_51 = arith.constant 0 : index
    %c0_52 = arith.constant 0 : index
    %94 = vector.load %arg9[%c0_51, %c0_52] : memref<1x16xf32, #tpu.memory_space<vmem>>, vector<1x16xf32>
    %95 = vector.broadcast %94 : vector<1x16xf32> to vector<16x16xf32>
    %96 = arith.mulf %93, %95 : vector<16x16xf32>
    %c0_53 = arith.constant 0 : index
    %c0_54 = arith.constant 0 : index
    %97 = vector.load %arg10[%c0_53, %c0_54] : memref<1x16xf32, #tpu.memory_space<vmem>>, vector<1x16xf32>
    %98 = vector.broadcast %97 : vector<1x16xf32> to vector<16x16xf32>
    %99 = arith.addf %96, %98 : vector<16x16xf32>
    %cst_55 = arith.constant 0.000000e+00 : f32
    %100 = vector.broadcast %cst_55 : f32 to vector<16x16xf32>
    %101 = arith.maximumf %99, %100 : vector<16x16xf32>
    %c0_56 = arith.constant 0 : index
    %c0_57 = arith.constant 0 : index
    %102 = vector.load %arg20[%c0_56, %c0_57] : memref<32x16xf32, #tpu.memory_space<vmem>>, vector<16x16xf32>
    tpu.vector_store %arg20[%c0_56, %c0_57], %101 {strides = array<i32>} : memref<32x16xf32, #tpu.memory_space<vmem>>, vector<16x16xf32>,
    %c0_58 = arith.constant 0 : index
    %c0_59 = arith.constant 0 : index
    %103 = tpu.strided_load %arg20[%c0_58, %c0_59] {strides = array<i32: 2, 1>} : memref<32x16xf32, #tpu.memory_space<vmem>>, vector<8x16xf32>
    %c1_60 = arith.constant 1 : index
    %c0_61 = arith.constant 0 : index
    %104 = tpu.strided_load %arg20[%c1_60, %c0_61] {strides = array<i32: 2, 1>} : memref<32x16xf32, #tpu.memory_space<vmem>>, vector<8x16xf32>
    %105 = arith.maximumf %103, %104 : vector<8x16xf32>
    %c0_62 = arith.constant 0 : index
    %c0_63 = arith.constant 0 : index
    %106 = vector.load %arg20[%c0_62, %c0_63] : memref<32x16xf32, #tpu.memory_space<vmem>>, vector<8x16xf32>
    tpu.vector_store %arg20[%c0_62, %c0_63], %105 {strides = array<i32>} : memref<32x16xf32, #tpu.memory_space<vmem>>, vector<8x16xf32>,
    %c0_64 = arith.constant 0 : index
    %c0_65 = arith.constant 0 : index
    %107 = tpu.strided_load %arg20[%c0_64, %c0_65] {strides = array<i32: 4, 1>} : memref<32x16xf32, #tpu.memory_space<vmem>>, vector<2x16xf32>
    %108 = arith.truncf %107 : vector<2x16xf32> to vector<2x16xbf16>
    %c0_66 = arith.constant 0 : index
    %c0_67 = arith.constant 0 : index
    %c0_68 = arith.constant 0 : index
    %109 = vector.load %arg11[%c0_66, %c0_67, %c0_68] : memref<4x16x32xbf16, #tpu.memory_space<vmem>>, vector<1x16x32xbf16>
    %110 = vector.shape_cast %109 : vector<1x16x32xbf16> to vector<16x32xbf16>
    %cst_69 = arith.constant dense<0.000000e+00> : vector<2x32xf32>
    %111 = tpu.matmul %108, %110, %cst_69 {dimension_numbers = #tpu.dot_dimension_numbers<[1], [0], [0], [1], [0, 0, 1, 1], [], []>} : vector<2x16xbf16>, vector<16x32xbf16>, vector<2x32xf32> -> vector<2x32xf32>
    %c1_70 = arith.constant 1 : index
    %c0_71 = arith.constant 0 : index
    %112 = tpu.strided_load %arg20[%c1_70, %c0_71] {strides = array<i32: 4, 1>} : memref<32x16xf32, #tpu.memory_space<vmem>>, vector<2x16xf32>
    %113 = arith.truncf %112 : vector<2x16xf32> to vector<2x16xbf16>
    %c1_72 = arith.constant 1 : index
    %c0_73 = arith.constant 0 : index
    %c0_74 = arith.constant 0 : index
    %114 = vector.load %arg11[%c1_72, %c0_73, %c0_74] : memref<4x16x32xbf16, #tpu.memory_space<vmem>>, vector<1x16x32xbf16>
    %115 = vector.shape_cast %114 : vector<1x16x32xbf16> to vector<16x32xbf16>
    %cst_75 = arith.constant dense<0.000000e+00> : vector<2x32xf32>
    %116 = tpu.matmul %113, %115, %cst_75 {dimension_numbers = #tpu.dot_dimension_numbers<[1], [0], [0], [1], [0, 0, 1, 1], [], []>} : vector<2x16xbf16>, vector<16x32xbf16>, vector<2x32xf32> -> vector<2x32xf32>
    %117 = arith.addf %111, %116 : vector<2x32xf32>
    %c2_76 = arith.constant 2 : index
    %c0_77 = arith.constant 0 : index
    %118 = tpu.strided_load %arg20[%c2_76, %c0_77] {strides = array<i32: 4, 1>} : memref<32x16xf32, #tpu.memory_space<vmem>>, vector<2x16xf32>
    %119 = arith.truncf %118 : vector<2x16xf32> to vector<2x16xbf16>
    %c2_78 = arith.constant 2 : index
    %c0_79 = arith.constant 0 : index
    %c0_80 = arith.constant 0 : index
    %120 = vector.load %arg11[%c2_78, %c0_79, %c0_80] : memref<4x16x32xbf16, #tpu.memory_space<vmem>>, vector<1x16x32xbf16>
    %121 = vector.shape_cast %120 : vector<1x16x32xbf16> to vector<16x32xbf16>
    %cst_81 = arith.constant dense<0.000000e+00> : vector<2x32xf32>
    %122 = tpu.matmul %119, %121, %cst_81 {dimension_numbers = #tpu.dot_dimension_numbers<[1], [0], [0], [1], [0, 0, 1, 1], [], []>} : vector<2x16xbf16>, vector<16x32xbf16>, vector<2x32xf32> -> vector<2x32xf32>
    %123 = arith.addf %117, %122 : vector<2x32xf32>
    %c3 = arith.constant 3 : index
    %c0_82 = arith.constant 0 : index
    %124 = tpu.strided_load %arg20[%c3, %c0_82] {strides = array<i32: 4, 1>} : memref<32x16xf32, #tpu.memory_space<vmem>>, vector<2x16xf32>
    %125 = arith.truncf %124 : vector<2x16xf32> to vector<2x16xbf16>
    %c3_83 = arith.constant 3 : index
    %c0_84 = arith.constant 0 : index
    %c0_85 = arith.constant 0 : index
    %126 = vector.load %arg11[%c3_83, %c0_84, %c0_85] : memref<4x16x32xbf16, #tpu.memory_space<vmem>>, vector<1x16x32xbf16>
    %127 = vector.shape_cast %126 : vector<1x16x32xbf16> to vector<16x32xbf16>
    %cst_86 = arith.constant dense<0.000000e+00> : vector<2x32xf32>
    %128 = tpu.matmul %125, %127, %cst_86 {dimension_numbers = #tpu.dot_dimension_numbers<[1], [0], [0], [1], [0, 0, 1, 1], [], []>} : vector<2x16xbf16>, vector<16x32xbf16>, vector<2x32xf32> -> vector<2x32xf32>
    %129 = arith.addf %123, %128 : vector<2x32xf32>
    %c0_87 = arith.constant 0 : index
    %c0_88 = arith.constant 0 : index
    %130 = vector.load %arg12[%c0_87, %c0_88] : memref<1x32xf32, #tpu.memory_space<vmem>>, vector<1x32xf32>
    %131 = vector.broadcast %130 : vector<1x32xf32> to vector<2x32xf32>
    %132 = arith.mulf %129, %131 : vector<2x32xf32>
    %c0_89 = arith.constant 0 : index
    %c0_90 = arith.constant 0 : index
    %133 = vector.load %arg13[%c0_89, %c0_90] : memref<1x32xf32, #tpu.memory_space<vmem>>, vector<1x32xf32>
    %134 = vector.broadcast %133 : vector<1x32xf32> to vector<2x32xf32>
    %135 = arith.addf %132, %134 : vector<2x32xf32>
    %cst_91 = arith.constant 0.00999999977 : f32
    %136 = vector.broadcast %cst_91 : f32 to vector<2x32xf32>
    %137 = arith.mulf %136, %135 : vector<2x32xf32>
    %138 = arith.maximumf %135, %137 : vector<2x32xf32>
    %139 = arith.truncf %138 : vector<2x32xf32> to vector<2x32xbf16>
    %c0_92 = arith.constant 0 : index
    %c0_93 = arith.constant 0 : index
    %140 = vector.load %arg14[%c0_92, %c0_93] : memref<32x32xbf16, #tpu.memory_space<vmem>>, vector<32x32xbf16>
    %cst_94 = arith.constant dense<0.000000e+00> : vector<2x32xf32>
    %141 = tpu.matmul %139, %140, %cst_94 {dimension_numbers = #tpu.dot_dimension_numbers<[1], [0], [0], [1], [0, 0, 1, 1], [], []>} : vector<2x32xbf16>, vector<32x32xbf16>, vector<2x32xf32> -> vector<2x32xf32>
    %c0_95 = arith.constant 0 : index
    %c0_96 = arith.constant 0 : index
    %142 = vector.load %arg15[%c0_95, %c0_96] : memref<1x32xf32, #tpu.memory_space<vmem>>, vector<1x32xf32>
    %143 = vector.broadcast %142 : vector<1x32xf32> to vector<2x32xf32>
    %144 = arith.mulf %141, %143 : vector<2x32xf32>
    %c0_97 = arith.constant 0 : index
    %c0_98 = arith.constant 0 : index
    %145 = vector.load %arg16[%c0_97, %c0_98] : memref<1x32xf32, #tpu.memory_space<vmem>>, vector<1x32xf32>
    %146 = vector.broadcast %145 : vector<1x32xf32> to vector<2x32xf32>
    %147 = arith.addf %144, %146 : vector<2x32xf32>
    %cst_99 = arith.constant 0.00999999977 : f32
    %148 = vector.broadcast %cst_99 : f32 to vector<2x32xf32>
    %149 = arith.mulf %148, %147 : vector<2x32xf32>
    %150 = arith.maximumf %147, %149 : vector<2x32xf32>
    %151 = arith.truncf %150 : vector<2x32xf32> to vector<2x32xbf16>
    %c0_100 = arith.constant 0 : index
    %c0_101 = arith.constant 0 : index
    %152 = vector.load %arg17[%c0_100, %c0_101] : memref<32x128xbf16, #tpu.memory_space<vmem>>, vector<32x128xbf16>
    %cst_102 = arith.constant dense<0.000000e+00> : vector<2x128xf32>
    %153 = tpu.matmul %151, %152, %cst_102 {dimension_numbers = #tpu.dot_dimension_numbers<[1], [0], [0], [1], [0, 0, 1, 1], [], []>} : vector<2x32xbf16>, vector<32x128xbf16>, vector<2x128xf32> -> vector<2x128xf32>
    %c0_103 = arith.constant 0 : index
    %c0_104 = arith.constant 0 : index
    %154 = vector.load %arg18[%c0_103, %c0_104] : memref<1x128xf32, #tpu.memory_space<vmem>>, vector<1x128xf32>
    %155 = vector.broadcast %154 : vector<1x128xf32> to vector<2x128xf32>
    %156 = arith.addf %153, %155 : vector<2x128xf32>
    %c0_105 = arith.constant 0 : index
    %c0_106 = arith.constant 0 : index
    %c0_107 = arith.constant 0 : index
    %157 = vector.load %arg19[%c0_105, %c0_106, %c0_107] : memref<2x1x128xf32, #tpu.memory_space<vmem>>, vector<2x1x128xf32>
    %158 = vector.shape_cast %157 : vector<2x1x128xf32> to vector<2x128xf32>
    %159 = vector.shape_cast %156 : vector<2x128xf32> to vector<2x1x128xf32>
    tpu.vector_store %arg19[%c0_105, %c0_106, %c0_107], %159 {strides = array<i32>} : memref<2x1x128xf32, #tpu.memory_space<vmem>>, vector<2x1x128xf32>,
    return
  }
  func.func @transform_0(%arg0: i32) -> (i32, i32, i32) {
    %c0_i32 = arith.constant 0 : i32
    %c0_i32_0 = arith.constant 0 : i32
    %c0_i32_1 = arith.constant 0 : i32
    return %arg0, %c0_i32, %c0_i32_0 : i32, i32, i32
  }
  func.func @transform_1(%arg0: i32) -> (i32, i32, i32) {
    %c0_i32 = arith.constant 0 : i32
    %c0_i32_0 = arith.constant 0 : i32
    %c0_i32_1 = arith.constant 0 : i32
    %c0_i32_2 = arith.constant 0 : i32
    return %c0_i32, %c0_i32_0, %c0_i32_1 : i32, i32, i32
  }
  func.func @transform_2(%arg0: i32) -> (i32, i32) {
    %c0_i32 = arith.constant 0 : i32
    %c0_i32_0 = arith.constant 0 : i32
    %c0_i32_1 = arith.constant 0 : i32
    return %c0_i32, %c0_i32_0 : i32, i32
  }
  func.func @transform_3(%arg0: i32) -> (i32, i32) {
    %c0_i32 = arith.constant 0 : i32
    %c0_i32_0 = arith.constant 0 : i32
    %c0_i32_1 = arith.constant 0 : i32
    return %c0_i32, %c0_i32_0 : i32, i32
  }
  func.func @transform_4(%arg0: i32) -> (i32, i32, i32) {
    %c0_i32 = arith.constant 0 : i32
    %c0_i32_0 = arith.constant 0 : i32
    %c0_i32_1 = arith.constant 0 : i32
    %c0_i32_2 = arith.constant 0 : i32
    return %c0_i32, %c0_i32_0, %c0_i32_1 : i32, i32, i32
  }
  func.func @transform_5(%arg0: i32) -> (i32, i32) {
    %c0_i32 = arith.constant 0 : i32
    %c0_i32_0 = arith.constant 0 : i32
    %c0_i32_1 = arith.constant 0 : i32
    return %c0_i32, %c0_i32_0 : i32, i32
  }
  func.func @transform_6(%arg0: i32) -> (i32, i32) {
    %c0_i32 = arith.constant 0 : i32
    %c0_i32_0 = arith.constant 0 : i32
    %c0_i32_1 = arith.constant 0 : i32
    return %c0_i32, %c0_i32_0 : i32, i32
  }
  func.func @transform_7(%arg0: i32) -> (i32, i32, i32) {
    %c0_i32 = arith.constant 0 : i32
    %c0_i32_0 = arith.constant 0 : i32
    %c0_i32_1 = arith.constant 0 : i32
    %c0_i32_2 = arith.constant 0 : i32
    return %c0_i32, %c0_i32_0, %c0_i32_1 : i32, i32, i32
  }
  func.func @transform_8(%arg0: i32) -> (i32, i32) {
    %c0_i32 = arith.constant 0 : i32
    %c0_i32_0 = arith.constant 0 : i32
    %c0_i32_1 = arith.constant 0 : i32
    return %c0_i32, %c0_i32_0 : i32, i32
  }
  func.func @transform_9(%arg0: i32) -> (i32, i32) {
    %c0_i32 = arith.constant 0 : i32
    %c0_i32_0 = arith.constant 0 : i32
    %c0_i32_1 = arith.constant 0 : i32
    return %c0_i32, %c0_i32_0 : i32, i32
  }
  func.func @transform_10(%arg0: i32) -> (i32, i32, i32) {
    %c0_i32 = arith.constant 0 : i32
    %c0_i32_0 = arith.constant 0 : i32
    %c0_i32_1 = arith.constant 0 : i32
    %c0_i32_2 = arith.constant 0 : i32
    return %c0_i32, %c0_i32_0, %c0_i32_1 : i32, i32, i32
  }
  func.func @transform_11(%arg0: i32) -> (i32, i32) {
    %c0_i32 = arith.constant 0 : i32
    %c0_i32_0 = arith.constant 0 : i32
    %c0_i32_1 = arith.constant 0 : i32
    return %c0_i32, %c0_i32_0 : i32, i32
  }
  func.func @transform_12(%arg0: i32) -> (i32, i32) {
    %c0_i32 = arith.constant 0 : i32
    %c0_i32_0 = arith.constant 0 : i32
    %c0_i32_1 = arith.constant 0 : i32
    return %c0_i32, %c0_i32_0 : i32, i32
  }
  func.func @transform_13(%arg0: i32) -> (i32, i32) {
    %c0_i32 = arith.constant 0 : i32
    %c0_i32_0 = arith.constant 0 : i32
    %c0_i32_1 = arith.constant 0 : i32
    return %c0_i32, %c0_i32_0 : i32, i32
  }
  func.func @transform_14(%arg0: i32) -> (i32, i32) {
    %c0_i32 = arith.constant 0 : i32
    %c0_i32_0 = arith.constant 0 : i32
    %c0_i32_1 = arith.constant 0 : i32
    return %c0_i32, %c0_i32_0 : i32, i32
  }
  func.func @transform_15(%arg0: i32) -> (i32, i32) {
    %c0_i32 = arith.constant 0 : i32
    %c0_i32_0 = arith.constant 0 : i32
    %c0_i32_1 = arith.constant 0 : i32
    return %c0_i32, %c0_i32_0 : i32, i32
  }
  func.func @transform_16(%arg0: i32) -> (i32, i32) {
    %c0_i32 = arith.constant 0 : i32
    %c0_i32_0 = arith.constant 0 : i32
    %c0_i32_1 = arith.constant 0 : i32
    return %c0_i32, %c0_i32_0 : i32, i32
  }
  func.func @transform_17(%arg0: i32) -> (i32, i32) {
    %c0_i32 = arith.constant 0 : i32
    %c0_i32_0 = arith.constant 0 : i32
    %c0_i32_1 = arith.constant 0 : i32
    return %c0_i32, %c0_i32_0 : i32, i32
  }
  func.func @transform_18(%arg0: i32) -> (i32, i32, i32) {
    %c0_i32 = arith.constant 0 : i32
    %c0_i32_0 = arith.constant 0 : i32
    %c0_i32_1 = arith.constant 0 : i32
    return %arg0, %c0_i32, %c0_i32_0 : i32, i32, i32
  }
}

</mosaic_0001>

<bundles_post_ra>
// kernel: tpu_custom_call.1
= control target key start
LH: loop header
LB: loop body
LE: loop exit
PB: predicated region body
PF: predicated region fallthrough
CT: control target
= control target key end

     0   :  { %s1524_s0 = inlined_call_operand.vmem [shape: f32[2,16,4], index: 0, kind: input, shape index: {}]   ;;  %s1525_s1 = inlined_call_operand.hbm [shape: bf16[3,4,8], index: 1, kind: input, shape index: {}]   ;;  %s1526_s2 = inlined_call_operand.vmem [shape: f32[1,8], index: 2, kind: input, shape index: {}]   ;;  %s1527_s3 = inlined_call_operand.hbm [shape: f32[1,8], index: 3, kind: input, shape index: {}]   ;;  %s1528_s4 = inlined_call_operand.hbm [shape: bf16[3,8,8], index: 4, kind: input, shape index: {}]   ;;  %s1529_s5 = inlined_call_operand.hbm [shape: f32[1,8], index: 5, kind: input, shape index: {}]   ;;  %s1530_s6 = inlined_call_operand.hbm [shape: f32[1,8], index: 6, kind: input, shape index: {}]   ;;  %s1531_s7 = inlined_call_operand.hbm [shape: bf16[3,8,16], index: 7, kind: input, shape index: {}]   ;;  %s1532_s8 = inlined_call_operand.hbm [shape: f32[1,16], index: 8, kind: input, shape index: {}]   ;;  %s1533_s9 = inlined_call_operand.hbm [shape: f32[1,16], index: 9, kind: input, shape index: {}]   ;;  %s1534_s10 = inlined_call_operand.vmem [shape: bf16[4,16,32], index: 10, kind: input, shape index: {}]   ;;  %s1535_s11 = inlined_call_operand.vmem [shape: f32[1,32], index: 11, kind: input, shape index: {}]   ;;  %s1536_s12 = inlined_call_operand.vmem [shape: f32[1,32], index: 12, kind: input, shape index: {}]   ;;  %s1537_s13 = inlined_call_operand.vmem [shape: bf16[32,32], index: 13, kind: input, shape index: {}]   ;;  %s1538_s14 = inlined_call_operand.vmem [shape: f32[1,32], index: 14, kind: input, shape index: {}]   ;;  %s1539_s15 = inlined_call_operand.vmem [shape: f32[1,32], index: 15, kind: input, shape index: {}]   ;;  %s1540_s16 = inlined_call_operand.hbm [shape: bf16[32,128], index: 16, kind: input, shape index: {}]   ;;  %s1541_s17 = inlined_call_operand.vmem [shape: f32[1,128], index: 17, kind: input, shape index: {}]   ;;  %s1542_s18 = inlined_call_operand.hbm [shape: f32[2,1,128], index: 18, kind: output, shape index: {}]  }
   0x1   :  { %1544 = sst [smem:[#allocation25_spill]] %s1524_s0 }
   0x2   :  { %1545 = sst [smem:[#allocation26_spill]] %s1525_s1 }
   0x3   :  { %1546 = sst [smem:[#allocation27_spill]] %s1526_s2 }
   0x4   :  { %23 = vsyncpa [#allocation4], 0 }
   0x5   :  { %24 = vsyncpa [#allocation7], 0 }
   0x6   :  { %25 = vsyncpa [#allocation10], 0 }
   0x7   :  { %26 = vsyncpa [#allocation13], 0 }
   0x8   :  { %27 = vsyncpa [#allocation16], 0  ;;  %s51_s29 = sshll.u32 %s1527_s3, 4  ;;  %s52_s29 = int_to_ptr.hbm [resolvable:$true] %s51_s29 }
   0x9   :  { %28 = vsyncpa [#allocation5], 0  ;;  %s1253_s30 = smov [#allocation6]   ;;  %s75_s20 = sshll.u32 %s1529_s5, 4  ;;  %s76_s20 = int_to_ptr.hbm [resolvable:$true] %s75_s20 }
   0xa   :  { %s53_s0 = sshll.u32 %s1253_s30, 4  ;;  %s1254_s21 = smov [#allocation9]   ;;  %s54_s0 = int_to_ptr.vmem [resolvable:$true] %s53_s0 }
   0xb   :  { %56 = dma.hbm_to_vmem [thread:$0]  %s52_s29, 16, %s54_s0, [#allocation7]  }
   0xc   :  { %s77_s22 = sshll.u32 %s1254_s21, 4  ;;  %s96_s24 = sshll.u32 %s1531_s7, 4  ;;  %s78_s22 = int_to_ptr.vmem [resolvable:$true] %s77_s22  ;;  %s97_s24 = int_to_ptr.hbm [resolvable:$true] %s96_s24 }
   0xd   :  { %80 = dma.hbm_to_vmem [thread:$0]  %s76_s20, 16, %s78_s22, [#allocation10]  }
   0xe   :  { %s1255_s3 = smov [#allocation12]   ;;  %s121_s28 = sshll.u32 %s1533_s9, 4  ;;  %s122_s28 = int_to_ptr.hbm [resolvable:$true] %s121_s28 }
   0xf   :  { %s98_s25 = sshll.u32 %s1255_s3, 4  ;;  %s1256_s30 = smov 64   ;;  %s99_s25 = int_to_ptr.vmem [resolvable:$true] %s98_s25 }
  0x10   :  { %s1257_s5 = smov 4   ;;  %s1258_s29 = smov [#allocation15]  }
  0x11   :  { %104 = dma.hbm_to_vmem [thread:$0]  %s97_s24, 192, %s99_s25, [#allocation13], %s1256_s30, %s1256_s30, %s1257_s5  }
  0x12   :  { %s123_s0 = sshll.u32 %s1258_s29, 4  ;;  %s1547_s7 = sld [smem:[#allocation26_spill]]  ;;  %s124_s0 = int_to_ptr.vmem [resolvable:$true] %s123_s0 }
  0x13   :  { %126 = dma.hbm_to_vmem [thread:$0]  %s122_s28, 16, %s124_s0, [#allocation16]  }
  0x14   :  { %s1259_s21 = smov [#allocation3]   ;;  %s61_s23 = sshll.u32 %s1528_s4, 4  ;;  %s62_s23 = int_to_ptr.hbm [resolvable:$true] %s61_s23 }
  0x15   :  { %s37_s22 = sshll.u32 %s1259_s21, 4  ;;  %s1260_s3 = smov 32   ;;  %s38_s22 = int_to_ptr.vmem [resolvable:$true] %s37_s22 }
  0x16   :  { %s1261_s26 = smov 2   ;;  %s1262_s24 = smov [#allocation8]  }
  0x17   :  { %s63_s25 = sshll.u32 %s1262_s24, 4  ;;  %s86_s19 = sshll.u32 %s1530_s6, 4  ;;  %s64_s25 = int_to_ptr.vmem [resolvable:$true] %s63_s25  ;;  %s87_s19 = int_to_ptr.hbm [resolvable:$true] %s86_s19 }
  0x18   :  { %s35_s20 = sshll.u32 %s1547_s7, 4  ;;  %s110_s4 = sshll.u32 %s1532_s8, 4  ;;  %s36_s20 = int_to_ptr.hbm [resolvable:$true] %s35_s20  ;;  %s111_s4 = int_to_ptr.hbm [resolvable:$true] %s110_s4 }
  0x19   :  { %43 = dma.hbm_to_vmem [thread:$0]  %s36_s20, 96, %s38_s22, [#allocation4], %s1260_s3, %s1260_s3, %s1261_s26  }
  0x1a   :  { %69 = dma.hbm_to_vmem [thread:$0]  %s62_s23, 192, %s64_s25, [#allocation7], %s1256_s30, %s1256_s30, %s1257_s5  }
  0x1b   :  { %s1263_s1 = smov [#allocation11]   ;;  %s1264_s20 = smov [#allocation14]  }
  0x1c   :  { %s88_s7 = sshll.u32 %s1263_s1, 4  ;;  %s112_s21 = sshll.u32 %s1264_s20, 4  ;;  %s89_s7 = int_to_ptr.vmem [resolvable:$true] %s88_s7  ;;  %s113_s21 = int_to_ptr.vmem [resolvable:$true] %s112_s21 }
  0x1d   :  { %91 = dma.hbm_to_vmem [thread:$0]  %s87_s19, 16, %s89_s7, [#allocation10]  }
  0x1e   :  { %s143_s6 = sshll.u32 %s1540_s16, 4  ;;  %s1265_s2 = smov [#allocation17]   ;;  %s144_s6 = int_to_ptr.hbm [resolvable:$true] %s143_s6 }
  0x1f   :  { %115 = dma.hbm_to_vmem [thread:$0]  %s111_s4, 16, %s113_s21, [#allocation13]  }
  0x20   :  { %s145_s23 = sshll.u32 %s1265_s2, 4  ;;  %s146_s23 = int_to_ptr.vmem [resolvable:$true] %s145_s23 }
  0x21   :  { %151 = dma.hbm_to_vmem [thread:$0]  %s144_s6, 256, %s146_s23, [#allocation16], %s1256_s30, %s1256_s30, %s1257_s5  }
  0x22   :  { %1241 = dma.done.wait [#allocation4], 96  }
  0x23   :  { %1242 = vsyncadd [#allocation4], 4294967200 }
  0x24   :  { %1243 = dma.done.wait [#allocation7], 208  }
  0x25   :  { %1244 = vsyncadd [#allocation7], 4294967088 }
  0x26   :  { %1245 = dma.done.wait [#allocation10], 32  }
  0x27   :  { %1246 = vsyncadd [#allocation10], 4294967264 }
  0x28   :  { %1247 = dma.done.wait [#allocation13], 208  }
  0x29   :  { %1248 = vsyncadd [#allocation13], 4294967088 }
  0x2a   :  { %1249 = dma.done.wait [#allocation16], 272  }
  0x2b   :  { %1250 = vsyncadd [#allocation16], 4294967024  ;;  %v199_v0 = vlaneseq  ;;  %vm234_vm0 = vcmask 1041408   ;;  %v216_v2 = vld [vmem:[#allocation3 + $0x2] sm:$0x3]  ;;  %s1548_s3 = sld [smem:[#allocation25_spill]] }
  0x2c   :  { %v236_v5 = vsel %vm234_vm0, %v216_v2, 0  ;;  %v210_v9 = vld [vmem:[#allocation3] sm:$0x3]  ;;  %v309_v14 = vld [vmem:[#allocation3 + $0x4] sm:$0x3]  ;;  %vm227_vm3 = vcmask 31744  }
  0x2d   :  { %v1400_v1 = vshrl.u32 %v199_v0, 7  ;;  %245 = vmatpush.bf16.msra.mxu0 %v236_v5  ;;  %v274_v13 = vsel %vm234_vm0, %v210_v9, 0  ;;  %v327_v17 = vsel %vm234_vm0, %v309_v14, 0  ;;  %v385_v58 = vld [vmem:[#allocation8] sm:$0xf]  ;;  %vm409_vm4 = vcmask 1043456  }
  0x2e   :  { %283 = vmatpush.bf16.msra.mxu1 %v274_v13  ;;  %336 = vmatpush.bf16.msra.mxu2 %v327_v17  ;;  %v449_v59 = vsel %vm409_vm4, %v385_v58, 0  ;;  %v484_v60 = vld [vmem:[#allocation8 + $0x8] sm:$0xf]  ;;  %v391_v62 = vld [vmem:[#allocation8 + $0x4] sm:$0xf]  ;;  %s1549_s28 = sld [smem:[#allocation27_spill]] }
  0x2f   :  { %vm201_vm1 = vcmp.lt.s32.totalorder %v1400_v1, 1  ;;  %vm299_vm2 = vcmp.lt.s32.totalorder %v1400_v1, 7  ;;  %v502_v61 = vsel %vm409_vm4, %v484_v60, 0  ;;  %v411_v63 = vsel %vm409_vm4, %v391_v62, 0  ;;  %v991_v9 = vld [vmem:[#allocation6] ss:$0 sm:$0xff] }
  0x30   :  { %420 = vmatpush.bf16.msra.mxu3 %v411_v63  ;;  %vm376_vm5 = vcmp.lt.s32.totalorder %v1400_v1, 2  ;;  %vm474_vm6 = vcmp.lt.s32.totalorder %v1400_v1, 6  ;;  %vm402_vm7 = vcmask 64512   ;;  %vm666_vm8 = vcmask 130048   ;;  %s1266_s25 = smov [#allocation18]   ;;  %s890_s19 = sshll.u32 %s1542_s18, 4  ;;  %s891_s19 = int_to_ptr.hbm [resolvable:$true] %s890_s19 }
  0x31   :  { %v191_v3 = vld [vmem:[%s1548_s3] sm:$0xff]  ;;  %v192_v4 = vld [vmem:[%s1548_s3 + $0x8] sm:$0xff]  ;;  %v193_v15 = vld [vmem:[%s1548_s3 + $0x10] sm:$0xff]  ;;  %458 = vmatpush.bf16.msrb.mxu0 %v449_v59  ;;  %vm813_vm9 = vcmask 261120   ;;  %s888_s27 = sshll.u32 %s1266_s25, 4  ;;  %s889_s27 = int_to_ptr.vmem [resolvable:$true] %s888_s27 }
  0x32   :  { %v195_v6 = vrot.slane %v191_v3, 7  ;;  %v197_v7 = vrot.slane %v192_v4, 7  ;;  %v211_v8 = vpack.c.bf16 %v191_v3, %v191_v3  ;;  %v212_v10 = vpack.c.bf16 %v192_v4, %v192_v4  ;;  %v194_v20 = vld [vmem:[%s1548_s3 + $0x18] sm:$0xff]  ;;  %511 = vmatpush.bf16.msrb.mxu1 %v502_v61 }
  0x33   :  { %v295_v11 = vrot.slane %v191_v3, 1  ;;  %v297_v12 = vrot.slane %v192_v4, 1  ;;  %v196_v32 = vrot.slane %v193_v15, 7  ;;  %v198_v33 = vrot.slane %v194_v20, 7 }
  0x34   :  { %v221_v16 = vunpack.c.l.b16 %v211_v8  ;;  %v202_v18 = vsel %vm201_vm1, %v195_v6, %v197_v7  ;;  %v204_v19 = vsel %vm201_vm1, %v197_v7, %v195_v6  ;;  %v222_v21 = vunpack.c.l.b16 %v212_v10  ;;  %v990_v4 = vld [vmem:[%s1549_s28] ss:$0 sm:$0xff]  ;;  %s1268_s28 = smov 1  }
  0x35   :  { %v206_v22 = vpack.c.bf16 %v204_v19, %v204_v19  ;;  %v207_v23 = vpack.c.bf16 %v202_v18, %v202_v18  ;;  %v300_v24 = vsel %vm299_vm2, %v295_v11, %v297_v12  ;;  %v302_v25 = vsel %vm299_vm2, %v297_v12, %v295_v11 }
  0x36   :  { %v304_v26 = vpack.c.bf16 %v300_v24, %v300_v24  ;;  %v225_v27 = vpack.c.b16 %v222_v21, %v221_v16  ;;  %v305_v30 = vpack.c.bf16 %v302_v25, %v302_v25  ;;  %v296_v36 = vrot.slane %v193_v15, 1 }
  0x37   :  { %v261_v28 = vunpack.c.l.b16 %v206_v22  ;;  %v262_v29 = vunpack.c.l.b16 %v207_v23  ;;  %v298_v37 = vrot.slane %v194_v20, 1  ;;  %v203_v39 = vsel %vm201_vm1, %v196_v32, %v198_v33 }
  0x38   :  { %v314_v31 = vunpack.c.l.b16 %v304_v26  ;;  %907 = vmatmul.msk.bf16.vlgmr.msra.gmra.mxu0 %vm227_vm3, %v225_v27  ;;  %v315_v35 = vunpack.c.l.b16 %v305_v30  ;;  %v205_v40 = vsel %vm201_vm1, %v198_v33, %v196_v32  ;;  %v213_v41 = vpack.c.bf16 %v193_v15, %v193_v15 }
  0x39   :  { %v265_v34 = vpack.c.b16 %v262_v29, %v261_v28  ;;  %v214_v42 = vpack.c.bf16 %v194_v20, %v194_v20  ;;  %v301_v43 = vsel %vm299_vm2, %v296_v36, %v298_v37  ;;  %v303_v44 = vsel %vm299_vm2, %v298_v37, %v296_v36 }
  0x3a   :  { %v318_v38 = vpack.c.b16 %v315_v35, %v314_v31  ;;  %v208_v45 = vpack.c.bf16 %v205_v40, %v205_v40  ;;  %v209_v46 = vpack.c.bf16 %v203_v39, %v203_v39  ;;  %v223_v47 = vunpack.c.l.b16 %v213_v41 }
  0x3b   :  { %909 = vmatmul.msk.bf16.vlgmr.msra.gmra.mxu1 %vm227_vm3, %v265_v34  ;;  %v224_v48 = vunpack.c.l.b16 %v214_v42  ;;  %v306_v49 = vpack.c.bf16 %v301_v43, %v301_v43  ;;  %v307_v50 = vpack.c.bf16 %v303_v44, %v303_v44 }
  0x3c   :  { %911 = vmatmul.msk.bf16.vlgmr.msra.gmra.mxu2 %vm227_vm3, %v318_v38  ;;  %v263_v51 = vunpack.c.l.b16 %v208_v45  ;;  %v264_v52 = vunpack.c.l.b16 %v209_v46 }
  0x3d   :  { %v226_v53 = vpack.c.b16 %v224_v48, %v223_v47  ;;  %v316_v54 = vunpack.c.l.b16 %v306_v49  ;;  %v317_v55 = vunpack.c.l.b16 %v307_v50 }
  0x3e   :  { %v266_v56 = vpack.c.b16 %v264_v52, %v263_v51 }
  0x3f   :  { %v319_v57 = vpack.c.b16 %v317_v55, %v316_v54 }
  0x48   :  { %908 = vmatmul.msk.bf16.gmra.mxu0 %vm227_vm3, %v226_v53 }
  0x4b   :  { %910 = vmatmul.msk.bf16.gmra.mxu1 %vm227_vm3, %v266_v56 }
  0x4c   :  { %912 = vmatmul.msk.bf16.gmra.mxu2 %vm227_vm3, %v319_v57 }
  0xb5   :  { %v247_v0 = vpop.f32.mrf.mxu0 }
  0xb8   :  { %v285_v2 = vpop.f32.mrf.mxu1 }
  0xb9   :  { %v286_v3 = vadd.f32 %v285_v2, %v247_v0 }
  0xbd   :  { %v249_v8 = vpop.f32.mrf.mxu0 }
  0xbf   :  { %v338_v5 = vpop.f32.mrf.mxu2 }
  0xc0   :  { %v287_v6 = vpop.f32.mrf.mxu1  ;;  %v348_v7 = vadd.f32 %v338_v5, %v286_v3 }
  0xc1   :  { %v288_v12 = vadd.f32 %v287_v6, %v249_v8 }
  0xc2   :  { %v356_v10 = vmul.f32 %v990_v4, %v348_v7 }
  0xc4   :  { %v364_v11 = vadd.f32 %v991_v9, %v356_v10 }
  0xc5   :  { %v252_v18 = vpop.f32.mrf.mxu0 }
  0xc6   :  { %v368_v15 = vmax.f32 %v364_v11, 0.0 }
  0xc7   :  { %v340_v13 = vpop.f32.mrf.mxu2 }
  0xc8   :  { %v349_v14 = vadd.f32 %v340_v13, %v288_v12  ;;  %v290_v16 = vpop.f32.mrf.mxu1  ;;  %v386_v21 = vpack.c.bf16 %v368_v15, %v368_v15  ;;  %v372_v23 = vrot.slane %v368_v15, 6  ;;  %v470_v25 = vrot.slane %v368_v15, 2 }
  0xc9   :  { %v291_v20 = vadd.f32 %v290_v16, %v252_v18  ;;  %v568_v18 = vld [vmem:[#allocation12 + $0x4] sm:$0xf] }
  0xca   :  { %v357_v17 = vmul.f32 %v990_v4, %v349_v14  ;;  %v396_v30 = vunpack.c.l.b16 %v386_v21  ;;  %v578_v1 = vsel %vm409_vm4, %v568_v18, 0 }
  0xcb   :  { %587 = vmatpush.bf16.msrb.mxu2 %v578_v1  ;;  %v968_v1 = vld [vmem:[%s1534_s10 + $0x10] sm:$0xff] }
  0xcc   :  { %v365_v19 = vadd.f32 %v991_v9, %v357_v17  ;;  %748 = vmatpush.bf16.msra.mxu1 %v968_v1 }
  0xcd   :  { %v254_v42 = vpop.f32.mrf.mxu0 }
  0xce   :  { %v369_v22 = vmax.f32 %v365_v19, 0.0 }
  0xcf   :  { %v343_v24 = vpop.f32.mrf.mxu2 }
  0xd0   :  { %v374_v26 = vrot.slane %v369_v22, 6  ;;  %v472_v27 = vrot.slane %v369_v22, 2  ;;  %v350_v28 = vadd.f32 %v343_v24, %v291_v20  ;;  %v387_v29 = vpack.c.bf16 %v369_v22, %v369_v22  ;;  %v292_v35 = vpop.f32.mrf.mxu1 }
  0xd1   :  { %v293_v47 = vadd.f32 %v292_v35, %v254_v42 }
  0xd2   :  { %v358_v31 = vmul.f32 %v990_v4, %v350_v28  ;;  %v377_v32 = vsel %vm376_vm5, %v372_v23, %v374_v26  ;;  %v379_v33 = vsel %vm376_vm5, %v374_v26, %v372_v23  ;;  %v475_v34 = vsel %vm474_vm6, %v470_v25, %v472_v27  ;;  %v992_v23 = vld [vmem:[#allocation9] ss:$0 sm:$0xff]  ;;  %v564_v26 = vld [vmem:[#allocation12] sm:$0xf] }
  0xd3   :  { %v397_v36 = vunpack.c.l.b16 %v387_v29  ;;  %v381_v37 = vpack.c.bf16 %v379_v33, %v379_v33  ;;  %v382_v38 = vpack.c.bf16 %v377_v32, %v377_v32  ;;  %v477_v39 = vsel %vm474_vm6, %v472_v27, %v470_v25  ;;  %v993_v25 = vld [vmem:[#allocation11] ss:$0 sm:$0xff] }
  0xd4   :  { %v479_v40 = vpack.c.bf16 %v475_v34, %v475_v34  ;;  %v480_v41 = vpack.c.bf16 %v477_v39, %v477_v39  ;;  %v366_v43 = vadd.f32 %v991_v9, %v358_v31  ;;  %v603_v28 = vsel %vm409_vm4, %v564_v26, 0  ;;  %v994_v26 = vld [vmem:[#allocation14] ss:$0 sm:$0xff] }
  0xd5   :  { %v400_v44 = vpack.c.b16 %v397_v36, %v396_v30  ;;  %v436_v45 = vunpack.c.l.b16 %v381_v37  ;;  %v437_v46 = vunpack.c.l.b16 %v382_v38  ;;  %612 = vmatpush.bf16.msrb.mxu3 %v603_v28 }
  0xd6   :  { %v489_v48 = vunpack.c.l.b16 %v479_v40  ;;  %v490_v49 = vunpack.c.l.b16 %v480_v41  ;;  %v370_v54 = vmax.f32 %v366_v43, 0.0 }
  0xd7   :  { %913 = vmatmul.msk.bf16.vlgmr.msra.gmra.mxu3 %vm402_vm7, %v400_v44  ;;  %v345_v50 = vpop.f32.mrf.mxu2  ;;  %v440_v51 = vpack.c.b16 %v437_v46, %v436_v45  ;;  %v624_v44 = vld [vmem:[#allocation12 + $0x8] sm:$0xf] }
  0xd8   :  { %v351_v52 = vadd.f32 %v345_v50, %v293_v47  ;;  %v493_v53 = vpack.c.b16 %v490_v49, %v489_v48  ;;  %v388_v57 = vpack.c.bf16 %v370_v54, %v370_v54  ;;  %v373_v59 = vrot.slane %v370_v54, 6 }
  0xd9   :  { %915 = vmatmul.msk.bf16.vlgmr.msrb.gmra.mxu0 %vm402_vm7, %v440_v51  ;;  %v471_v60 = vrot.slane %v370_v54, 2  ;;  %v634_v45 = vsel %vm409_vm4, %v624_v44, 0 }
  0xda   :  { %v359_v55 = vmul.f32 %v990_v4, %v351_v52  ;;  %917 = vmatmul.msk.bf16.vlgmr.msrb.gmra.mxu1 %vm402_vm7, %v493_v53  ;;  %v398_v0 = vunpack.c.l.b16 %v388_v57  ;;  %643 = vmatpush.bf16.msra.mxu2 %v634_v45 }
  0xdc   :  { %v367_v56 = vadd.f32 %v991_v9, %v359_v55 }
  0xde   :  { %v371_v58 = vmax.f32 %v367_v56, 0.0 }
  0xe0   :  { %v375_v61 = vrot.slane %v371_v58, 6  ;;  %v473_v62 = vrot.slane %v371_v58, 2  ;;  %v389_v63 = vpack.c.bf16 %v371_v58, %v371_v58 }
  0xe2   :  { %v399_v2 = vunpack.c.l.b16 %v389_v63  ;;  %v378_v3 = vsel %vm376_vm5, %v373_v59, %v375_v61  ;;  %v380_v5 = vsel %vm376_vm5, %v375_v61, %v373_v59  ;;  %v476_v4 = vsel %vm474_vm6, %v471_v60, %v473_v62 }
  0xe3   :  { %v383_v6 = vpack.c.bf16 %v380_v5, %v380_v5  ;;  %v384_v7 = vpack.c.bf16 %v378_v3, %v378_v3  ;;  %v478_v8 = vsel %vm474_vm6, %v473_v62, %v471_v60  ;;  %v481_v9 = vpack.c.bf16 %v476_v4, %v476_v4 }
  0xe4   :  { %v401_v10 = vpack.c.b16 %v399_v2, %v398_v0  ;;  %v482_v11 = vpack.c.bf16 %v478_v8, %v478_v8 }
  0xe5   :  { %v438_v12 = vunpack.c.l.b16 %v383_v6  ;;  %v439_v13 = vunpack.c.l.b16 %v384_v7  ;;  %v491_v14 = vunpack.c.l.b16 %v481_v9 }
  0xe6   :  { %v492_v15 = vunpack.c.l.b16 %v482_v11 }
  0xe7   :  { %914 = vmatmul.msk.bf16.gmra.mxu3 %vm402_vm7, %v401_v10  ;;  %v441_v16 = vpack.c.b16 %v439_v13, %v438_v12 }
  0xe8   :  { %v494_v17 = vpack.c.b16 %v492_v15, %v491_v14 }
  0xe9   :  { %916 = vmatmul.msk.bf16.gmra.mxu0 %vm402_vm7, %v441_v16 }
  0xea   :  { %918 = vmatmul.msk.bf16.gmra.mxu1 %vm402_vm7, %v494_v17 }
 0x156   :  { %v460_v19 = vpop.f32.mrf.mxu0 }
 0x157   :  { %v513_v20 = vpop.f32.mrf.mxu1 }
 0x15a   :  { %v422_v21 = vpop.f32.mrf.mxu3 }
 0x15b   :  { %v461_v22 = vadd.f32 %v460_v19, %v422_v21  ;;  %v966_v19 = vld [vmem:[%s1534_s10] sm:$0xff] }
 0x15c   :  { %720 = vmatpush.bf16.msra.mxu0 %v966_v19  ;;  %v1000_v19 = vld [vmem:[%s1541_s17] ss:$0 sm:$0xff] }
 0x15d   :  { %v523_v24 = vadd.f32 %v513_v20, %v461_v22  ;;  %v967_v20 = vld [vmem:[%s1534_s10 + $0x8] sm:$0xff]  ;;  %v969_v22 = vld [vmem:[%s1534_s10 + $0x18] sm:$0xff] }
 0x15e   :  { %v462_v27 = vpop.f32.mrf.mxu0  ;;  %698 = vmatpush.bf16.msra.mxu3 %v967_v20 }
 0x15f   :  { %v531_v29 = vmul.f32 %v992_v23, %v523_v24  ;;  %v515_v30 = vpop.f32.mrf.mxu1 }
 0x161   :  { %v539_v31 = vadd.f32 %v993_v25, %v531_v29  ;;  %v995_v29 = vld [vmem:[#allocation15] ss:$0 sm:$0xff] }
 0x162   :  { %v424_v32 = vpop.f32.mrf.mxu3 }
 0x163   :  { %v543_v33 = vmax.f32 %v539_v31, 0.0  ;;  %v463_v34 = vadd.f32 %v462_v27, %v424_v32 }
 0x165   :  { %547 = vst.msk [vmem:[#allocation2] sm:$0xff] %vm402_vm7, %v543_v33  ;;  %v524_v35 = vadd.f32 %v515_v30, %v463_v34 }
 0x166   :  { %v465_v37 = vpop.f32.mrf.mxu0 }
 0x167   :  { %v532_v36 = vmul.f32 %v992_v23, %v524_v35  ;;  %v518_v39 = vpop.f32.mrf.mxu1 }
 0x169   :  { %v540_v38 = vadd.f32 %v993_v25, %v532_v36 }
 0x16a   :  { %v427_v40 = vpop.f32.mrf.mxu3 }
 0x16b   :  { %v544_v41 = vmax.f32 %v540_v38, 0.0  ;;  %v466_v42 = vadd.f32 %v465_v37, %v427_v40 }
 0x16d   :  { %548 = vst.msk [vmem:[#allocation2 + $0x8] sm:$0xff] %vm402_vm7, %v544_v41  ;;  %v525_v43 = vadd.f32 %v518_v39, %v466_v42 }
 0x16e   :  { %v467_v48 = vpop.f32.mrf.mxu0 }
 0x16f   :  { %v533_v46 = vmul.f32 %v992_v23, %v525_v43  ;;  %v520_v52 = vpop.f32.mrf.mxu1 }
 0x171   :  { %v541_v47 = vadd.f32 %v993_v25, %v533_v46 }
 0x172   :  { %v429_v49 = vpop.f32.mrf.mxu3 }
 0x173   :  { %v545_v50 = vmax.f32 %v541_v47, 0.0  ;;  %v468_v51 = vadd.f32 %v467_v48, %v429_v49 }
 0x174   :  { %v551_v57 = vld [vmem:[#allocation2] ss:$2 sm:$0xff]  ;;  %v555_v58 = vld [vmem:[#allocation2 + $0x1] ss:$2 sm:$0xff] }
 0x175   :  { %549 = vst.msk [vmem:[#allocation2 + $0x10] sm:$0xff] %vm402_vm7, %v545_v50  ;;  %v526_v53 = vadd.f32 %v520_v52, %v468_v51  ;;  %v558_v59 = vmax.f32 %v551_v57, %v555_v58  ;;  %v971_v51 = vld [vmem:[%s1537_s13 + $0x8] sm:$0xff]  ;;  %v970_v52 = vld [vmem:[%s1537_s13] sm:$0xff] }
 0x177   :  { %v534_v54 = vmul.f32 %v992_v23, %v526_v53  ;;  %v560_v60 = vrot.slane %v558_v59, 7  ;;  %v565_v0 = vpack.c.bf16 %v558_v59, %v558_v59  ;;  %v619_v13 = vrot.slane %v558_v59, 1  ;;  %v973_v53 = vld [vmem:[#allocation17 + $0x8] sm:$0xff] }
 0x178   :  { %872 = vmatpush.bf16.msrb.mxu0 %v973_v53 }
 0x179   :  { %v542_v55 = vadd.f32 %v993_v25, %v534_v54  ;;  %v562_v5 = vpack.c.bf16 %v560_v60, %v560_v60  ;;  %v571_v4 = vunpack.c.l.b16 %v565_v0  ;;  %v621_v15 = vpack.c.bf16 %v619_v13, %v619_v13  ;;  %v997_v0 = vld [vmem:[%s1536_s12] ss:$0 sm:$0xff] }
 0x17b   :  { %v546_v56 = vmax.f32 %v542_v55, 0.0  ;;  %v596_v9 = vunpack.c.l.b16 %v562_v5  ;;  %v627_v17 = vunpack.c.l.b16 %v621_v15 }
 0x17d   :  { %550 = vst.msk [vmem:[#allocation2 + $0x18] sm:$0xff] %vm402_vm7, %v546_v56 }
 0x184   :  { %v553_v61 = vld [vmem:[#allocation2 + $0x10] ss:$2 sm:$0xff]  ;;  %v557_v62 = vld [vmem:[#allocation2 + $0x11] ss:$2 sm:$0xff] }
 0x185   :  { %v559_v63 = vmax.f32 %v553_v61, %v557_v62  ;;  %v996_v61 = vld [vmem:[%s1535_s11] ss:$0 sm:$0xff] }
 0x187   :  { %v566_v2 = vpack.c.bf16 %v559_v63, %v559_v63  ;;  %v561_v3 = vrot.slane %v559_v63, 7  ;;  %v620_v12 = vrot.slane %v559_v63, 1 }
 0x189   :  { %v572_v6 = vunpack.c.l.b16 %v566_v2  ;;  %v563_v7 = vpack.c.bf16 %v561_v3, %v561_v3  ;;  %v622_v14 = vpack.c.bf16 %v620_v12, %v620_v12 }
 0x18b   :  { %v573_v8 = vpack.c.b16 %v572_v6, %v571_v4  ;;  %v597_v10 = vunpack.c.l.b16 %v563_v7  ;;  %v628_v16 = vunpack.c.l.b16 %v622_v14 }
 0x18d   :  { %919 = vmatmul.msk.bf16.vlgmr.msrb.gmra.mxu2 %vm402_vm7, %v573_v8  ;;  %v598_v11 = vpack.c.b16 %v597_v10, %v596_v9  ;;  %v629_v18 = vpack.c.b16 %v628_v16, %v627_v17  ;;  %v972_v9 = vld [vmem:[#allocation17] sm:$0xff]  ;;  %v998_v10 = vld [vmem:[%s1538_s14] ss:$0 sm:$0xff] }
 0x18e   :  { %777 = vmatpush.bf16.msrb.mxu2 %v969_v22  ;;  %873 = vmatpush.bf16.msrb.mxu0 %v972_v9 }
 0x18f   :  { %920 = vmatmul.msk.bf16.vlgmr.msrb.gmra.mxu3 %vm402_vm7, %v598_v11  ;;  %v999_v11 = vld [vmem:[%s1539_s15] ss:$0 sm:$0xff]  ;;  %s1267_s15 = smov 16  }
 0x190   :  { %823 = vmatpush.bf16.msrb.mxu3 %v971_v51 }
 0x194   :  { %824 = vmatpush.bf16.msrb.mxu3 %v970_v52 }
 0x19d   :  { %921 = vmatmul.msk.bf16.vlgmr.msra.gmra.mxu2 %vm402_vm7, %v629_v18 }
 0x210   :  { %v589_v21 = vpop.f32.mrf.mxu2 }
 0x212   :  { %v614_v24 = vpop.f32.mrf.mxu3 }
 0x213   :  { %v615_v25 = vadd.f32 %v614_v24, %v589_v21 }
 0x218   :  { %v591_v23 = vpop.f32.mrf.mxu2 }
 0x21a   :  { %v616_v31 = vpop.f32.mrf.mxu3 }
 0x21b   :  { %v617_v33 = vadd.f32 %v616_v31, %v591_v23 }
 0x220   :  { %v645_v27 = vpop.f32.mrf.mxu2 }
 0x221   :  { %v650_v28 = vadd.f32 %v645_v27, %v615_v25 }
 0x223   :  { %v656_v30 = vmul.f32 %v994_v26, %v650_v28 }
 0x225   :  { %v662_v32 = vadd.f32 %v995_v29, %v656_v30 }
 0x227   :  { %v664_v34 = vmax.f32 %v662_v32, 0.0 }
 0x228   :  { %v647_v35 = vpop.f32.mrf.mxu2 }
 0x229   :  { %v651_v36 = vadd.f32 %v647_v35, %v617_v33  ;;  %667 = vst.msk [vmem:[#allocation2] sm:$0xff] %vm666_vm8, %v664_v34 }
 0x22b   :  { %v657_v37 = vmul.f32 %v994_v26, %v651_v36 }
 0x22d   :  { %v663_v38 = vadd.f32 %v995_v29, %v657_v37 }
 0x22f   :  { %v665_v39 = vmax.f32 %v663_v38, 0.0 }
 0x231   :  { %668 = vst.msk [vmem:[#allocation2 + $0x8] sm:$0xff] %vm666_vm8, %v665_v39 }
 0x238   :  { %v669_v40 = vld [vmem:[#allocation2] ss:$2 sm:$0xff]  ;;  %v670_v41 = vld [vmem:[#allocation2 + $0x1] ss:$2 sm:$0xff] }
 0x239   :  { %v671_v42 = vmax.f32 %v669_v40, %v670_v41 }
 0x23b   :  { %672 = vst.msk [vmem:[#allocation2] sm:$0xff] %vm666_vm8, %v671_v42 }
 0x242   :  { %v677_v43 = vld [vmem:[#allocation2 + $0x1] ss:$4 sm:$0x3]  ;;  %v673_v44 = vld [vmem:[#allocation2] ss:$4 sm:$0x3] }
 0x243   :  { %v678_v45 = vpack.c.bf16 %v677_v43, %v677_v43  ;;  %v674_v46 = vpack.c.bf16 %v673_v44, %v673_v44  ;;  %v727_v47 = vld [vmem:[#allocation2 + $0x2] ss:$4 sm:$0x3]  ;;  %v756_v48 = vld [vmem:[#allocation2 + $0x3] ss:$4 sm:$0x3] }
 0x244   :  { %v728_v49 = vpack.c.bf16 %v727_v47, %v727_v47  ;;  %v757_v50 = vpack.c.bf16 %v756_v48, %v756_v48 }
 0x245   :  { %928 = vmatmul.msk.bf16.vlgmr.msra.gmra.mxu3 %vm666_vm8, %v678_v45  ;;  %933 = vmatmul.msk.bf16.vlgmr.msra.gmra.mxu0 %vm666_vm8, %v674_v46 }
 0x246   :  { %940 = vmatmul.msk.bf16.vlgmr.msra.gmra.mxu1 %vm666_vm8, %v728_v49  ;;  %947 = vmatmul.msk.bf16.vlgmr.msrb.gmra.mxu2 %vm666_vm8, %v757_v50 }
 0x2c2   :  { %v722_v54 = vpop.f32.mrf.mxu0 }
 0x2c3   :  { %v750_v55 = vpop.f32.mrf.mxu1 }
 0x2c8   :  { %v700_v56 = vpop.f32.mrf.mxu3 }
 0x2c9   :  { %v723_v57 = vadd.f32 %v722_v54, %v700_v56  ;;  %v779_v58 = vpop.f32.mrf.mxu2 }
 0x2ca   :  { %v724_v59 = vpop.f32.mrf.mxu0 }
 0x2cb   :  { %v754_v60 = vadd.f32 %v750_v55, %v723_v57  ;;  %v752_v62 = vpop.f32.mrf.mxu1 }
 0x2cd   :  { %v783_v63 = vadd.f32 %v779_v58, %v754_v60 }
 0x2cf   :  { %v788_v2 = vmul.f32 %v996_v61, %v783_v63 }
 0x2d0   :  { %v702_v3 = vpop.f32.mrf.mxu3 }
 0x2d1   :  { %v793_v5 = vadd.f32 %v997_v0, %v788_v2  ;;  %v781_v4 = vpop.f32.mrf.mxu2 }
 0x2d3   :  { %v794_v6 = vmul.f32 0.01, %v793_v5 }
 0x2d5   :  { %v795_v7 = vmax.f32 %v793_v5, %v794_v6 }
 0x2d7   :  { %v796_v8 = vpack.c.bf16 %v795_v7, %v795_v7 }
 0x2d9   :  { %956 = vmatmul.msk.bf16.vlgmr.msrb.gmra.mxu3 %vm813_vm9, %v796_v8 }
 0x35c   :  { %v826_v12 = vpop.f32.mrf.mxu3 }
 0x35d   :  { %v834_v13 = vmul.f32 %v998_v10, %v826_v12 }
 0x35f   :  { %v839_v14 = vadd.f32 %v999_v11, %v834_v13 }
 0x361   :  { %v840_v15 = vmul.f32 0.01, %v839_v14 }
 0x363   :  { %v841_v16 = vmax.f32 %v839_v14, %v840_v15 }
 0x364   :  { %v828_v17 = vpop.f32.mrf.mxu3 }
 0x365   :  { %v842_v18 = vpack.c.bf16 %v841_v16, %v841_v16 }
 0x367   :  { %965 = vmatmul.msk.bf16.vlgmr.msrb.gmra.mxu0 %vm813_vm9, %v842_v18 }
 0x3e4   :  { %v875_v1 = vpop.f32.mrf.mxu0 }
 0x3e5   :  { %v876_v20 = vadd.f32 %v1000_v19, %v875_v1 }
 0x3e7   :  { %v880_v21 = vrot.slane %v876_v20, 1  ;;  %882 = vst [vmem:[#allocation18] sm:$0x1] %v876_v20 }
 0x3e9   :  { %883 = vst [vmem:[#allocation18 + $0x1] sm:$0x1] %v880_v21 }
 0x3ea   :  { %896 = dma.vmem_to_hbm [thread:$0]  %s889_s27, 32, %s891_s19, [#allocation5], %s1267_s15, %s1267_s15, %s1268_s28  }
 0x3ec   :  { %v877_v22 = vpop.f32.mrf.mxu0 }
 0x3ed   :  { %1251 = dma.done.wait [#allocation5], 32  }
 0x3ee   :  { %1252 = vsyncadd [#allocation5], 4294967264 }
 0x3ef   :  { %901 = vsyncpa [#allocation4], 1 }
 0x3f0   :  { %902 = vsyncpa [#allocation7], 1 }
 0x3f1   :  { %903 = vsyncpa [#allocation10], 1 }
 0x3f2   :  { %904 = vsyncpa [#allocation13], 1 }
 0x3f3   :  { %905 = vsyncpa [#allocation16], 1 }
 0x3f4   :  { %906 = vsyncpa [#allocation5], 1 }

// kernel: tpu_custom_call.1
= control target key start
LH: loop header
LB: loop body
LE: loop exit
PB: predicated region body
PF: predicated region fallthrough
CT: control target
= control target key end

     0   :  { %s1524_s0 = inlined_call_operand.vmem [shape: f32[2,16,4], index: 0, kind: input, shape index: {}]   ;;  %s1525_s1 = inlined_call_operand.hbm [shape: bf16[3,4,8], index: 1, kind: input, shape index: {}]   ;;  %s1526_s2 = inlined_call_operand.vmem [shape: f32[1,8], index: 2, kind: input, shape index: {}]   ;;  %s1527_s3 = inlined_call_operand.hbm [shape: f32[1,8], index: 3, kind: input, shape index: {}]   ;;  %s1528_s4 = inlined_call_operand.hbm [shape: bf16[3,8,8], index: 4, kind: input, shape index: {}]   ;;  %s1529_s5 = inlined_call_operand.hbm [shape: f32[1,8], index: 5, kind: input, shape index: {}]   ;;  %s1530_s6 = inlined_call_operand.hbm [shape: f32[1,8], index: 6, kind: input, shape index: {}]   ;;  %s1531_s7 = inlined_call_operand.hbm [shape: bf16[3,8,16], index: 7, kind: input, shape index: {}]   ;;  %s1532_s8 = inlined_call_operand.hbm [shape: f32[1,16], index: 8, kind: input, shape index: {}]   ;;  %s1533_s9 = inlined_call_operand.hbm [shape: f32[1,16], index: 9, kind: input, shape index: {}]   ;;  %s1534_s10 = inlined_call_operand.vmem [shape: bf16[4,16,32], index: 10, kind: input, shape index: {}]   ;;  %s1535_s11 = inlined_call_operand.vmem [shape: f32[1,32], index: 11, kind: input, shape index: {}]   ;;  %s1536_s12 = inlined_call_operand.vmem [shape: f32[1,32], index: 12, kind: input, shape index: {}]   ;;  %s1537_s13 = inlined_call_operand.vmem [shape: bf16[32,32], index: 13, kind: input, shape index: {}]   ;;  %s1538_s14 = inlined_call_operand.vmem [shape: f32[1,32], index: 14, kind: input, shape index: {}]   ;;  %s1539_s15 = inlined_call_operand.vmem [shape: f32[1,32], index: 15, kind: input, shape index: {}]   ;;  %s1540_s16 = inlined_call_operand.hbm [shape: bf16[32,128], index: 16, kind: input, shape index: {}]   ;;  %s1541_s17 = inlined_call_operand.vmem [shape: f32[1,128], index: 17, kind: input, shape index: {}]   ;;  %s1542_s18 = inlined_call_operand.hbm [shape: f32[2,1,128], index: 18, kind: output, shape index: {}]  }
   0x1   :  { %1544 = sst [smem:[#allocation25_spill]] %s1524_s0 }
   0x2   :  { %1545 = sst [smem:[#allocation26_spill]] %s1525_s1 }
   0x3   :  { %1546 = sst [smem:[#allocation27_spill]] %s1526_s2 }
   0x4   :  { %23 = vsyncpa [#allocation4], 0 }
   0x5   :  { %24 = vsyncpa [#allocation7], 0 }
   0x6   :  { %25 = vsyncpa [#allocation10], 0 }
   0x7   :  { %26 = vsyncpa [#allocation13], 0 }
   0x8   :  { %27 = vsyncpa [#allocation16], 0  ;;  %s51_s29 = sshll.u32 %s1527_s3, 4  ;;  %s52_s29 = int_to_ptr.hbm [resolvable:$true] %s51_s29 }
   0x9   :  { %28 = vsyncpa [#allocation5], 0  ;;  %s1253_s30 = smov [#allocation6]   ;;  %s75_s20 = sshll.u32 %s1529_s5, 4  ;;  %s76_s20 = int_to_ptr.hbm [resolvable:$true] %s75_s20 }
   0xa   :  { %s53_s0 = sshll.u32 %s1253_s30, 4  ;;  %s1254_s21 = smov [#allocation9]   ;;  %s54_s0 = int_to_ptr.vmem [resolvable:$true] %s53_s0 }
   0xb   :  { %56 = dma.hbm_to_vmem [thread:$0]  %s52_s29, 16, %s54_s0, [#allocation7]  }
   0xc   :  { %s77_s22 = sshll.u32 %s1254_s21, 4  ;;  %s96_s24 = sshll.u32 %s1531_s7, 4  ;;  %s78_s22 = int_to_ptr.vmem [resolvable:$true] %s77_s22  ;;  %s97_s24 = int_to_ptr.hbm [resolvable:$true] %s96_s24 }
   0xd   :  { %80 = dma.hbm_to_vmem [thread:$0]  %s76_s20, 16, %s78_s22, [#allocation10]  }
   0xe   :  { %s1255_s3 = smov [#allocation12]   ;;  %s121_s28 = sshll.u32 %s1533_s9, 4  ;;  %s122_s28 = int_to_ptr.hbm [resolvable:$true] %s121_s28 }
   0xf   :  { %s98_s25 = sshll.u32 %s1255_s3, 4  ;;  %s1256_s30 = smov 64   ;;  %s99_s25 = int_to_ptr.vmem [resolvable:$true] %s98_s25 }
  0x10   :  { %s1257_s5 = smov 4   ;;  %s1258_s29 = smov [#allocation15]  }
  0x11   :  { %104 = dma.hbm_to_vmem [thread:$0]  %s97_s24, 192, %s99_s25, [#allocation13], %s1256_s30, %s1256_s30, %s1257_s5  }
  0x12   :  { %s123_s0 = sshll.u32 %s1258_s29, 4  ;;  %s1547_s7 = sld [smem:[#allocation26_spill]]  ;;  %s124_s0 = int_to_ptr.vmem [resolvable:$true] %s123_s0 }
  0x13   :  { %126 = dma.hbm_to_vmem [thread:$0]  %s122_s28, 16, %s124_s0, [#allocation16]  }
  0x14   :  { %s1259_s21 = smov [#allocation3]   ;;  %s61_s23 = sshll.u32 %s1528_s4, 4  ;;  %s62_s23 = int_to_ptr.hbm [resolvable:$true] %s61_s23 }
  0x15   :  { %s37_s22 = sshll.u32 %s1259_s21, 4  ;;  %s1260_s3 = smov 32   ;;  %s38_s22 = int_to_ptr.vmem [resolvable:$true] %s37_s22 }
  0x16   :  { %s1261_s26 = smov 2   ;;  %s1262_s24 = smov [#allocation8]  }
  0x17   :  { %s63_s25 = sshll.u32 %s1262_s24, 4  ;;  %s86_s19 = sshll.u32 %s1530_s6, 4  ;;  %s64_s25 = int_to_ptr.vmem [resolvable:$true] %s63_s25  ;;  %s87_s19 = int_to_ptr.hbm [resolvable:$true] %s86_s19 }
  0x18   :  { %s35_s20 = sshll.u32 %s1547_s7, 4  ;;  %s110_s4 = sshll.u32 %s1532_s8, 4  ;;  %s36_s20 = int_to_ptr.hbm [resolvable:$true] %s35_s20  ;;  %s111_s4 = int_to_ptr.hbm [resolvable:$true] %s110_s4 }
  0x19   :  { %43 = dma.hbm_to_vmem [thread:$0]  %s36_s20, 96, %s38_s22, [#allocation4], %s1260_s3, %s1260_s3, %s1261_s26  }
  0x1a   :  { %69 = dma.hbm_to_vmem [thread:$0]  %s62_s23, 192, %s64_s25, [#allocation7], %s1256_s30, %s1256_s30, %s1257_s5  }
  0x1b   :  { %s1263_s1 = smov [#allocation11]   ;;  %s1264_s20 = smov [#allocation14]  }
  0x1c   :  { %s88_s7 = sshll.u32 %s1263_s1, 4  ;;  %s112_s21 = sshll.u32 %s1264_s20, 4  ;;  %s89_s7 = int_to_ptr.vmem [resolvable:$true] %s88_s7  ;;  %s113_s21 = int_to_ptr.vmem [resolvable:$true] %s112_s21 }
  0x1d   :  { %91 = dma.hbm_to_vmem [thread:$0]  %s87_s19, 16, %s89_s7, [#allocation10]  }
  0x1e   :  { %s143_s6 = sshll.u32 %s1540_s16, 4  ;;  %s1265_s2 = smov [#allocation17]   ;;  %s144_s6 = int_to_ptr.hbm [resolvable:$true] %s143_s6 }
  0x1f   :  { %115 = dma.hbm_to_vmem [thread:$0]  %s111_s4, 16, %s113_s21, [#allocation13]  }
  0x20   :  { %s145_s23 = sshll.u32 %s1265_s2, 4  ;;  %s146_s23 = int_to_ptr.vmem [resolvable:$true] %s145_s23 }
  0x21   :  { %151 = dma.hbm_to_vmem [thread:$0]  %s144_s6, 256, %s146_s23, [#allocation16], %s1256_s30, %s1256_s30, %s1257_s5  }
  0x22   :  { %1241 = dma.done.wait [#allocation4], 96  }
  0x23   :  { %1242 = vsyncadd [#allocation4], 4294967200 }
  0x24   :  { %1243 = dma.done.wait [#allocation7], 208  }
  0x25   :  { %1244 = vsyncadd [#allocation7], 4294967088 }
  0x26   :  { %1245 = dma.done.wait [#allocation10], 32  }
  0x27   :  { %1246 = vsyncadd [#allocation10], 4294967264 }
  0x28   :  { %1247 = dma.done.wait [#allocation13], 208  }
  0x29   :  { %1248 = vsyncadd [#allocation13], 4294967088 }
  0x2a   :  { %1249 = dma.done.wait [#allocation16], 272  }
  0x2b   :  { %1250 = vsyncadd [#allocation16], 4294967024  ;;  %v199_v0 = vlaneseq  ;;  %vm234_vm0 = vcmask 1041408   ;;  %v216_v2 = vld [vmem:[#allocation3 + $0x2] sm:$0x3]  ;;  %s1548_s3 = sld [smem:[#allocation25_spill]] }
  0x2c   :  { %v236_v5 = vsel %vm234_vm0, %v216_v2, 0  ;;  %v210_v9 = vld [vmem:[#allocation3] sm:$0x3]  ;;  %v309_v14 = vld [vmem:[#allocation3 + $0x4] sm:$0x3]  ;;  %vm227_vm3 = vcmask 31744  }
  0x2d   :  { %v1400_v1 = vshrl.u32 %v199_v0, 7  ;;  %245 = vmatpush.bf16.msra.mxu0 %v236_v5  ;;  %v274_v13 = vsel %vm234_vm0, %v210_v9, 0  ;;  %v327_v17 = vsel %vm234_vm0, %v309_v14, 0  ;;  %v385_v58 = vld [vmem:[#allocation8] sm:$0xf]  ;;  %vm409_vm4 = vcmask 1043456  }
  0x2e   :  { %283 = vmatpush.bf16.msra.mxu1 %v274_v13  ;;  %336 = vmatpush.bf16.msra.mxu2 %v327_v17  ;;  %v449_v59 = vsel %vm409_vm4, %v385_v58, 0  ;;  %v484_v60 = vld [vmem:[#allocation8 + $0x8] sm:$0xf]  ;;  %v391_v62 = vld [vmem:[#allocation8 + $0x4] sm:$0xf]  ;;  %s1549_s28 = sld [smem:[#allocation27_spill]] }
  0x2f   :  { %vm201_vm1 = vcmp.lt.s32.totalorder %v1400_v1, 1  ;;  %vm299_vm2 = vcmp.lt.s32.totalorder %v1400_v1, 7  ;;  %v502_v61 = vsel %vm409_vm4, %v484_v60, 0  ;;  %v411_v63 = vsel %vm409_vm4, %v391_v62, 0  ;;  %v991_v9 = vld [vmem:[#allocation6] ss:$0 sm:$0xff] }
  0x30   :  { %420 = vmatpush.bf16.msra.mxu3 %v411_v63  ;;  %vm376_vm5 = vcmp.lt.s32.totalorder %v1400_v1, 2  ;;  %vm474_vm6 = vcmp.lt.s32.totalorder %v1400_v1, 6  ;;  %vm402_vm7 = vcmask 64512   ;;  %vm666_vm8 = vcmask 130048   ;;  %s1266_s25 = smov [#allocation18]   ;;  %s890_s19 = sshll.u32 %s1542_s18, 4  ;;  %s891_s19 = int_to_ptr.hbm [resolvable:$true] %s890_s19 }
  0x31   :  { %v191_v3 = vld [vmem:[%s1548_s3] sm:$0xff]  ;;  %v192_v4 = vld [vmem:[%s1548_s3 + $0x8] sm:$0xff]  ;;  %v193_v15 = vld [vmem:[%s1548_s3 + $0x10] sm:$0xff]  ;;  %458 = vmatpush.bf16.msrb.mxu0 %v449_v59  ;;  %vm813_vm9 = vcmask 261120   ;;  %s888_s27 = sshll.u32 %s1266_s25, 4  ;;  %s889_s27 = int_to_ptr.vmem [resolvable:$true] %s888_s27 }
  0x32   :  { %v195_v6 = vrot.slane %v191_v3, 7  ;;  %v197_v7 = vrot.slane %v192_v4, 7  ;;  %v211_v8 = vpack.c.bf16 %v191_v3, %v191_v3  ;;  %v212_v10 = vpack.c.bf16 %v192_v4, %v192_v4  ;;  %v194_v20 = vld [vmem:[%s1548_s3 + $0x18] sm:$0xff]  ;;  %511 = vmatpush.bf16.msrb.mxu1 %v502_v61 }
  0x33   :  { %v295_v11 = vrot.slane %v191_v3, 1  ;;  %v297_v12 = vrot.slane %v192_v4, 1  ;;  %v196_v32 = vrot.slane %v193_v15, 7  ;;  %v198_v33 = vrot.slane %v194_v20, 7 }
  0x34   :  { %v221_v16 = vunpack.c.l.b16 %v211_v8  ;;  %v202_v18 = vsel %vm201_vm1, %v195_v6, %v197_v7  ;;  %v204_v19 = vsel %vm201_vm1, %v197_v7, %v195_v6  ;;  %v222_v21 = vunpack.c.l.b16 %v212_v10  ;;  %v990_v4 = vld [vmem:[%s1549_s28] ss:$0 sm:$0xff]  ;;  %s1268_s28 = smov 1  }
  0x35   :  { %v206_v22 = vpack.c.bf16 %v204_v19, %v204_v19  ;;  %v207_v23 = vpack.c.bf16 %v202_v18, %v202_v18  ;;  %v300_v24 = vsel %vm299_vm2, %v295_v11, %v297_v12  ;;  %v302_v25 = vsel %vm299_vm2, %v297_v12, %v295_v11 }
  0x36   :  { %v304_v26 = vpack.c.bf16 %v300_v24, %v300_v24  ;;  %v225_v27 = vpack.c.b16 %v222_v21, %v221_v16  ;;  %v305_v30 = vpack.c.bf16 %v302_v25, %v302_v25  ;;  %v296_v36 = vrot.slane %v193_v15, 1 }
  0x37   :  { %v261_v28 = vunpack.c.l.b16 %v206_v22  ;;  %v262_v29 = vunpack.c.l.b16 %v207_v23  ;;  %v298_v37 = vrot.slane %v194_v20, 1  ;;  %v203_v39 = vsel %vm201_vm1, %v196_v32, %v198_v33 }
  0x38   :  { %v314_v31 = vunpack.c.l.b16 %v304_v26  ;;  %907 = vmatmul.msk.bf16.vlgmr.msra.gmra.mxu0 %vm227_vm3, %v225_v27  ;;  %v315_v35 = vunpack.c.l.b16 %v305_v30  ;;  %v205_v40 = vsel %vm201_vm1, %v198_v33, %v196_v32  ;;  %v213_v41 = vpack.c.bf16 %v193_v15, %v193_v15 }
  0x39   :  { %v265_v34 = vpack.c.b16 %v262_v29, %v261_v28  ;;  %v214_v42 = vpack.c.bf16 %v194_v20, %v194_v20  ;;  %v301_v43 = vsel %vm299_vm2, %v296_v36, %v298_v37  ;;  %v303_v44 = vsel %vm299_vm2, %v298_v37, %v296_v36 }
  0x3a   :  { %v318_v38 = vpack.c.b16 %v315_v35, %v314_v31  ;;  %v208_v45 = vpack.c.bf16 %v205_v40, %v205_v40  ;;  %v209_v46 = vpack.c.bf16 %v203_v39, %v203_v39  ;;  %v223_v47 = vunpack.c.l.b16 %v213_v41 }
  0x3b   :  { %909 = vmatmul.msk.bf16.vlgmr.msra.gmra.mxu1 %vm227_vm3, %v265_v34  ;;  %v224_v48 = vunpack.c.l.b16 %v214_v42  ;;  %v306_v49 = vpack.c.bf16 %v301_v43, %v301_v43  ;;  %v307_v50 = vpack.c.bf16 %v303_v44, %v303_v44 }
  0x3c   :  { %911 = vmatmul.msk.bf16.vlgmr.msra.gmra.mxu2 %vm227_vm3, %v318_v38  ;;  %v263_v51 = vunpack.c.l.b16 %v208_v45  ;;  %v264_v52 = vunpack.c.l.b16 %v209_v46 }
  0x3d   :  { %v226_v53 = vpack.c.b16 %v224_v48, %v223_v47  ;;  %v316_v54 = vunpack.c.l.b16 %v306_v49  ;;  %v317_v55 = vunpack.c.l.b16 %v307_v50 }
  0x3e   :  { %v266_v56 = vpack.c.b16 %v264_v52, %v263_v51 }
  0x3f   :  { %v319_v57 = vpack.c.b16 %v317_v55, %v316_v54 }
  0x48   :  { %908 = vmatmul.msk.bf16.gmra.mxu0 %vm227_vm3, %v226_v53 }
  0x4b   :  { %910 = vmatmul.msk.bf16.gmra.mxu1 %vm227_vm3, %v266_v56 }
  0x4c   :  { %912 = vmatmul.msk.bf16.gmra.mxu2 %vm227_vm3, %v319_v57 }
  0xb5   :  { %v247_v0 = vpop.f32.mrf.mxu0 }
  0xb8   :  { %v285_v2 = vpop.f32.mrf.mxu1 }
  0xb9   :  { %v286_v3 = vadd.f32 %v285_v2, %v247_v0 }
  0xbd   :  { %v249_v8 = vpop.f32.mrf.mxu0 }
  0xbf   :  { %v338_v5 = vpop.f32.mrf.mxu2 }
  0xc0   :  { %v287_v6 = vpop.f32.mrf.mxu1  ;;  %v348_v7 = vadd.f32 %v338_v5, %v286_v3 }
  0xc1   :  { %v288_v12 = vadd.f32 %v287_v6, %v249_v8 }
  0xc2   :  { %v356_v10 = vmul.f32 %v990_v4, %v348_v7 }
  0xc4   :  { %v364_v11 = vadd.f32 %v991_v9, %v356_v10 }
  0xc5   :  { %v252_v18 = vpop.f32.mrf.mxu0 }
  0xc6   :  { %v368_v15 = vmax.f32 %v364_v11, 0.0 }
  0xc7   :  { %v340_v13 = vpop.f32.mrf.mxu2 }
  0xc8   :  { %v349_v14 = vadd.f32 %v340_v13, %v288_v12  ;;  %v290_v16 = vpop.f32.mrf.mxu1  ;;  %v386_v21 = vpack.c.bf16 %v368_v15, %v368_v15  ;;  %v372_v23 = vrot.slane %v368_v15, 6  ;;  %v470_v25 = vrot.slane %v368_v15, 2 }
  0xc9   :  { %v291_v20 = vadd.f32 %v290_v16, %v252_v18  ;;  %v568_v18 = vld [vmem:[#allocation12 + $0x4] sm:$0xf] }
  0xca   :  { %v357_v17 = vmul.f32 %v990_v4, %v349_v14  ;;  %v396_v30 = vunpack.c.l.b16 %v386_v21  ;;  %v578_v1 = vsel %vm409_vm4, %v568_v18, 0 }
  0xcb   :  { %587 = vmatpush.bf16.msrb.mxu2 %v578_v1  ;;  %v968_v1 = vld [vmem:[%s1534_s10 + $0x10] sm:$0xff] }
  0xcc   :  { %v365_v19 = vadd.f32 %v991_v9, %v357_v17  ;;  %748 = vmatpush.bf16.msra.mxu1 %v968_v1 }
  0xcd   :  { %v254_v42 = vpop.f32.mrf.mxu0 }
  0xce   :  { %v369_v22 = vmax.f32 %v365_v19, 0.0 }
  0xcf   :  { %v343_v24 = vpop.f32.mrf.mxu2 }
  0xd0   :  { %v374_v26 = vrot.slane %v369_v22, 6  ;;  %v472_v27 = vrot.slane %v369_v22, 2  ;;  %v350_v28 = vadd.f32 %v343_v24, %v291_v20  ;;  %v387_v29 = vpack.c.bf16 %v369_v22, %v369_v22  ;;  %v292_v35 = vpop.f32.mrf.mxu1 }
  0xd1   :  { %v293_v47 = vadd.f32 %v292_v35, %v254_v42 }
  0xd2   :  { %v358_v31 = vmul.f32 %v990_v4, %v350_v28  ;;  %v377_v32 = vsel %vm376_vm5, %v372_v23, %v374_v26  ;;  %v379_v33 = vsel %vm376_vm5, %v374_v26, %v372_v23  ;;  %v475_v34 = vsel %vm474_vm6, %v470_v25, %v472_v27  ;;  %v992_v23 = vld [vmem:[#allocation9] ss:$0 sm:$0xff]  ;;  %v564_v26 = vld [vmem:[#allocation12] sm:$0xf] }
  0xd3   :  { %v397_v36 = vunpack.c.l.b16 %v387_v29  ;;  %v381_v37 = vpack.c.bf16 %v379_v33, %v379_v33  ;;  %v382_v38 = vpack.c.bf16 %v377_v32, %v377_v32  ;;  %v477_v39 = vsel %vm474_vm6, %v472_v27, %v470_v25  ;;  %v993_v25 = vld [vmem:[#allocation11] ss:$0 sm:$0xff] }
  0xd4   :  { %v479_v40 = vpack.c.bf16 %v475_v34, %v475_v34  ;;  %v480_v41 = vpack.c.bf16 %v477_v39, %v477_v39  ;;  %v366_v43 = vadd.f32 %v991_v9, %v358_v31  ;;  %v603_v28 = vsel %vm409_vm4, %v564_v26, 0  ;;  %v994_v26 = vld [vmem:[#allocation14] ss:$0 sm:$0xff] }
  0xd5   :  { %v400_v44 = vpack.c.b16 %v397_v36, %v396_v30  ;;  %v436_v45 = vunpack.c.l.b16 %v381_v37  ;;  %v437_v46 = vunpack.c.l.b16 %v382_v38  ;;  %612 = vmatpush.bf16.msrb.mxu3 %v603_v28 }
  0xd6   :  { %v489_v48 = vunpack.c.l.b16 %v479_v40  ;;  %v490_v49 = vunpack.c.l.b16 %v480_v41  ;;  %v370_v54 = vmax.f32 %v366_v43, 0.0 }
  0xd7   :  { %913 = vmatmul.msk.bf16.vlgmr.msra.gmra.mxu3 %vm402_vm7, %v400_v44  ;;  %v345_v50 = vpop.f32.mrf.mxu2  ;;  %v440_v51 = vpack.c.b16 %v437_v46, %v436_v45  ;;  %v624_v44 = vld [vmem:[#allocation12 + $0x8] sm:$0xf] }
  0xd8   :  { %v351_v52 = vadd.f32 %v345_v50, %v293_v47  ;;  %v493_v53 = vpack.c.b16 %v490_v49, %v489_v48  ;;  %v388_v57 = vpack.c.bf16 %v370_v54, %v370_v54  ;;  %v373_v59 = vrot.slane %v370_v54, 6 }
  0xd9   :  { %915 = vmatmul.msk.bf16.vlgmr.msrb.gmra.mxu0 %vm402_vm7, %v440_v51  ;;  %v471_v60 = vrot.slane %v370_v54, 2  ;;  %v634_v45 = vsel %vm409_vm4, %v624_v44, 0 }
  0xda   :  { %v359_v55 = vmul.f32 %v990_v4, %v351_v52  ;;  %917 = vmatmul.msk.bf16.vlgmr.msrb.gmra.mxu1 %vm402_vm7, %v493_v53  ;;  %v398_v0 = vunpack.c.l.b16 %v388_v57  ;;  %643 = vmatpush.bf16.msra.mxu2 %v634_v45 }
  0xdc   :  { %v367_v56 = vadd.f32 %v991_v9, %v359_v55 }
  0xde   :  { %v371_v58 = vmax.f32 %v367_v56, 0.0 }
  0xe0   :  { %v375_v61 = vrot.slane %v371_v58, 6  ;;  %v473_v62 = vrot.slane %v371_v58, 2  ;;  %v389_v63 = vpack.c.bf16 %v371_v58, %v371_v58 }
  0xe2   :  { %v399_v2 = vunpack.c.l.b16 %v389_v63  ;;  %v378_v3 = vsel %vm376_vm5, %v373_v59, %v375_v61  ;;  %v380_v5 = vsel %vm376_vm5, %v375_v61, %v373_v59  ;;  %v476_v4 = vsel %vm474_vm6, %v471_v60, %v473_v62 }
  0xe3   :  { %v383_v6 = vpack.c.bf16 %v380_v5, %v380_v5  ;;  %v384_v7 = vpack.c.bf16 %v378_v3, %v378_v3  ;;  %v478_v8 = vsel %vm474_vm6, %v473_v62, %v471_v60  ;;  %v481_v9 = vpack.c.bf16 %v476_v4, %v476_v4 }
  0xe4   :  { %v401_v10 = vpack.c.b16 %v399_v2, %v398_v0  ;;  %v482_v11 = vpack.c.bf16 %v478_v8, %v478_v8 }
  0xe5   :  { %v438_v12 = vunpack.c.l.b16 %v383_v6  ;;  %v439_v13 = vunpack.c.l.b16 %v384_v7  ;;  %v491_v14 = vunpack.c.l.b16 %v481_v9 }
  0xe6   :  { %v492_v15 = vunpack.c.l.b16 %v482_v11 }
  0xe7   :  { %914 = vmatmul.msk.bf16.gmra.mxu3 %vm402_vm7, %v401_v10  ;;  %v441_v16 = vpack.c.b16 %v439_v13, %v438_v12 }
  0xe8   :  { %v494_v17 = vpack.c.b16 %v492_v15, %v491_v14 }
  0xe9   :  { %916 = vmatmul.msk.bf16.gmra.mxu0 %vm402_vm7, %v441_v16 }
  0xea   :  { %918 = vmatmul.msk.bf16.gmra.mxu1 %vm402_vm7, %v494_v17 }
 0x156   :  { %v460_v19 = vpop.f32.mrf.mxu0 }
 0x157   :  { %v513_v20 = vpop.f32.mrf.mxu1 }
 0x15a   :  { %v422_v21 = vpop.f32.mrf.mxu3 }
 0x15b   :  { %v461_v22 = vadd.f32 %v460_v19, %v422_v21  ;;  %v966_v19 = vld [vmem:[%s1534_s10] sm:$0xff] }
 0x15c   :  { %720 = vmatpush.bf16.msra.mxu0 %v966_v19  ;;  %v1000_v19 = vld [vmem:[%s1541_s17] ss:$0 sm:$0xff] }
 0x15d   :  { %v523_v24 = vadd.f32 %v513_v20, %v461_v22  ;;  %v967_v20 = vld [vmem:[%s1534_s10 + $0x8] sm:$0xff]  ;;  %v969_v22 = vld [vmem:[%s1534_s10 + $0x18] sm:$0xff] }
 0x15e   :  { %v462_v27 = vpop.f32.mrf.mxu0  ;;  %698 = vmatpush.bf16.msra.mxu3 %v967_v20 }
 0x15f   :  { %v531_v29 = vmul.f32 %v992_v23, %v523_v24  ;;  %v515_v30 = vpop.f32.mrf.mxu1 }
 0x161   :  { %v539_v31 = vadd.f32 %v993_v25, %v531_v29  ;;  %v995_v29 = vld [vmem:[#allocation15] ss:$0 sm:$0xff] }
 0x162   :  { %v424_v32 = vpop.f32.mrf.mxu3 }
 0x163   :  { %v543_v33 = vmax.f32 %v539_v31, 0.0  ;;  %v463_v34 = vadd.f32 %v462_v27, %v424_v32 }
 0x165   :  { %547 = vst.msk [vmem:[#allocation2] sm:$0xff] %vm402_vm7, %v543_v33  ;;  %v524_v35 = vadd.f32 %v515_v30, %v463_v34 }
 0x166   :  { %v465_v37 = vpop.f32.mrf.mxu0 }
 0x167   :  { %v532_v36 = vmul.f32 %v992_v23, %v524_v35  ;;  %v518_v39 = vpop.f32.mrf.mxu1 }
 0x169   :  { %v540_v38 = vadd.f32 %v993_v25, %v532_v36 }
 0x16a   :  { %v427_v40 = vpop.f32.mrf.mxu3 }
 0x16b   :  { %v544_v41 = vmax.f32 %v540_v38, 0.0  ;;  %v466_v42 = vadd.f32 %v465_v37, %v427_v40 }
 0x16d   :  { %548 = vst.msk [vmem:[#allocation2 + $0x8] sm:$0xff] %vm402_vm7, %v544_v41  ;;  %v525_v43 = vadd.f32 %v518_v39, %v466_v42 }
 0x16e   :  { %v467_v48 = vpop.f32.mrf.mxu0 }
 0x16f   :  { %v533_v46 = vmul.f32 %v992_v23, %v525_v43  ;;  %v520_v52 = vpop.f32.mrf.mxu1 }
 0x171   :  { %v541_v47 = vadd.f32 %v993_v25, %v533_v46 }
 0x172   :  { %v429_v49 = vpop.f32.mrf.mxu3 }
 0x173   :  { %v545_v50 = vmax.f32 %v541_v47, 0.0  ;;  %v468_v51 = vadd.f32 %v467_v48, %v429_v49 }
 0x174   :  { %v551_v57 = vld [vmem:[#allocation2] ss:$2 sm:$0xff]  ;;  %v555_v58 = vld [vmem:[#allocation2 + $0x1] ss:$2 sm:$0xff] }
 0x175   :  { %549 = vst.msk [vmem:[#allocation2 + $0x10] sm:$0xff] %vm402_vm7, %v545_v50  ;;  %v526_v53 = vadd.f32 %v520_v52, %v468_v51  ;;  %v558_v59 = vmax.f32 %v551_v57, %v555_v58  ;;  %v971_v51 = vld [vmem:[%s1537_s13 + $0x8] sm:$0xff]  ;;  %v970_v52 = vld [vmem:[%s1537_s13] sm:$0xff] }
 0x177   :  { %v534_v54 = vmul.f32 %v992_v23, %v526_v53  ;;  %v560_v60 = vrot.slane %v558_v59, 7  ;;  %v565_v0 = vpack.c.bf16 %v558_v59, %v558_v59  ;;  %v619_v13 = vrot.slane %v558_v59, 1  ;;  %v973_v53 = vld [vmem:[#allocation17 + $0x8] sm:$0xff] }
 0x178   :  { %872 = vmatpush.bf16.msrb.mxu0 %v973_v53 }
 0x179   :  { %v542_v55 = vadd.f32 %v993_v25, %v534_v54  ;;  %v562_v5 = vpack.c.bf16 %v560_v60, %v560_v60  ;;  %v571_v4 = vunpack.c.l.b16 %v565_v0  ;;  %v621_v15 = vpack.c.bf16 %v619_v13, %v619_v13  ;;  %v997_v0 = vld [vmem:[%s1536_s12] ss:$0 sm:$0xff] }
 0x17b   :  { %v546_v56 = vmax.f32 %v542_v55, 0.0  ;;  %v596_v9 = vunpack.c.l.b16 %v562_v5  ;;  %v627_v17 = vunpack.c.l.b16 %v621_v15 }
 0x17d   :  { %550 = vst.msk [vmem:[#allocation2 + $0x18] sm:$0xff] %vm402_vm7, %v546_v56 }
 0x184   :  { %v553_v61 = vld [vmem:[#allocation2 + $0x10] ss:$2 sm:$0xff]  ;;  %v557_v62 = vld [vmem:[#allocation2 + $0x11] ss:$2 sm:$0xff] }
 0x185   :  { %v559_v63 = vmax.f32 %v553_v61, %v557_v62  ;;  %v996_v61 = vld [vmem:[%s1535_s11] ss:$0 sm:$0xff] }
 0x187   :  { %v566_v2 = vpack.c.bf16 %v559_v63, %v559_v63  ;;  %v561_v3 = vrot.slane %v559_v63, 7  ;;  %v620_v12 = vrot.slane %v559_v63, 1 }
 0x189   :  { %v572_v6 = vunpack.c.l.b16 %v566_v2  ;;  %v563_v7 = vpack.c.bf16 %v561_v3, %v561_v3  ;;  %v622_v14 = vpack.c.bf16 %v620_v12, %v620_v12 }
 0x18b   :  { %v573_v8 = vpack.c.b16 %v572_v6, %v571_v4  ;;  %v597_v10 = vunpack.c.l.b16 %v563_v7  ;;  %v628_v16 = vunpack.c.l.b16 %v622_v14 }
 0x18d   :  { %919 = vmatmul.msk.bf16.vlgmr.msrb.gmra.mxu2 %vm402_vm7, %v573_v8  ;;  %v598_v11 = vpack.c.b16 %v597_v10, %v596_v9  ;;  %v629_v18 = vpack.c.b16 %v628_v16, %v627_v17  ;;  %v972_v9 = vld [vmem:[#allocation17] sm:$0xff]  ;;  %v998_v10 = vld [vmem:[%s1538_s14] ss:$0 sm:$0xff] }
 0x18e   :  { %777 = vmatpush.bf16.msrb.mxu2 %v969_v22  ;;  %873 = vmatpush.bf16.msrb.mxu0 %v972_v9 }
 0x18f   :  { %920 = vmatmul.msk.bf16.vlgmr.msrb.gmra.mxu3 %vm402_vm7, %v598_v11  ;;  %v999_v11 = vld [vmem:[%s1539_s15] ss:$0 sm:$0xff]  ;;  %s1267_s15 = smov 16  }
 0x190   :  { %823 = vmatpush.bf16.msrb.mxu3 %v971_v51 }
 0x194   :  { %824 = vmatpush.bf16.msrb.mxu3 %v970_v52 }
 0x19d   :  { %921 = vmatmul.msk.bf16.vlgmr.msra.gmra.mxu2 %vm402_vm7, %v629_v18 }
 0x210   :  { %v589_v21 = vpop.f32.mrf.mxu2 }
 0x212   :  { %v614_v24 = vpop.f32.mrf.mxu3 }
 0x213   :  { %v615_v25 = vadd.f32 %v614_v24, %v589_v21 }
 0x218   :  { %v591_v23 = vpop.f32.mrf.mxu2 }
 0x21a   :  { %v616_v31 = vpop.f32.mrf.mxu3 }
 0x21b   :  { %v617_v33 = vadd.f32 %v616_v31, %v591_v23 }
 0x220   :  { %v645_v27 = vpop.f32.mrf.mxu2 }
 0x221   :  { %v650_v28 = vadd.f32 %v645_v27, %v615_v25 }
 0x223   :  { %v656_v30 = vmul.f32 %v994_v26, %v650_v28 }
 0x225   :  { %v662_v32 = vadd.f32 %v995_v29, %v656_v30 }
 0x227   :  { %v664_v34 = vmax.f32 %v662_v32, 0.0 }
 0x228   :  { %v647_v35 = vpop.f32.mrf.mxu2 }
 0x229   :  { %v651_v36 = vadd.f32 %v647_v35, %v617_v33  ;;  %667 = vst.msk [vmem:[#allocation2] sm:$0xff] %vm666_vm8, %v664_v34 }
 0x22b   :  { %v657_v37 = vmul.f32 %v994_v26, %v651_v36 }
 0x22d   :  { %v663_v38 = vadd.f32 %v995_v29, %v657_v37 }
 0x22f   :  { %v665_v39 = vmax.f32 %v663_v38, 0.0 }
 0x231   :  { %668 = vst.msk [vmem:[#allocation2 + $0x8] sm:$0xff] %vm666_vm8, %v665_v39 }
 0x238   :  { %v669_v40 = vld [vmem:[#allocation2] ss:$2 sm:$0xff]  ;;  %v670_v41 = vld [vmem:[#allocation2 + $0x1] ss:$2 sm:$0xff] }
 0x239   :  { %v671_v42 = vmax.f32 %v669_v40, %v670_v41 }
 0x23b   :  { %672 = vst.msk [vmem:[#allocation2] sm:$0xff] %vm666_vm8, %v671_v42 }
 0x242   :  { %v677_v43 = vld [vmem:[#allocation2 + $0x1] ss:$4 sm:$0x3]  ;;  %v673_v44 = vld [vmem:[#allocation2] ss:$4 sm:$0x3] }
 0x243   :  { %v678_v45 = vpack.c.bf16 %v677_v43, %v677_v43  ;;  %v674_v46 = vpack.c.bf16 %v673_v44, %v673_v44  ;;  %v727_v47 = vld [vmem:[#allocation2 + $0x2] ss:$4 sm:$0x3]  ;;  %v756_v48 = vld [vmem:[#allocation2 + $0x3] ss:$4 sm:$0x3] }
 0x244   :  { %v728_v49 = vpack.c.bf16 %v727_v47, %v727_v47  ;;  %v757_v50 = vpack.c.bf16 %v756_v48, %v756_v48 }
 0x245   :  { %928 = vmatmul.msk.bf16.vlgmr.msra.gmra.mxu3 %vm666_vm8, %v678_v45  ;;  %933 = vmatmul.msk.bf16.vlgmr.msra.gmra.mxu0 %vm666_vm8, %v674_v46 }
 0x246   :  { %940 = vmatmul.msk.bf16.vlgmr.msra.gmra.mxu1 %vm666_vm8, %v728_v49  ;;  %947 = vmatmul.msk.bf16.vlgmr.msrb.gmra.mxu2 %vm666_vm8, %v757_v50 }
 0x2c2   :  { %v722_v54 = vpop.f32.mrf.mxu0 }
 0x2c3   :  { %v750_v55 = vpop.f32.mrf.mxu1 }
 0x2c8   :  { %v700_v56 = vpop.f32.mrf.mxu3 }
 0x2c9   :  { %v723_v57 = vadd.f32 %v722_v54, %v700_v56  ;;  %v779_v58 = vpop.f32.mrf.mxu2 }
 0x2ca   :  { %v724_v59 = vpop.f32.mrf.mxu0 }
 0x2cb   :  { %v754_v60 = vadd.f32 %v750_v55, %v723_v57  ;;  %v752_v62 = vpop.f32.mrf.mxu1 }
 0x2cd   :  { %v783_v63 = vadd.f32 %v779_v58, %v754_v60 }
 0x2cf   :  { %v788_v2 = vmul.f32 %v996_v61, %v783_v63 }
 0x2d0   :  { %v702_v3 = vpop.f32.mrf.mxu3 }
 0x2d1   :  { %v793_v5 = vadd.f32 %v997_v0, %v788_v2  ;;  %v781_v4 = vpop.f32.mrf.mxu2 }
 0x2d3   :  { %v794_v6 = vmul.f32 0.01, %v793_v5 }
 0x2d5   :  { %v795_v7 = vmax.f32 %v793_v5, %v794_v6 }
 0x2d7   :  { %v796_v8 = vpack.c.bf16 %v795_v7, %v795_v7 }
 0x2d9   :  { %956 = vmatmul.msk.bf16.vlgmr.msrb.gmra.mxu3 %vm813_vm9, %v796_v8 }
 0x35c   :  { %v826_v12 = vpop.f32.mrf.mxu3 }
 0x35d   :  { %v834_v13 = vmul.f32 %v998_v10, %v826_v12 }
 0x35f   :  { %v839_v14 = vadd.f32 %v999_v11, %v834_v13 }
 0x361   :  { %v840_v15 = vmul.f32 0.01, %v839_v14 }
 0x363   :  { %v841_v16 = vmax.f32 %v839_v14, %v840_v15 }
 0x364   :  { %v828_v17 = vpop.f32.mrf.mxu3 }
 0x365   :  { %v842_v18 = vpack.c.bf16 %v841_v16, %v841_v16 }
 0x367   :  { %965 = vmatmul.msk.bf16.vlgmr.msrb.gmra.mxu0 %vm813_vm9, %v842_v18 }
 0x3e4   :  { %v875_v1 = vpop.f32.mrf.mxu0 }
 0x3e5   :  { %v876_v20 = vadd.f32 %v1000_v19, %v875_v1 }
 0x3e7   :  { %v880_v21 = vrot.slane %v876_v20, 1  ;;  %882 = vst [vmem:[#allocation18] sm:$0x1] %v876_v20 }
 0x3e9   :  { %883 = vst [vmem:[#allocation18 + $0x1] sm:$0x1] %v880_v21 }
 0x3ea   :  { %896 = dma.vmem_to_hbm [thread:$0]  %s889_s27, 32, %s891_s19, [#allocation5], %s1267_s15, %s1267_s15, %s1268_s28  }
 0x3ec   :  { %v877_v22 = vpop.f32.mrf.mxu0 }
 0x3ed   :  { %1251 = dma.done.wait [#allocation5], 32  }
 0x3ee   :  { %1252 = vsyncadd [#allocation5], 4294967264 }
 0x3ef   :  { %901 = vsyncpa [#allocation4], 1 }
 0x3f0   :  { %902 = vsyncpa [#allocation7], 1 }
 0x3f1   :  { %903 = vsyncpa [#allocation10], 1 }
 0x3f2   :  { %904 = vsyncpa [#allocation13], 1 }
 0x3f3   :  { %905 = vsyncpa [#allocation16], 1 }
 0x3f4   :  { %906 = vsyncpa [#allocation5], 1 }

// kernel: tpu_custom_call.1
= control target key start
LH: loop header
LB: loop body
LE: loop exit
PB: predicated region body
PF: predicated region fallthrough
CT: control target
= control target key end

     0   :  { %s1541_s0 = inlined_call_operand.vmem [shape: f32[2,16,4], index: 0, kind: input, shape index: {}]   ;;  %s1542_s1 = inlined_call_operand.hbm [shape: bf16[3,4,8], index: 1, kind: input, shape index: {}]   ;;  %s1543_s2 = inlined_call_operand.vmem [shape: f32[1,8], index: 2, kind: input, shape index: {}]   ;;  %s1544_s3 = inlined_call_operand.hbm [shape: f32[1,8], index: 3, kind: input, shape index: {}]   ;;  %s1545_s4 = inlined_call_operand.hbm [shape: bf16[3,8,8], index: 4, kind: input, shape index: {}]   ;;  %s1546_s5 = inlined_call_operand.hbm [shape: f32[1,8], index: 5, kind: input, shape index: {}]   ;;  %s1547_s6 = inlined_call_operand.hbm [shape: f32[1,8], index: 6, kind: input, shape index: {}]   ;;  %s1548_s7 = inlined_call_operand.hbm [shape: bf16[3,8,16], index: 7, kind: input, shape index: {}]   ;;  %s1549_s8 = inlined_call_operand.hbm [shape: f32[1,16], index: 8, kind: input, shape index: {}]   ;;  %s1550_s9 = inlined_call_operand.hbm [shape: f32[1,16], index: 9, kind: input, shape index: {}]   ;;  %s1551_s10 = inlined_call_operand.vmem [shape: bf16[4,16,32], index: 10, kind: input, shape index: {}]   ;;  %s1552_s11 = inlined_call_operand.vmem [shape: f32[1,32], index: 11, kind: input, shape index: {}]   ;;  %s1553_s12 = inlined_call_operand.vmem [shape: f32[1,32], index: 12, kind: input, shape index: {}]   ;;  %s1554_s13 = inlined_call_operand.vmem [shape: bf16[32,32], index: 13, kind: input, shape index: {}]   ;;  %s1555_s14 = inlined_call_operand.vmem [shape: f32[1,32], index: 14, kind: input, shape index: {}]   ;;  %s1556_s15 = inlined_call_operand.vmem [shape: f32[1,32], index: 15, kind: input, shape index: {}]   ;;  %s1557_s16 = inlined_call_operand.hbm [shape: bf16[32,128], index: 16, kind: input, shape index: {}]   ;;  %s1558_s17 = inlined_call_operand.vmem [shape: f32[1,128], index: 17, kind: input, shape index: {}]   ;;  %s1559_s18 = inlined_call_operand.hbm [shape: f32[2,1,128], index: 18, kind: output, shape index: {}]  }
   0x1   :  { %1561 = sst [smem:[#allocation25_spill]] %s1541_s0 }
   0x2   :  { %1562 = sst [smem:[#allocation26_spill]] %s1542_s1 }
   0x3   :  { %1563 = sst [smem:[#allocation27_spill]] %s1543_s2 }
   0x4   :  { %23 = vsyncpa [#allocation4], 0 }
   0x5   :  { %24 = vsyncpa [#allocation7], 0 }
   0x6   :  { %25 = vsyncpa [#allocation10], 0 }
   0x7   :  { %26 = vsyncpa [#allocation13], 0 }
   0x8   :  { %27 = vsyncpa [#allocation16], 0  ;;  %s51_s29 = sshll.u32 %s1544_s3, 4  ;;  %s52_s29 = int_to_ptr.hbm [resolvable:$true] %s51_s29 }
   0x9   :  { %28 = vsyncpa [#allocation5], 0  ;;  %s1292_s30 = smov [#allocation6]   ;;  %s75_s20 = sshll.u32 %s1546_s5, 4  ;;  %s76_s20 = int_to_ptr.hbm [resolvable:$true] %s75_s20 }
   0xa   :  { %s53_s0 = sshll.u32 %s1292_s30, 4  ;;  %s1293_s21 = smov [#allocation9]   ;;  %s54_s0 = int_to_ptr.vmem [resolvable:$true] %s53_s0 }
   0xb   :  { %56 = dma.hbm_to_vmem [thread:$0]  %s52_s29, 16, %s54_s0, [#allocation7]  }
   0xc   :  { %s77_s22 = sshll.u32 %s1293_s21, 4  ;;  %s96_s24 = sshll.u32 %s1548_s7, 4  ;;  %s78_s22 = int_to_ptr.vmem [resolvable:$true] %s77_s22  ;;  %s97_s24 = int_to_ptr.hbm [resolvable:$true] %s96_s24 }
   0xd   :  { %80 = dma.hbm_to_vmem [thread:$0]  %s76_s20, 16, %s78_s22, [#allocation10]  }
   0xe   :  { %s1294_s3 = smov [#allocation12]   ;;  %s121_s28 = sshll.u32 %s1550_s9, 4  ;;  %s122_s28 = int_to_ptr.hbm [resolvable:$true] %s121_s28 }
   0xf   :  { %s98_s25 = sshll.u32 %s1294_s3, 4  ;;  %s1295_s30 = smov 64   ;;  %s99_s25 = int_to_ptr.vmem [resolvable:$true] %s98_s25 }
  0x10   :  { %s1296_s5 = smov 4   ;;  %s1297_s29 = smov [#allocation15]  }
  0x11   :  { %104 = dma.hbm_to_vmem [thread:$0]  %s97_s24, 192, %s99_s25, [#allocation13], %s1295_s30, %s1295_s30, %s1296_s5  }
  0x12   :  { %s123_s0 = sshll.u32 %s1297_s29, 4  ;;  %s1564_s7 = sld [smem:[#allocation26_spill]]  ;;  %s124_s0 = int_to_ptr.vmem [resolvable:$true] %s123_s0 }
  0x13   :  { %126 = dma.hbm_to_vmem [thread:$0]  %s122_s28, 16, %s124_s0, [#allocation16]  }
  0x14   :  { %s1298_s21 = smov [#allocation3]   ;;  %s61_s23 = sshll.u32 %s1545_s4, 4  ;;  %s62_s23 = int_to_ptr.hbm [resolvable:$true] %s61_s23 }
  0x15   :  { %s37_s22 = sshll.u32 %s1298_s21, 4  ;;  %s1299_s3 = smov 32   ;;  %s38_s22 = int_to_ptr.vmem [resolvable:$true] %s37_s22 }
  0x16   :  { %s1300_s26 = smov 2   ;;  %s1301_s24 = smov [#allocation8]  }
  0x17   :  { %s63_s25 = sshll.u32 %s1301_s24, 4  ;;  %s86_s19 = sshll.u32 %s1547_s6, 4  ;;  %s64_s25 = int_to_ptr.vmem [resolvable:$true] %s63_s25  ;;  %s87_s19 = int_to_ptr.hbm [resolvable:$true] %s86_s19 }
  0x18   :  { %s35_s20 = sshll.u32 %s1564_s7, 4  ;;  %s110_s4 = sshll.u32 %s1549_s8, 4  ;;  %s36_s20 = int_to_ptr.hbm [resolvable:$true] %s35_s20  ;;  %s111_s4 = int_to_ptr.hbm [resolvable:$true] %s110_s4 }
  0x19   :  { %43 = dma.hbm_to_vmem [thread:$0]  %s36_s20, 96, %s38_s22, [#allocation4], %s1299_s3, %s1299_s3, %s1300_s26  }
  0x1a   :  { %69 = dma.hbm_to_vmem [thread:$0]  %s62_s23, 192, %s64_s25, [#allocation7], %s1295_s30, %s1295_s30, %s1296_s5  }
  0x1b   :  { %s1302_s1 = smov [#allocation11]   ;;  %s1303_s20 = smov [#allocation14]  }
  0x1c   :  { %s88_s7 = sshll.u32 %s1302_s1, 4  ;;  %s112_s21 = sshll.u32 %s1303_s20, 4  ;;  %s89_s7 = int_to_ptr.vmem [resolvable:$true] %s88_s7  ;;  %s113_s21 = int_to_ptr.vmem [resolvable:$true] %s112_s21 }
  0x1d   :  { %91 = dma.hbm_to_vmem [thread:$0]  %s87_s19, 16, %s89_s7, [#allocation10]  }
  0x1e   :  { %s143_s6 = sshll.u32 %s1557_s16, 4  ;;  %s1304_s2 = smov [#allocation17]   ;;  %s144_s6 = int_to_ptr.hbm [resolvable:$true] %s143_s6 }
  0x1f   :  { %115 = dma.hbm_to_vmem [thread:$0]  %s111_s4, 16, %s113_s21, [#allocation13]  }
  0x20   :  { %s145_s23 = sshll.u32 %s1304_s2, 4  ;;  %s146_s23 = int_to_ptr.vmem [resolvable:$true] %s145_s23 }
  0x21   :  { %151 = dma.hbm_to_vmem [thread:$0]  %s144_s6, 256, %s146_s23, [#allocation16], %s1295_s30, %s1295_s30, %s1296_s5  }
  0x22   :  { %1280 = dma.done.wait [#allocation4], 96  }
  0x23   :  { %1281 = vsyncadd [#allocation4], 4294967200 }
  0x24   :  { %1282 = dma.done.wait [#allocation7], 208  }
  0x25   :  { %1283 = vsyncadd [#allocation7], 4294967088 }
  0x26   :  { %1284 = dma.done.wait [#allocation10], 32  }
  0x27   :  { %1285 = vsyncadd [#allocation10], 4294967264 }
  0x28   :  { %1286 = dma.done.wait [#allocation13], 208  }
  0x29   :  { %1287 = vsyncadd [#allocation13], 4294967088 }
  0x2a   :  { %1288 = dma.done.wait [#allocation16], 272  }
  0x2b   :  { %1289 = vsyncadd [#allocation16], 4294967024  ;;  %vm242_vm0 = vcmask 1041408   ;;  %v224_v0 = vld [vmem:[#allocation3 + $0x2] sm:$0x3]  ;;  %s1565_s3 = sld [smem:[#allocation25_spill]] }
  0x2c   :  { %vm203_vm1 = vcmask 1040384   ;;  %vm303_vm2 = vcmask 1046528   ;;  %v244_v3 = vsel %vm242_vm0, %v224_v0, 0  ;;  %v218_v7 = vld [vmem:[#allocation3] sm:$0x3]  ;;  %vm235_vm3 = vcmask 31744  }
  0x2d   :  { %253 = vmatpush.bf16.msra.mxu0 %v244_v3  ;;  %v282_v11 = vsel %vm242_vm0, %v218_v7, 0  ;;  %v323_v12 = vld [vmem:[#allocation3 + $0x4] sm:$0x3]  ;;  %v408_v56 = vld [vmem:[#allocation8] sm:$0xf]  ;;  %vm432_vm4 = vcmask 1043456  }
  0x2e   :  { %291 = vmatpush.bf16.msra.mxu1 %v282_v11  ;;  %v341_v15 = vsel %vm242_vm0, %v323_v12, 0  ;;  %v472_v57 = vsel %vm432_vm4, %v408_v56, 0  ;;  %v513_v58 = vld [vmem:[#allocation8 + $0x8] sm:$0xf]  ;;  %v414_v60 = vld [vmem:[#allocation8 + $0x4] sm:$0xf] }
  0x2f   :  { %350 = vmatpush.bf16.msra.mxu2 %v341_v15  ;;  %v531_v59 = vsel %vm432_vm4, %v513_v58, 0  ;;  %v434_v61 = vsel %vm432_vm4, %v414_v60, 0  ;;  %s1566_s28 = sld [smem:[#allocation27_spill]]  ;;  %vm493_vm5 = vcmask 1045504   ;;  %vm425_vm6 = vcmask 64512   ;;  %s1305_s25 = smov [#allocation18]  }
  0x30   :  { %443 = vmatpush.bf16.msra.mxu3 %v434_v61  ;;  %vm705_vm7 = vcmask 130048   ;;  %vm852_vm8 = vcmask 261120   ;;  %s927_s27 = sshll.u32 %s1305_s25, 4  ;;  %s929_s19 = sshll.u32 %s1559_s18, 4  ;;  %s928_s27 = int_to_ptr.vmem [resolvable:$true] %s927_s27  ;;  %s930_s19 = int_to_ptr.hbm [resolvable:$true] %s929_s19 }
  0x31   :  { %v191_v1 = vld [vmem:[%s1565_s3] sm:$0xff]  ;;  %v192_v2 = vld [vmem:[%s1565_s3 + $0x8] sm:$0xff]  ;;  %v193_v13 = vld [vmem:[%s1565_s3 + $0x10] sm:$0xff]  ;;  %481 = vmatpush.bf16.msrb.mxu0 %v472_v57 }
  0x32   :  { %v197_v4 = vrot.slane %v192_v2, 7  ;;  %v204_v5 = vrot.slane %v191_v1, 7  ;;  %v219_v6 = vpack.c.bf16 %v191_v1, %v191_v1  ;;  %v220_v8 = vpack.c.bf16 %v192_v2, %v192_v2  ;;  %v194_v18 = vld [vmem:[%s1565_s3 + $0x18] sm:$0xff]  ;;  %540 = vmatpush.bf16.msrb.mxu1 %v531_v59 }
  0x33   :  { %v304_v9 = vrot.slane %v191_v1, 1  ;;  %v305_v10 = vrot.slane %v192_v2, 1  ;;  %v198_v30 = vrot.slane %v194_v18, 7  ;;  %v206_v31 = vrot.slane %v193_v13, 7 }
  0x34   :  { %v229_v14 = vunpack.c.l.b16 %v219_v6  ;;  %v205_v16 = vsel %vm203_vm1, %v204_v5, %v197_v4  ;;  %v212_v17 = vsel %vm203_vm1, %v197_v4, %v204_v5  ;;  %v230_v19 = vunpack.c.l.b16 %v220_v8  ;;  %v1030_v6 = vld [vmem:[#allocation6] ss:$0 sm:$0xff] }
  0x35   :  { %v214_v20 = vpack.c.bf16 %v212_v17, %v212_v17  ;;  %v215_v21 = vpack.c.bf16 %v205_v16, %v205_v16  ;;  %v306_v22 = vsel %vm303_vm2, %v304_v9, %v305_v10  ;;  %v316_v23 = vsel %vm303_vm2, %v305_v10, %v304_v9  ;;  %v1029_v1 = vld [vmem:[%s1566_s28] ss:$0 sm:$0xff]  ;;  %s1307_s28 = smov 1  }
  0x36   :  { %v318_v24 = vpack.c.bf16 %v306_v22, %v306_v22  ;;  %v233_v25 = vpack.c.b16 %v230_v19, %v229_v14  ;;  %v319_v28 = vpack.c.bf16 %v316_v23, %v316_v23  ;;  %v307_v34 = vrot.slane %v193_v13, 1 }
  0x37   :  { %v269_v26 = vunpack.c.l.b16 %v214_v20  ;;  %v270_v27 = vunpack.c.l.b16 %v215_v21  ;;  %v308_v35 = vrot.slane %v194_v18, 1  ;;  %v207_v37 = vsel %vm203_vm1, %v206_v31, %v198_v30 }
  0x38   :  { %v328_v29 = vunpack.c.l.b16 %v318_v24  ;;  %946 = vmatmul.msk.bf16.vlgmr.msra.gmra.mxu0 %vm235_vm3, %v233_v25  ;;  %v329_v33 = vunpack.c.l.b16 %v319_v28  ;;  %v213_v38 = vsel %vm203_vm1, %v198_v30, %v206_v31  ;;  %v221_v39 = vpack.c.bf16 %v193_v13, %v193_v13 }
  0x39   :  { %v273_v32 = vpack.c.b16 %v270_v27, %v269_v26  ;;  %v222_v40 = vpack.c.bf16 %v194_v18, %v194_v18  ;;  %v309_v41 = vsel %vm303_vm2, %v307_v34, %v308_v35  ;;  %v317_v42 = vsel %vm303_vm2, %v308_v35, %v307_v34 }
  0x3a   :  { %v332_v36 = vpack.c.b16 %v329_v33, %v328_v29  ;;  %v216_v43 = vpack.c.bf16 %v213_v38, %v213_v38  ;;  %v217_v44 = vpack.c.bf16 %v207_v37, %v207_v37  ;;  %v231_v45 = vunpack.c.l.b16 %v221_v39 }
  0x3b   :  { %948 = vmatmul.msk.bf16.vlgmr.msra.gmra.mxu1 %vm235_vm3, %v273_v32  ;;  %v232_v46 = vunpack.c.l.b16 %v222_v40  ;;  %v320_v47 = vpack.c.bf16 %v309_v41, %v309_v41  ;;  %v321_v48 = vpack.c.bf16 %v317_v42, %v317_v42 }
  0x3c   :  { %950 = vmatmul.msk.bf16.vlgmr.msra.gmra.mxu2 %vm235_vm3, %v332_v36  ;;  %v271_v49 = vunpack.c.l.b16 %v216_v43  ;;  %v272_v50 = vunpack.c.l.b16 %v217_v44 }
  0x3d   :  { %v234_v51 = vpack.c.b16 %v232_v46, %v231_v45  ;;  %v330_v52 = vunpack.c.l.b16 %v320_v47  ;;  %v331_v53 = vunpack.c.l.b16 %v321_v48 }
  0x3e   :  { %v274_v54 = vpack.c.b16 %v272_v50, %v271_v49 }
  0x3f   :  { %v333_v55 = vpack.c.b16 %v331_v53, %v330_v52 }
  0x48   :  { %947 = vmatmul.msk.bf16.gmra.mxu0 %vm235_vm3, %v234_v51 }
  0x4b   :  { %949 = vmatmul.msk.bf16.gmra.mxu1 %vm235_vm3, %v274_v54 }
  0x4c   :  { %951 = vmatmul.msk.bf16.gmra.mxu2 %vm235_vm3, %v333_v55 }
  0xb5   :  { %v255_v62 = vpop.f32.mrf.mxu0 }
  0xb8   :  { %v293_v63 = vpop.f32.mrf.mxu1 }
  0xb9   :  { %v294_v0 = vadd.f32 %v293_v63, %v255_v62 }
  0xbd   :  { %v257_v5 = vpop.f32.mrf.mxu0 }
  0xbf   :  { %v352_v2 = vpop.f32.mrf.mxu2 }
  0xc0   :  { %v295_v3 = vpop.f32.mrf.mxu1  ;;  %v362_v4 = vadd.f32 %v352_v2, %v294_v0 }
  0xc1   :  { %v296_v9 = vadd.f32 %v295_v3, %v257_v5 }
  0xc2   :  { %v370_v7 = vmul.f32 %v1029_v1, %v362_v4 }
  0xc4   :  { %v378_v8 = vadd.f32 %v1030_v6, %v370_v7 }
  0xc5   :  { %v260_v15 = vpop.f32.mrf.mxu0 }
  0xc6   :  { %v382_v12 = vmax.f32 %v378_v8, 0.0 }
  0xc7   :  { %v354_v10 = vpop.f32.mrf.mxu2 }
  0xc8   :  { %v363_v11 = vadd.f32 %v354_v10, %v296_v9  ;;  %v298_v13 = vpop.f32.mrf.mxu1  ;;  %v409_v18 = vpack.c.bf16 %v382_v12, %v382_v12  ;;  %v394_v20 = vrot.slane %v382_v12, 6  ;;  %v494_v22 = vrot.slane %v382_v12, 2 }
  0xc9   :  { %v299_v17 = vadd.f32 %v298_v13, %v260_v15 }
  0xca   :  { %v371_v14 = vmul.f32 %v1029_v1, %v363_v11  ;;  %v419_v27 = vunpack.c.l.b16 %v409_v18 }
  0xcc   :  { %v379_v16 = vadd.f32 %v1030_v6, %v371_v14  ;;  %v603_v14 = vld [vmem:[#allocation12 + $0x4] sm:$0xf] }
  0xcd   :  { %v262_v39 = vpop.f32.mrf.mxu0 }
  0xce   :  { %v383_v19 = vmax.f32 %v379_v16, 0.0  ;;  %v613_v16 = vsel %vm432_vm4, %v603_v14, 0 }
  0xcf   :  { %v357_v21 = vpop.f32.mrf.mxu2  ;;  %622 = vmatpush.bf16.msrb.mxu2 %v613_v16  ;;  %v1007_v16 = vld [vmem:[%s1551_s10 + $0x10] sm:$0xff] }
  0xd0   :  { %v388_v23 = vrot.slane %v383_v19, 6  ;;  %v495_v24 = vrot.slane %v383_v19, 2  ;;  %v364_v25 = vadd.f32 %v357_v21, %v299_v17  ;;  %v410_v26 = vpack.c.bf16 %v383_v19, %v383_v19  ;;  %v300_v32 = vpop.f32.mrf.mxu1  ;;  %787 = vmatpush.bf16.msra.mxu1 %v1007_v16 }
  0xd1   :  { %v301_v44 = vadd.f32 %v300_v32, %v262_v39 }
  0xd2   :  { %v372_v28 = vmul.f32 %v1029_v1, %v364_v25  ;;  %v395_v29 = vsel %vm242_vm0, %v394_v20, %v388_v23  ;;  %v402_v30 = vsel %vm242_vm0, %v388_v23, %v394_v20  ;;  %v496_v31 = vsel %vm493_vm5, %v494_v22, %v495_v24  ;;  %v1031_v20 = vld [vmem:[#allocation9] ss:$0 sm:$0xff]  ;;  %v599_v23 = vld [vmem:[#allocation12] sm:$0xf] }
  0xd3   :  { %v420_v33 = vunpack.c.l.b16 %v410_v26  ;;  %v404_v34 = vpack.c.bf16 %v402_v30, %v402_v30  ;;  %v405_v35 = vpack.c.bf16 %v395_v29, %v395_v29  ;;  %v506_v36 = vsel %vm493_vm5, %v495_v24, %v494_v22  ;;  %v1032_v22 = vld [vmem:[#allocation11] ss:$0 sm:$0xff] }
  0xd4   :  { %v508_v37 = vpack.c.bf16 %v496_v31, %v496_v31  ;;  %v509_v38 = vpack.c.bf16 %v506_v36, %v506_v36  ;;  %v380_v40 = vadd.f32 %v1030_v6, %v372_v28  ;;  %v638_v25 = vsel %vm432_vm4, %v599_v23, 0  ;;  %v1033_v23 = vld [vmem:[#allocation14] ss:$0 sm:$0xff] }
  0xd5   :  { %v423_v41 = vpack.c.b16 %v420_v33, %v419_v27  ;;  %v459_v42 = vunpack.c.l.b16 %v404_v34  ;;  %v460_v43 = vunpack.c.l.b16 %v405_v35  ;;  %647 = vmatpush.bf16.msrb.mxu3 %v638_v25 }
  0xd6   :  { %v518_v45 = vunpack.c.l.b16 %v508_v37  ;;  %v519_v46 = vunpack.c.l.b16 %v509_v38  ;;  %v384_v51 = vmax.f32 %v380_v40, 0.0 }
  0xd7   :  { %952 = vmatmul.msk.bf16.vlgmr.msra.gmra.mxu3 %vm425_vm6, %v423_v41  ;;  %v359_v47 = vpop.f32.mrf.mxu2  ;;  %v463_v48 = vpack.c.b16 %v460_v43, %v459_v42  ;;  %v663_v41 = vld [vmem:[#allocation12 + $0x8] sm:$0xf] }
  0xd8   :  { %v365_v49 = vadd.f32 %v359_v47, %v301_v44  ;;  %v522_v50 = vpack.c.b16 %v519_v46, %v518_v45  ;;  %v411_v54 = vpack.c.bf16 %v384_v51, %v384_v51  ;;  %v396_v56 = vrot.slane %v384_v51, 6 }
  0xd9   :  { %954 = vmatmul.msk.bf16.vlgmr.msrb.gmra.mxu0 %vm425_vm6, %v463_v48  ;;  %v497_v57 = vrot.slane %v384_v51, 2  ;;  %v673_v42 = vsel %vm432_vm4, %v663_v41, 0 }
  0xda   :  { %v373_v52 = vmul.f32 %v1029_v1, %v365_v49  ;;  %956 = vmatmul.msk.bf16.vlgmr.msrb.gmra.mxu1 %vm425_vm6, %v522_v50  ;;  %v421_v61 = vunpack.c.l.b16 %v411_v54  ;;  %682 = vmatpush.bf16.msra.mxu2 %v673_v42 }
  0xdc   :  { %v381_v53 = vadd.f32 %v1030_v6, %v373_v52 }
  0xde   :  { %v385_v55 = vmax.f32 %v381_v53, 0.0 }
  0xe0   :  { %v389_v58 = vrot.slane %v385_v55, 6  ;;  %v498_v59 = vrot.slane %v385_v55, 2  ;;  %v412_v60 = vpack.c.bf16 %v385_v55, %v385_v55 }
  0xe2   :  { %v422_v62 = vunpack.c.l.b16 %v412_v60  ;;  %v397_v63 = vsel %vm242_vm0, %v396_v56, %v389_v58  ;;  %v403_v0 = vsel %vm242_vm0, %v389_v58, %v396_v56  ;;  %v499_v2 = vsel %vm493_vm5, %v497_v57, %v498_v59 }
  0xe3   :  { %v406_v3 = vpack.c.bf16 %v403_v0, %v403_v0  ;;  %v407_v1 = vpack.c.bf16 %v397_v63, %v397_v63  ;;  %v507_v4 = vsel %vm493_vm5, %v498_v59, %v497_v57  ;;  %v510_v5 = vpack.c.bf16 %v499_v2, %v499_v2 }
  0xe4   :  { %v424_v6 = vpack.c.b16 %v422_v62, %v421_v61  ;;  %v511_v7 = vpack.c.bf16 %v507_v4, %v507_v4 }
  0xe5   :  { %v461_v8 = vunpack.c.l.b16 %v406_v3  ;;  %v462_v9 = vunpack.c.l.b16 %v407_v1  ;;  %v520_v10 = vunpack.c.l.b16 %v510_v5 }
  0xe6   :  { %v521_v11 = vunpack.c.l.b16 %v511_v7 }
  0xe7   :  { %953 = vmatmul.msk.bf16.gmra.mxu3 %vm425_vm6, %v424_v6  ;;  %v464_v12 = vpack.c.b16 %v462_v9, %v461_v8 }
  0xe8   :  { %v523_v13 = vpack.c.b16 %v521_v11, %v520_v10 }
  0xe9   :  { %955 = vmatmul.msk.bf16.gmra.mxu0 %vm425_vm6, %v464_v12 }
  0xea   :  { %957 = vmatmul.msk.bf16.gmra.mxu1 %vm425_vm6, %v523_v13 }
 0x156   :  { %v483_v15 = vpop.f32.mrf.mxu0 }
 0x157   :  { %v542_v17 = vpop.f32.mrf.mxu1 }
 0x15a   :  { %v445_v18 = vpop.f32.mrf.mxu3 }
 0x15b   :  { %v484_v19 = vadd.f32 %v483_v15, %v445_v18  ;;  %v1005_v15 = vld [vmem:[%s1551_s10] sm:$0xff] }
 0x15c   :  { %759 = vmatpush.bf16.msra.mxu0 %v1005_v15  ;;  %v1039_v15 = vld [vmem:[%s1558_s17] ss:$0 sm:$0xff] }
 0x15d   :  { %v552_v21 = vadd.f32 %v542_v17, %v484_v19  ;;  %v1006_v17 = vld [vmem:[%s1551_s10 + $0x8] sm:$0xff]  ;;  %v1008_v19 = vld [vmem:[%s1551_s10 + $0x18] sm:$0xff] }
 0x15e   :  { %v485_v24 = vpop.f32.mrf.mxu0  ;;  %737 = vmatpush.bf16.msra.mxu3 %v1006_v17 }
 0x15f   :  { %v560_v26 = vmul.f32 %v1031_v20, %v552_v21  ;;  %v544_v27 = vpop.f32.mrf.mxu1 }
 0x161   :  { %v568_v28 = vadd.f32 %v1032_v22, %v560_v26  ;;  %v1034_v26 = vld [vmem:[#allocation15] ss:$0 sm:$0xff] }
 0x162   :  { %v447_v29 = vpop.f32.mrf.mxu3 }
 0x163   :  { %v572_v30 = vmax.f32 %v568_v28, 0.0  ;;  %v486_v31 = vadd.f32 %v485_v24, %v447_v29 }
 0x165   :  { %576 = vst.msk [vmem:[#allocation2] sm:$0xff] %vm425_vm6, %v572_v30  ;;  %v553_v32 = vadd.f32 %v544_v27, %v486_v31 }
 0x166   :  { %v488_v34 = vpop.f32.mrf.mxu0 }
 0x167   :  { %v561_v33 = vmul.f32 %v1031_v20, %v553_v32  ;;  %v547_v36 = vpop.f32.mrf.mxu1 }
 0x169   :  { %v569_v35 = vadd.f32 %v1032_v22, %v561_v33 }
 0x16a   :  { %v450_v37 = vpop.f32.mrf.mxu3 }
 0x16b   :  { %v573_v38 = vmax.f32 %v569_v35, 0.0  ;;  %v489_v39 = vadd.f32 %v488_v34, %v450_v37 }
 0x16d   :  { %577 = vst.msk [vmem:[#allocation2 + $0x8] sm:$0xff] %vm425_vm6, %v573_v38  ;;  %v554_v40 = vadd.f32 %v547_v36, %v489_v39 }
 0x16e   :  { %v490_v45 = vpop.f32.mrf.mxu0 }
 0x16f   :  { %v562_v43 = vmul.f32 %v1031_v20, %v554_v40  ;;  %v549_v49 = vpop.f32.mrf.mxu1 }
 0x171   :  { %v570_v44 = vadd.f32 %v1032_v22, %v562_v43 }
 0x172   :  { %v452_v46 = vpop.f32.mrf.mxu3 }
 0x173   :  { %v574_v47 = vmax.f32 %v570_v44, 0.0  ;;  %v491_v48 = vadd.f32 %v490_v45, %v452_v46 }
 0x174   :  { %v580_v54 = vld [vmem:[#allocation2] ss:$2 sm:$0xff]  ;;  %v584_v55 = vld [vmem:[#allocation2 + $0x1] ss:$2 sm:$0xff] }
 0x175   :  { %578 = vst.msk [vmem:[#allocation2 + $0x10] sm:$0xff] %vm425_vm6, %v574_v47  ;;  %v555_v50 = vadd.f32 %v549_v49, %v491_v48  ;;  %v587_v56 = vmax.f32 %v580_v54, %v584_v55  ;;  %v1010_v48 = vld [vmem:[%s1554_s13 + $0x8] sm:$0xff]  ;;  %v1009_v49 = vld [vmem:[%s1554_s13] sm:$0xff] }
 0x177   :  { %v563_v51 = vmul.f32 %v1031_v20, %v555_v50  ;;  %v591_v57 = vrot.slane %v587_v56, 7  ;;  %v600_v61 = vpack.c.bf16 %v587_v56, %v587_v56  ;;  %v654_v9 = vrot.slane %v587_v56, 1  ;;  %v1012_v50 = vld [vmem:[#allocation17 + $0x8] sm:$0xff] }
 0x178   :  { %911 = vmatpush.bf16.msrb.mxu0 %v1012_v50 }
 0x179   :  { %v571_v52 = vadd.f32 %v1032_v22, %v563_v51  ;;  %v597_v0 = vpack.c.bf16 %v591_v57, %v591_v57  ;;  %v606_v2 = vunpack.c.l.b16 %v600_v61  ;;  %v660_v11 = vpack.c.bf16 %v654_v9, %v654_v9  ;;  %v1036_v61 = vld [vmem:[%s1553_s12] ss:$0 sm:$0xff] }
 0x17b   :  { %v575_v53 = vmax.f32 %v571_v52, 0.0  ;;  %v631_v5 = vunpack.c.l.b16 %v597_v0  ;;  %v666_v13 = vunpack.c.l.b16 %v660_v11 }
 0x17d   :  { %579 = vst.msk [vmem:[#allocation2 + $0x18] sm:$0xff] %vm425_vm6, %v575_v53 }
 0x184   :  { %v582_v58 = vld [vmem:[#allocation2 + $0x10] ss:$2 sm:$0xff]  ;;  %v586_v59 = vld [vmem:[#allocation2 + $0x11] ss:$2 sm:$0xff] }
 0x185   :  { %v588_v60 = vmax.f32 %v582_v58, %v586_v59  ;;  %v1035_v58 = vld [vmem:[%s1552_s11] ss:$0 sm:$0xff] }
 0x187   :  { %v601_v62 = vpack.c.bf16 %v588_v60, %v588_v60  ;;  %v592_v63 = vrot.slane %v588_v60, 7  ;;  %v655_v8 = vrot.slane %v588_v60, 1 }
 0x189   :  { %v607_v3 = vunpack.c.l.b16 %v601_v62  ;;  %v598_v1 = vpack.c.bf16 %v592_v63, %v592_v63  ;;  %v661_v10 = vpack.c.bf16 %v655_v8, %v655_v8 }
 0x18b   :  { %v608_v4 = vpack.c.b16 %v607_v3, %v606_v2  ;;  %v632_v6 = vunpack.c.l.b16 %v598_v1  ;;  %v667_v12 = vunpack.c.l.b16 %v661_v10 }
 0x18d   :  { %958 = vmatmul.msk.bf16.vlgmr.msrb.gmra.mxu2 %vm425_vm6, %v608_v4  ;;  %v633_v7 = vpack.c.b16 %v632_v6, %v631_v5  ;;  %v668_v14 = vpack.c.b16 %v667_v12, %v666_v13  ;;  %v1011_v5 = vld [vmem:[#allocation17] sm:$0xff]  ;;  %v1037_v6 = vld [vmem:[%s1555_s14] ss:$0 sm:$0xff] }
 0x18e   :  { %816 = vmatpush.bf16.msrb.mxu2 %v1008_v19  ;;  %912 = vmatpush.bf16.msrb.mxu0 %v1011_v5 }
 0x18f   :  { %959 = vmatmul.msk.bf16.vlgmr.msrb.gmra.mxu3 %vm425_vm6, %v633_v7  ;;  %v1038_v7 = vld [vmem:[%s1556_s15] ss:$0 sm:$0xff]  ;;  %s1306_s15 = smov 16  }
 0x190   :  { %862 = vmatpush.bf16.msrb.mxu3 %v1010_v48 }
 0x194   :  { %863 = vmatpush.bf16.msrb.mxu3 %v1009_v49 }
 0x19d   :  { %960 = vmatmul.msk.bf16.vlgmr.msra.gmra.mxu2 %vm425_vm6, %v668_v14 }
 0x210   :  { %v624_v18 = vpop.f32.mrf.mxu2 }
 0x212   :  { %v649_v21 = vpop.f32.mrf.mxu3 }
 0x213   :  { %v650_v22 = vadd.f32 %v649_v21, %v624_v18 }
 0x218   :  { %v626_v20 = vpop.f32.mrf.mxu2 }
 0x21a   :  { %v651_v28 = vpop.f32.mrf.mxu3 }
 0x21b   :  { %v652_v30 = vadd.f32 %v651_v28, %v626_v20 }
 0x220   :  { %v684_v24 = vpop.f32.mrf.mxu2 }
 0x221   :  { %v689_v25 = vadd.f32 %v684_v24, %v650_v22 }
 0x223   :  { %v695_v27 = vmul.f32 %v1033_v23, %v689_v25 }
 0x225   :  { %v701_v29 = vadd.f32 %v1034_v26, %v695_v27 }
 0x227   :  { %v703_v31 = vmax.f32 %v701_v29, 0.0 }
 0x228   :  { %v686_v32 = vpop.f32.mrf.mxu2 }
 0x229   :  { %v690_v33 = vadd.f32 %v686_v32, %v652_v30  ;;  %706 = vst.msk [vmem:[#allocation2] sm:$0xff] %vm705_vm7, %v703_v31 }
 0x22b   :  { %v696_v34 = vmul.f32 %v1033_v23, %v690_v33 }
 0x22d   :  { %v702_v35 = vadd.f32 %v1034_v26, %v696_v34 }
 0x22f   :  { %v704_v36 = vmax.f32 %v702_v35, 0.0 }
 0x231   :  { %707 = vst.msk [vmem:[#allocation2 + $0x8] sm:$0xff] %vm705_vm7, %v704_v36 }
 0x238   :  { %v708_v37 = vld [vmem:[#allocation2] ss:$2 sm:$0xff]  ;;  %v709_v38 = vld [vmem:[#allocation2 + $0x1] ss:$2 sm:$0xff] }
 0x239   :  { %v710_v39 = vmax.f32 %v708_v37, %v709_v38 }
 0x23b   :  { %711 = vst.msk [vmem:[#allocation2] sm:$0xff] %vm705_vm7, %v710_v39 }
 0x242   :  { %v716_v40 = vld [vmem:[#allocation2 + $0x1] ss:$4 sm:$0x3]  ;;  %v712_v41 = vld [vmem:[#allocation2] ss:$4 sm:$0x3] }
 0x243   :  { %v717_v42 = vpack.c.bf16 %v716_v40, %v716_v40  ;;  %v713_v43 = vpack.c.bf16 %v712_v41, %v712_v41  ;;  %v766_v44 = vld [vmem:[#allocation2 + $0x2] ss:$4 sm:$0x3]  ;;  %v795_v45 = vld [vmem:[#allocation2 + $0x3] ss:$4 sm:$0x3] }
 0x244   :  { %v767_v46 = vpack.c.bf16 %v766_v44, %v766_v44  ;;  %v796_v47 = vpack.c.bf16 %v795_v45, %v795_v45 }
 0x245   :  { %967 = vmatmul.msk.bf16.vlgmr.msra.gmra.mxu3 %vm705_vm7, %v717_v42  ;;  %972 = vmatmul.msk.bf16.vlgmr.msra.gmra.mxu0 %vm705_vm7, %v713_v43 }
 0x246   :  { %979 = vmatmul.msk.bf16.vlgmr.msra.gmra.mxu1 %vm705_vm7, %v767_v46  ;;  %986 = vmatmul.msk.bf16.vlgmr.msrb.gmra.mxu2 %vm705_vm7, %v796_v47 }
 0x2c2   :  { %v761_v51 = vpop.f32.mrf.mxu0 }
 0x2c3   :  { %v789_v52 = vpop.f32.mrf.mxu1 }
 0x2c8   :  { %v739_v53 = vpop.f32.mrf.mxu3 }
 0x2c9   :  { %v762_v54 = vadd.f32 %v761_v51, %v739_v53  ;;  %v818_v55 = vpop.f32.mrf.mxu2 }
 0x2ca   :  { %v763_v56 = vpop.f32.mrf.mxu0 }
 0x2cb   :  { %v793_v57 = vadd.f32 %v789_v52, %v762_v54  ;;  %v791_v59 = vpop.f32.mrf.mxu1 }
 0x2cd   :  { %v822_v60 = vadd.f32 %v818_v55, %v793_v57 }
 0x2cf   :  { %v827_v62 = vmul.f32 %v1035_v58, %v822_v60 }
 0x2d0   :  { %v741_v63 = vpop.f32.mrf.mxu3 }
 0x2d1   :  { %v832_v0 = vadd.f32 %v1036_v61, %v827_v62  ;;  %v820_v2 = vpop.f32.mrf.mxu2 }
 0x2d3   :  { %v833_v3 = vmul.f32 0.01, %v832_v0 }
 0x2d5   :  { %v834_v1 = vmax.f32 %v832_v0, %v833_v3 }
 0x2d7   :  { %v835_v4 = vpack.c.bf16 %v834_v1, %v834_v1 }
 0x2d9   :  { %995 = vmatmul.msk.bf16.vlgmr.msrb.gmra.mxu3 %vm852_vm8, %v835_v4 }
 0x35c   :  { %v865_v8 = vpop.f32.mrf.mxu3 }
 0x35d   :  { %v873_v9 = vmul.f32 %v1037_v6, %v865_v8 }
 0x35f   :  { %v878_v10 = vadd.f32 %v1038_v7, %v873_v9 }
 0x361   :  { %v879_v11 = vmul.f32 0.01, %v878_v10 }
 0x363   :  { %v880_v12 = vmax.f32 %v878_v10, %v879_v11 }
 0x364   :  { %v867_v13 = vpop.f32.mrf.mxu3 }
 0x365   :  { %v881_v14 = vpack.c.bf16 %v880_v12, %v880_v12 }
 0x367   :  { %1004 = vmatmul.msk.bf16.vlgmr.msrb.gmra.mxu0 %vm852_vm8, %v881_v14 }
 0x3e4   :  { %v914_v16 = vpop.f32.mrf.mxu0 }
 0x3e5   :  { %v915_v17 = vadd.f32 %v1039_v15, %v914_v16 }
 0x3e7   :  { %v919_v18 = vrot.slane %v915_v17, 1  ;;  %921 = vst [vmem:[#allocation18] sm:$0x1] %v915_v17 }
 0x3e9   :  { %922 = vst [vmem:[#allocation18 + $0x1] sm:$0x1] %v919_v18 }
 0x3ea   :  { %935 = dma.vmem_to_hbm [thread:$0]  %s928_s27, 32, %s930_s19, [#allocation5], %s1306_s15, %s1306_s15, %s1307_s28  }
 0x3ec   :  { %v916_v19 = vpop.f32.mrf.mxu0 }
 0x3ed   :  { %1290 = dma.done.wait [#allocation5], 32  }
 0x3ee   :  { %1291 = vsyncadd [#allocation5], 4294967264 }
 0x3ef   :  { %940 = vsyncpa [#allocation4], 1 }
 0x3f0   :  { %941 = vsyncpa [#allocation7], 1 }
 0x3f1   :  { %942 = vsyncpa [#allocation10], 1 }
 0x3f2   :  { %943 = vsyncpa [#allocation13], 1 }
 0x3f3   :  { %944 = vsyncpa [#allocation16], 1 }
 0x3f4   :  { %945 = vsyncpa [#allocation5], 1 }

// kernel: tpu_custom_call.1
= control target key start
LH: loop header
LB: loop body
LE: loop exit
PB: predicated region body
PF: predicated region fallthrough
CT: control target
= control target key end

     0   :  { %s1541_s0 = inlined_call_operand.vmem [shape: f32[2,16,4], index: 0, kind: input, shape index: {}]   ;;  %s1542_s1 = inlined_call_operand.hbm [shape: bf16[3,4,8], index: 1, kind: input, shape index: {}]   ;;  %s1543_s2 = inlined_call_operand.vmem [shape: f32[1,8], index: 2, kind: input, shape index: {}]   ;;  %s1544_s3 = inlined_call_operand.hbm [shape: f32[1,8], index: 3, kind: input, shape index: {}]   ;;  %s1545_s4 = inlined_call_operand.hbm [shape: bf16[3,8,8], index: 4, kind: input, shape index: {}]   ;;  %s1546_s5 = inlined_call_operand.hbm [shape: f32[1,8], index: 5, kind: input, shape index: {}]   ;;  %s1547_s6 = inlined_call_operand.hbm [shape: f32[1,8], index: 6, kind: input, shape index: {}]   ;;  %s1548_s7 = inlined_call_operand.hbm [shape: bf16[3,8,16], index: 7, kind: input, shape index: {}]   ;;  %s1549_s8 = inlined_call_operand.hbm [shape: f32[1,16], index: 8, kind: input, shape index: {}]   ;;  %s1550_s9 = inlined_call_operand.hbm [shape: f32[1,16], index: 9, kind: input, shape index: {}]   ;;  %s1551_s10 = inlined_call_operand.vmem [shape: bf16[4,16,32], index: 10, kind: input, shape index: {}]   ;;  %s1552_s11 = inlined_call_operand.vmem [shape: f32[1,32], index: 11, kind: input, shape index: {}]   ;;  %s1553_s12 = inlined_call_operand.vmem [shape: f32[1,32], index: 12, kind: input, shape index: {}]   ;;  %s1554_s13 = inlined_call_operand.vmem [shape: bf16[32,32], index: 13, kind: input, shape index: {}]   ;;  %s1555_s14 = inlined_call_operand.vmem [shape: f32[1,32], index: 14, kind: input, shape index: {}]   ;;  %s1556_s15 = inlined_call_operand.vmem [shape: f32[1,32], index: 15, kind: input, shape index: {}]   ;;  %s1557_s16 = inlined_call_operand.hbm [shape: bf16[32,128], index: 16, kind: input, shape index: {}]   ;;  %s1558_s17 = inlined_call_operand.vmem [shape: f32[1,128], index: 17, kind: input, shape index: {}]   ;;  %s1559_s18 = inlined_call_operand.hbm [shape: f32[2,1,128], index: 18, kind: output, shape index: {}]  }
   0x1   :  { %1561 = sst [smem:[#allocation25_spill]] %s1541_s0 }
   0x2   :  { %1562 = sst [smem:[#allocation26_spill]] %s1542_s1 }
   0x3   :  { %1563 = sst [smem:[#allocation27_spill]] %s1543_s2 }
   0x4   :  { %23 = vsyncpa [#allocation4], 0 }
   0x5   :  { %24 = vsyncpa [#allocation7], 0 }
   0x6   :  { %25 = vsyncpa [#allocation10], 0 }
   0x7   :  { %26 = vsyncpa [#allocation13], 0 }
   0x8   :  { %27 = vsyncpa [#allocation16], 0  ;;  %s51_s29 = sshll.u32 %s1544_s3, 4  ;;  %s52_s29 = int_to_ptr.hbm [resolvable:$true] %s51_s29 }
   0x9   :  { %28 = vsyncpa [#allocation5], 0  ;;  %s1292_s30 = smov [#allocation6]   ;;  %s75_s20 = sshll.u32 %s1546_s5, 4  ;;  %s76_s20 = int_to_ptr.hbm [resolvable:$true] %s75_s20 }
   0xa   :  { %s53_s0 = sshll.u32 %s1292_s30, 4  ;;  %s1293_s21 = smov [#allocation9]   ;;  %s54_s0 = int_to_ptr.vmem [resolvable:$true] %s53_s0 }
   0xb   :  { %56 = dma.hbm_to_vmem [thread:$0]  %s52_s29, 16, %s54_s0, [#allocation7]  }
   0xc   :  { %s77_s22 = sshll.u32 %s1293_s21, 4  ;;  %s96_s24 = sshll.u32 %s1548_s7, 4  ;;  %s78_s22 = int_to_ptr.vmem [resolvable:$true] %s77_s22  ;;  %s97_s24 = int_to_ptr.hbm [resolvable:$true] %s96_s24 }
   0xd   :  { %80 = dma.hbm_to_vmem [thread:$0]  %s76_s20, 16, %s78_s22, [#allocation10]  }
   0xe   :  { %s1294_s3 = smov [#allocation12]   ;;  %s121_s28 = sshll.u32 %s1550_s9, 4  ;;  %s122_s28 = int_to_ptr.hbm [resolvable:$true] %s121_s28 }
   0xf   :  { %s98_s25 = sshll.u32 %s1294_s3, 4  ;;  %s1295_s30 = smov 64   ;;  %s99_s25 = int_to_ptr.vmem [resolvable:$true] %s98_s25 }
  0x10   :  { %s1296_s5 = smov 4   ;;  %s1297_s29 = smov [#allocation15]  }
  0x11   :  { %104 = dma.hbm_to_vmem [thread:$0]  %s97_s24, 192, %s99_s25, [#allocation13], %s1295_s30, %s1295_s30, %s1296_s5  }
  0x12   :  { %s123_s0 = sshll.u32 %s1297_s29, 4  ;;  %s1564_s7 = sld [smem:[#allocation26_spill]]  ;;  %s124_s0 = int_to_ptr.vmem [resolvable:$true] %s123_s0 }
  0x13   :  { %126 = dma.hbm_to_vmem [thread:$0]  %s122_s28, 16, %s124_s0, [#allocation16]  }
  0x14   :  { %s1298_s21 = smov [#allocation3]   ;;  %s61_s23 = sshll.u32 %s1545_s4, 4  ;;  %s62_s23 = int_to_ptr.hbm [resolvable:$true] %s61_s23 }
  0x15   :  { %s37_s22 = sshll.u32 %s1298_s21, 4  ;;  %s1299_s3 = smov 32   ;;  %s38_s22 = int_to_ptr.vmem [resolvable:$true] %s37_s22 }
  0x16   :  { %s1300_s26 = smov 2   ;;  %s1301_s24 = smov [#allocation8]  }
  0x17   :  { %s63_s25 = sshll.u32 %s1301_s24, 4  ;;  %s86_s19 = sshll.u32 %s1547_s6, 4  ;;  %s64_s25 = int_to_ptr.vmem [resolvable:$true] %s63_s25  ;;  %s87_s19 = int_to_ptr.hbm [resolvable:$true] %s86_s19 }
  0x18   :  { %s35_s20 = sshll.u32 %s1564_s7, 4  ;;  %s110_s4 = sshll.u32 %s1549_s8, 4  ;;  %s36_s20 = int_to_ptr.hbm [resolvable:$true] %s35_s20  ;;  %s111_s4 = int_to_ptr.hbm [resolvable:$true] %s110_s4 }
  0x19   :  { %43 = dma.hbm_to_vmem [thread:$0]  %s36_s20, 96, %s38_s22, [#allocation4], %s1299_s3, %s1299_s3, %s1300_s26  }
  0x1a   :  { %69 = dma.hbm_to_vmem [thread:$0]  %s62_s23, 192, %s64_s25, [#allocation7], %s1295_s30, %s1295_s30, %s1296_s5  }
  0x1b   :  { %s1302_s1 = smov [#allocation11]   ;;  %s1303_s20 = smov [#allocation14]  }
  0x1c   :  { %s88_s7 = sshll.u32 %s1302_s1, 4  ;;  %s112_s21 = sshll.u32 %s1303_s20, 4  ;;  %s89_s7 = int_to_ptr.vmem [resolvable:$true] %s88_s7  ;;  %s113_s21 = int_to_ptr.vmem [resolvable:$true] %s112_s21 }
  0x1d   :  { %91 = dma.hbm_to_vmem [thread:$0]  %s87_s19, 16, %s89_s7, [#allocation10]  }
  0x1e   :  { %s143_s6 = sshll.u32 %s1557_s16, 4  ;;  %s1304_s2 = smov [#allocation17]   ;;  %s144_s6 = int_to_ptr.hbm [resolvable:$true] %s143_s6 }
  0x1f   :  { %115 = dma.hbm_to_vmem [thread:$0]  %s111_s4, 16, %s113_s21, [#allocation13]  }
  0x20   :  { %s145_s23 = sshll.u32 %s1304_s2, 4  ;;  %s146_s23 = int_to_ptr.vmem [resolvable:$true] %s145_s23 }
  0x21   :  { %151 = dma.hbm_to_vmem [thread:$0]  %s144_s6, 256, %s146_s23, [#allocation16], %s1295_s30, %s1295_s30, %s1296_s5  }
  0x22   :  { %1280 = dma.done.wait [#allocation4], 96  }
  0x23   :  { %1281 = vsyncadd [#allocation4], 4294967200 }
  0x24   :  { %1282 = dma.done.wait [#allocation7], 208  }
  0x25   :  { %1283 = vsyncadd [#allocation7], 4294967088 }
  0x26   :  { %1284 = dma.done.wait [#allocation10], 32  }
  0x27   :  { %1285 = vsyncadd [#allocation10], 4294967264 }
  0x28   :  { %1286 = dma.done.wait [#allocation13], 208  }
  0x29   :  { %1287 = vsyncadd [#allocation13], 4294967088 }
  0x2a   :  { %1288 = dma.done.wait [#allocation16], 272  }
  0x2b   :  { %1289 = vsyncadd [#allocation16], 4294967024  ;;  %vm242_vm0 = vcmask 1041408   ;;  %v224_v0 = vld [vmem:[#allocation3 + $0x2] sm:$0x3]  ;;  %s1565_s3 = sld [smem:[#allocation25_spill]] }
  0x2c   :  { %vm203_vm1 = vcmask 1040384   ;;  %vm303_vm2 = vcmask 1046528   ;;  %v244_v3 = vsel %vm242_vm0, %v224_v0, 0  ;;  %v218_v7 = vld [vmem:[#allocation3] sm:$0x3]  ;;  %vm235_vm3 = vcmask 31744  }
  0x2d   :  { %253 = vmatpush.bf16.msra.mxu0 %v244_v3  ;;  %v282_v11 = vsel %vm242_vm0, %v218_v7, 0  ;;  %v323_v12 = vld [vmem:[#allocation3 + $0x4] sm:$0x3]  ;;  %v408_v56 = vld [vmem:[#allocation8] sm:$0xf]  ;;  %vm432_vm4 = vcmask 1043456  }
  0x2e   :  { %291 = vmatpush.bf16.msra.mxu1 %v282_v11  ;;  %v341_v15 = vsel %vm242_vm0, %v323_v12, 0  ;;  %v472_v57 = vsel %vm432_vm4, %v408_v56, 0  ;;  %v513_v58 = vld [vmem:[#allocation8 + $0x8] sm:$0xf]  ;;  %v414_v60 = vld [vmem:[#allocation8 + $0x4] sm:$0xf] }
  0x2f   :  { %350 = vmatpush.bf16.msra.mxu2 %v341_v15  ;;  %v531_v59 = vsel %vm432_vm4, %v513_v58, 0  ;;  %v434_v61 = vsel %vm432_vm4, %v414_v60, 0  ;;  %s1566_s28 = sld [smem:[#allocation27_spill]]  ;;  %vm493_vm5 = vcmask 1045504   ;;  %vm425_vm6 = vcmask 64512   ;;  %s1305_s25 = smov [#allocation18]  }
  0x30   :  { %443 = vmatpush.bf16.msra.mxu3 %v434_v61  ;;  %vm705_vm7 = vcmask 130048   ;;  %vm852_vm8 = vcmask 261120   ;;  %s927_s27 = sshll.u32 %s1305_s25, 4  ;;  %s929_s19 = sshll.u32 %s1559_s18, 4  ;;  %s928_s27 = int_to_ptr.vmem [resolvable:$true] %s927_s27  ;;  %s930_s19 = int_to_ptr.hbm [resolvable:$true] %s929_s19 }
  0x31   :  { %v191_v1 = vld [vmem:[%s1565_s3] sm:$0xff]  ;;  %v192_v2 = vld [vmem:[%s1565_s3 + $0x8] sm:$0xff]  ;;  %v193_v13 = vld [vmem:[%s1565_s3 + $0x10] sm:$0xff]  ;;  %481 = vmatpush.bf16.msrb.mxu0 %v472_v57 }
  0x32   :  { %v197_v4 = vrot.slane %v192_v2, 7  ;;  %v204_v5 = vrot.slane %v191_v1, 7  ;;  %v219_v6 = vpack.c.bf16 %v191_v1, %v191_v1  ;;  %v220_v8 = vpack.c.bf16 %v192_v2, %v192_v2  ;;  %v194_v18 = vld [vmem:[%s1565_s3 + $0x18] sm:$0xff]  ;;  %540 = vmatpush.bf16.msrb.mxu1 %v531_v59 }
  0x33   :  { %v304_v9 = vrot.slane %v191_v1, 1  ;;  %v305_v10 = vrot.slane %v192_v2, 1  ;;  %v198_v30 = vrot.slane %v194_v18, 7  ;;  %v206_v31 = vrot.slane %v193_v13, 7 }
  0x34   :  { %v229_v14 = vunpack.c.l.b16 %v219_v6  ;;  %v205_v16 = vsel %vm203_vm1, %v204_v5, %v197_v4  ;;  %v212_v17 = vsel %vm203_vm1, %v197_v4, %v204_v5  ;;  %v230_v19 = vunpack.c.l.b16 %v220_v8  ;;  %v1030_v6 = vld [vmem:[#allocation6] ss:$0 sm:$0xff] }
  0x35   :  { %v214_v20 = vpack.c.bf16 %v212_v17, %v212_v17  ;;  %v215_v21 = vpack.c.bf16 %v205_v16, %v205_v16  ;;  %v306_v22 = vsel %vm303_vm2, %v304_v9, %v305_v10  ;;  %v316_v23 = vsel %vm303_vm2, %v305_v10, %v304_v9  ;;  %v1029_v1 = vld [vmem:[%s1566_s28] ss:$0 sm:$0xff]  ;;  %s1307_s28 = smov 1  }
  0x36   :  { %v318_v24 = vpack.c.bf16 %v306_v22, %v306_v22  ;;  %v233_v25 = vpack.c.b16 %v230_v19, %v229_v14  ;;  %v319_v28 = vpack.c.bf16 %v316_v23, %v316_v23  ;;  %v307_v34 = vrot.slane %v193_v13, 1 }
  0x37   :  { %v269_v26 = vunpack.c.l.b16 %v214_v20  ;;  %v270_v27 = vunpack.c.l.b16 %v215_v21  ;;  %v308_v35 = vrot.slane %v194_v18, 1  ;;  %v207_v37 = vsel %vm203_vm1, %v206_v31, %v198_v30 }
  0x38   :  { %v328_v29 = vunpack.c.l.b16 %v318_v24  ;;  %946 = vmatmul.msk.bf16.vlgmr.msra.gmra.mxu0 %vm235_vm3, %v233_v25  ;;  %v329_v33 = vunpack.c.l.b16 %v319_v28  ;;  %v213_v38 = vsel %vm203_vm1, %v198_v30, %v206_v31  ;;  %v221_v39 = vpack.c.bf16 %v193_v13, %v193_v13 }
  0x39   :  { %v273_v32 = vpack.c.b16 %v270_v27, %v269_v26  ;;  %v222_v40 = vpack.c.bf16 %v194_v18, %v194_v18  ;;  %v309_v41 = vsel %vm303_vm2, %v307_v34, %v308_v35  ;;  %v317_v42 = vsel %vm303_vm2, %v308_v35, %v307_v34 }
  0x3a   :  { %v332_v36 = vpack.c.b16 %v329_v33, %v328_v29  ;;  %v216_v43 = vpack.c.bf16 %v213_v38, %v213_v38  ;;  %v217_v44 = vpack.c.bf16 %v207_v37, %v207_v37  ;;  %v231_v45 = vunpack.c.l.b16 %v221_v39 }
  0x3b   :  { %948 = vmatmul.msk.bf16.vlgmr.msra.gmra.mxu1 %vm235_vm3, %v273_v32  ;;  %v232_v46 = vunpack.c.l.b16 %v222_v40  ;;  %v320_v47 = vpack.c.bf16 %v309_v41, %v309_v41  ;;  %v321_v48 = vpack.c.bf16 %v317_v42, %v317_v42 }
  0x3c   :  { %950 = vmatmul.msk.bf16.vlgmr.msra.gmra.mxu2 %vm235_vm3, %v332_v36  ;;  %v271_v49 = vunpack.c.l.b16 %v216_v43  ;;  %v272_v50 = vunpack.c.l.b16 %v217_v44 }
  0x3d   :  { %v234_v51 = vpack.c.b16 %v232_v46, %v231_v45  ;;  %v330_v52 = vunpack.c.l.b16 %v320_v47  ;;  %v331_v53 = vunpack.c.l.b16 %v321_v48 }
  0x3e   :  { %v274_v54 = vpack.c.b16 %v272_v50, %v271_v49 }
  0x3f   :  { %v333_v55 = vpack.c.b16 %v331_v53, %v330_v52 }
  0x48   :  { %947 = vmatmul.msk.bf16.gmra.mxu0 %vm235_vm3, %v234_v51 }
  0x4b   :  { %949 = vmatmul.msk.bf16.gmra.mxu1 %vm235_vm3, %v274_v54 }
  0x4c   :  { %951 = vmatmul.msk.bf16.gmra.mxu2 %vm235_vm3, %v333_v55 }
  0xb5   :  { %v255_v62 = vpop.f32.mrf.mxu0 }
  0xb8   :  { %v293_v63 = vpop.f32.mrf.mxu1 }
  0xb9   :  { %v294_v0 = vadd.f32 %v293_v63, %v255_v62 }
  0xbd   :  { %v257_v5 = vpop.f32.mrf.mxu0 }
  0xbf   :  { %v352_v2 = vpop.f32.mrf.mxu2 }
  0xc0   :  { %v295_v3 = vpop.f32.mrf.mxu1  ;;  %v362_v4 = vadd.f32 %v352_v2, %v294_v0 }
  0xc1   :  { %v296_v9 = vadd.f32 %v295_v3, %v257_v5 }
  0xc2   :  { %v370_v7 = vmul.f32 %v1029_v1, %v362_v4 }
  0xc4   :  { %v378_v8 = vadd.f32 %v1030_v6, %v370_v7 }
  0xc5   :  { %v260_v15 = vpop.f32.mrf.mxu0 }
  0xc6   :  { %v382_v12 = vmax.f32 %v378_v8, 0.0 }
  0xc7   :  { %v354_v10 = vpop.f32.mrf.mxu2 }
  0xc8   :  { %v363_v11 = vadd.f32 %v354_v10, %v296_v9  ;;  %v298_v13 = vpop.f32.mrf.mxu1  ;;  %v409_v18 = vpack.c.bf16 %v382_v12, %v382_v12  ;;  %v394_v20 = vrot.slane %v382_v12, 6  ;;  %v494_v22 = vrot.slane %v382_v12, 2 }
  0xc9   :  { %v299_v17 = vadd.f32 %v298_v13, %v260_v15 }
  0xca   :  { %v371_v14 = vmul.f32 %v1029_v1, %v363_v11  ;;  %v419_v27 = vunpack.c.l.b16 %v409_v18 }
  0xcc   :  { %v379_v16 = vadd.f32 %v1030_v6, %v371_v14  ;;  %v603_v14 = vld [vmem:[#allocation12 + $0x4] sm:$0xf] }
  0xcd   :  { %v262_v39 = vpop.f32.mrf.mxu0 }
  0xce   :  { %v383_v19 = vmax.f32 %v379_v16, 0.0  ;;  %v613_v16 = vsel %vm432_vm4, %v603_v14, 0 }
  0xcf   :  { %v357_v21 = vpop.f32.mrf.mxu2  ;;  %622 = vmatpush.bf16.msrb.mxu2 %v613_v16  ;;  %v1007_v16 = vld [vmem:[%s1551_s10 + $0x10] sm:$0xff] }
  0xd0   :  { %v388_v23 = vrot.slane %v383_v19, 6  ;;  %v495_v24 = vrot.slane %v383_v19, 2  ;;  %v364_v25 = vadd.f32 %v357_v21, %v299_v17  ;;  %v410_v26 = vpack.c.bf16 %v383_v19, %v383_v19  ;;  %v300_v32 = vpop.f32.mrf.mxu1  ;;  %787 = vmatpush.bf16.msra.mxu1 %v1007_v16 }
  0xd1   :  { %v301_v44 = vadd.f32 %v300_v32, %v262_v39 }
  0xd2   :  { %v372_v28 = vmul.f32 %v1029_v1, %v364_v25  ;;  %v395_v29 = vsel %vm242_vm0, %v394_v20, %v388_v23  ;;  %v402_v30 = vsel %vm242_vm0, %v388_v23, %v394_v20  ;;  %v496_v31 = vsel %vm493_vm5, %v494_v22, %v495_v24  ;;  %v1031_v20 = vld [vmem:[#allocation9] ss:$0 sm:$0xff]  ;;  %v599_v23 = vld [vmem:[#allocation12] sm:$0xf] }
  0xd3   :  { %v420_v33 = vunpack.c.l.b16 %v410_v26  ;;  %v404_v34 = vpack.c.bf16 %v402_v30, %v402_v30  ;;  %v405_v35 = vpack.c.bf16 %v395_v29, %v395_v29  ;;  %v506_v36 = vsel %vm493_vm5, %v495_v24, %v494_v22  ;;  %v1032_v22 = vld [vmem:[#allocation11] ss:$0 sm:$0xff] }
  0xd4   :  { %v508_v37 = vpack.c.bf16 %v496_v31, %v496_v31  ;;  %v509_v38 = vpack.c.bf16 %v506_v36, %v506_v36  ;;  %v380_v40 = vadd.f32 %v1030_v6, %v372_v28  ;;  %v638_v25 = vsel %vm432_vm4, %v599_v23, 0  ;;  %v1033_v23 = vld [vmem:[#allocation14] ss:$0 sm:$0xff] }
  0xd5   :  { %v423_v41 = vpack.c.b16 %v420_v33, %v419_v27  ;;  %v459_v42 = vunpack.c.l.b16 %v404_v34  ;;  %v460_v43 = vunpack.c.l.b16 %v405_v35  ;;  %647 = vmatpush.bf16.msrb.mxu3 %v638_v25 }
  0xd6   :  { %v518_v45 = vunpack.c.l.b16 %v508_v37  ;;  %v519_v46 = vunpack.c.l.b16 %v509_v38  ;;  %v384_v51 = vmax.f32 %v380_v40, 0.0 }
  0xd7   :  { %952 = vmatmul.msk.bf16.vlgmr.msra.gmra.mxu3 %vm425_vm6, %v423_v41  ;;  %v359_v47 = vpop.f32.mrf.mxu2  ;;  %v463_v48 = vpack.c.b16 %v460_v43, %v459_v42  ;;  %v663_v41 = vld [vmem:[#allocation12 + $0x8] sm:$0xf] }
  0xd8   :  { %v365_v49 = vadd.f32 %v359_v47, %v301_v44  ;;  %v522_v50 = vpack.c.b16 %v519_v46, %v518_v45  ;;  %v411_v54 = vpack.c.bf16 %v384_v51, %v384_v51  ;;  %v396_v56 = vrot.slane %v384_v51, 6 }
  0xd9   :  { %954 = vmatmul.msk.bf16.vlgmr.msrb.gmra.mxu0 %vm425_vm6, %v463_v48  ;;  %v497_v57 = vrot.slane %v384_v51, 2  ;;  %v673_v42 = vsel %vm432_vm4, %v663_v41, 0 }
  0xda   :  { %v373_v52 = vmul.f32 %v1029_v1, %v365_v49  ;;  %956 = vmatmul.msk.bf16.vlgmr.msrb.gmra.mxu1 %vm425_vm6, %v522_v50  ;;  %v421_v61 = vunpack.c.l.b16 %v411_v54  ;;  %682 = vmatpush.bf16.msra.mxu2 %v673_v42 }
  0xdc   :  { %v381_v53 = vadd.f32 %v1030_v6, %v373_v52 }
  0xde   :  { %v385_v55 = vmax.f32 %v381_v53, 0.0 }
  0xe0   :  { %v389_v58 = vrot.slane %v385_v55, 6  ;;  %v498_v59 = vrot.slane %v385_v55, 2  ;;  %v412_v60 = vpack.c.bf16 %v385_v55, %v385_v55 }
  0xe2   :  { %v422_v62 = vunpack.c.l.b16 %v412_v60  ;;  %v397_v63 = vsel %vm242_vm0, %v396_v56, %v389_v58  ;;  %v403_v0 = vsel %vm242_vm0, %v389_v58, %v396_v56  ;;  %v499_v2 = vsel %vm493_vm5, %v497_v57, %v498_v59 }
  0xe3   :  { %v406_v3 = vpack.c.bf16 %v403_v0, %v403_v0  ;;  %v407_v1 = vpack.c.bf16 %v397_v63, %v397_v63  ;;  %v507_v4 = vsel %vm493_vm5, %v498_v59, %v497_v57  ;;  %v510_v5 = vpack.c.bf16 %v499_v2, %v499_v2 }
  0xe4   :  { %v424_v6 = vpack.c.b16 %v422_v62, %v421_v61  ;;  %v511_v7 = vpack.c.bf16 %v507_v4, %v507_v4 }
  0xe5   :  { %v461_v8 = vunpack.c.l.b16 %v406_v3  ;;  %v462_v9 = vunpack.c.l.b16 %v407_v1  ;;  %v520_v10 = vunpack.c.l.b16 %v510_v5 }
  0xe6   :  { %v521_v11 = vunpack.c.l.b16 %v511_v7 }
  0xe7   :  { %953 = vmatmul.msk.bf16.gmra.mxu3 %vm425_vm6, %v424_v6  ;;  %v464_v12 = vpack.c.b16 %v462_v9, %v461_v8 }
  0xe8   :  { %v523_v13 = vpack.c.b16 %v521_v11, %v520_v10 }
  0xe9   :  { %955 = vmatmul.msk.bf16.gmra.mxu0 %vm425_vm6, %v464_v12 }
  0xea   :  { %957 = vmatmul.msk.bf16.gmra.mxu1 %vm425_vm6, %v523_v13 }
 0x156   :  { %v483_v15 = vpop.f32.mrf.mxu0 }
 0x157   :  { %v542_v17 = vpop.f32.mrf.mxu1 }
 0x15a   :  { %v445_v18 = vpop.f32.mrf.mxu3 }
 0x15b   :  { %v484_v19 = vadd.f32 %v483_v15, %v445_v18  ;;  %v1005_v15 = vld [vmem:[%s1551_s10] sm:$0xff] }
 0x15c   :  { %759 = vmatpush.bf16.msra.mxu0 %v1005_v15  ;;  %v1039_v15 = vld [vmem:[%s1558_s17] ss:$0 sm:$0xff] }
 0x15d   :  { %v552_v21 = vadd.f32 %v542_v17, %v484_v19  ;;  %v1006_v17 = vld [vmem:[%s1551_s10 + $0x8] sm:$0xff]  ;;  %v1008_v19 = vld [vmem:[%s1551_s10 + $0x18] sm:$0xff] }
 0x15e   :  { %v485_v24 = vpop.f32.mrf.mxu0  ;;  %737 = vmatpush.bf16.msra.mxu3 %v1006_v17 }
 0x15f   :  { %v560_v26 = vmul.f32 %v1031_v20, %v552_v21  ;;  %v544_v27 = vpop.f32.mrf.mxu1 }
 0x161   :  { %v568_v28 = vadd.f32 %v1032_v22, %v560_v26  ;;  %v1034_v26 = vld [vmem:[#allocation15] ss:$0 sm:$0xff] }
 0x162   :  { %v447_v29 = vpop.f32.mrf.mxu3 }
 0x163   :  { %v572_v30 = vmax.f32 %v568_v28, 0.0  ;;  %v486_v31 = vadd.f32 %v485_v24, %v447_v29 }
 0x165   :  { %576 = vst.msk [vmem:[#allocation2] sm:$0xff] %vm425_vm6, %v572_v30  ;;  %v553_v32 = vadd.f32 %v544_v27, %v486_v31 }
 0x166   :  { %v488_v34 = vpop.f32.mrf.mxu0 }
 0x167   :  { %v561_v33 = vmul.f32 %v1031_v20, %v553_v32  ;;  %v547_v36 = vpop.f32.mrf.mxu1 }
 0x169   :  { %v569_v35 = vadd.f32 %v1032_v22, %v561_v33 }
 0x16a   :  { %v450_v37 = vpop.f32.mrf.mxu3 }
 0x16b   :  { %v573_v38 = vmax.f32 %v569_v35, 0.0  ;;  %v489_v39 = vadd.f32 %v488_v34, %v450_v37 }
 0x16d   :  { %577 = vst.msk [vmem:[#allocation2 + $0x8] sm:$0xff] %vm425_vm6, %v573_v38  ;;  %v554_v40 = vadd.f32 %v547_v36, %v489_v39 }
 0x16e   :  { %v490_v45 = vpop.f32.mrf.mxu0 }
 0x16f   :  { %v562_v43 = vmul.f32 %v1031_v20, %v554_v40  ;;  %v549_v49 = vpop.f32.mrf.mxu1 }
 0x171   :  { %v570_v44 = vadd.f32 %v1032_v22, %v562_v43 }
 0x172   :  { %v452_v46 = vpop.f32.mrf.mxu3 }
 0x173   :  { %v574_v47 = vmax.f32 %v570_v44, 0.0  ;;  %v491_v48 = vadd.f32 %v490_v45, %v452_v46 }
 0x174   :  { %v580_v54 = vld [vmem:[#allocation2] ss:$2 sm:$0xff]  ;;  %v584_v55 = vld [vmem:[#allocation2 + $0x1] ss:$2 sm:$0xff] }
 0x175   :  { %578 = vst.msk [vmem:[#allocation2 + $0x10] sm:$0xff] %vm425_vm6, %v574_v47  ;;  %v555_v50 = vadd.f32 %v549_v49, %v491_v48  ;;  %v587_v56 = vmax.f32 %v580_v54, %v584_v55  ;;  %v1010_v48 = vld [vmem:[%s1554_s13 + $0x8] sm:$0xff]  ;;  %v1009_v49 = vld [vmem:[%s1554_s13] sm:$0xff] }
 0x177   :  { %v563_v51 = vmul.f32 %v1031_v20, %v555_v50  ;;  %v591_v57 = vrot.slane %v587_v56, 7  ;;  %v600_v61 = vpack.c.bf16 %v587_v56, %v587_v56  ;;  %v654_v9 = vrot.slane %v587_v56, 1  ;;  %v1012_v50 = vld [vmem:[#allocation17 + $0x8] sm:$0xff] }
 0x178   :  { %911 = vmatpush.bf16.msrb.mxu0 %v1012_v50 }
 0x179   :  { %v571_v52 = vadd.f32 %v1032_v22, %v563_v51  ;;  %v597_v0 = vpack.c.bf16 %v591_v57, %v591_v57  ;;  %v606_v2 = vunpack.c.l.b16 %v600_v61  ;;  %v660_v11 = vpack.c.bf16 %v654_v9, %v654_v9  ;;  %v1036_v61 = vld [vmem:[%s1553_s12] ss:$0 sm:$0xff] }
 0x17b   :  { %v575_v53 = vmax.f32 %v571_v52, 0.0  ;;  %v631_v5 = vunpack.c.l.b16 %v597_v0  ;;  %v666_v13 = vunpack.c.l.b16 %v660_v11 }
 0x17d   :  { %579 = vst.msk [vmem:[#allocation2 + $0x18] sm:$0xff] %vm425_vm6, %v575_v53 }
 0x184   :  { %v582_v58 = vld [vmem:[#allocation2 + $0x10] ss:$2 sm:$0xff]  ;;  %v586_v59 = vld [vmem:[#allocation2 + $0x11] ss:$2 sm:$0xff] }
 0x185   :  { %v588_v60 = vmax.f32 %v582_v58, %v586_v59  ;;  %v1035_v58 = vld [vmem:[%s1552_s11] ss:$0 sm:$0xff] }
 0x187   :  { %v601_v62 = vpack.c.bf16 %v588_v60, %v588_v60  ;;  %v592_v63 = vrot.slane %v588_v60, 7  ;;  %v655_v8 = vrot.slane %v588_v60, 1 }
 0x189   :  { %v607_v3 = vunpack.c.l.b16 %v601_v62  ;;  %v598_v1 = vpack.c.bf16 %v592_v63, %v592_v63  ;;  %v661_v10 = vpack.c.bf16 %v655_v8, %v655_v8 }
 0x18b   :  { %v608_v4 = vpack.c.b16 %v607_v3, %v606_v2  ;;  %v632_v6 = vunpack.c.l.b16 %v598_v1  ;;  %v667_v12 = vunpack.c.l.b16 %v661_v10 }
 0x18d   :  { %958 = vmatmul.msk.bf16.vlgmr.msrb.gmra.mxu2 %vm425_vm6, %v608_v4  ;;  %v633_v7 = vpack.c.b16 %v632_v6, %v631_v5  ;;  %v668_v14 = vpack.c.b16 %v667_v12, %v666_v13  ;;  %v1011_v5 = vld [vmem:[#allocation17] sm:$0xff]  ;;  %v1037_v6 = vld [vmem:[%s1555_s14] ss:$0 sm:$0xff] }
 0x18e   :  { %816 = vmatpush.bf16.msrb.mxu2 %v1008_v19  ;;  %912 = vmatpush.bf16.msrb.mxu0 %v1011_v5 }
 0x18f   :  { %959 = vmatmul.msk.bf16.vlgmr.msrb.gmra.mxu3 %vm425_vm6, %v633_v7  ;;  %v1038_v7 = vld [vmem:[%s1556_s15] ss:$0 sm:$0xff]  ;;  %s1306_s15 = smov 16  }
 0x190   :  { %862 = vmatpush.bf16.msrb.mxu3 %v1010_v48 }
 0x194   :  { %863 = vmatpush.bf16.msrb.mxu3 %v1009_v49 }
 0x19d   :  { %960 = vmatmul.msk.bf16.vlgmr.msra.gmra.mxu2 %vm425_vm6, %v668_v14 }
 0x210   :  { %v624_v18 = vpop.f32.mrf.mxu2 }
 0x212   :  { %v649_v21 = vpop.f32.mrf.mxu3 }
 0x213   :  { %v650_v22 = vadd.f32 %v649_v21, %v624_v18 }
 0x218   :  { %v626_v20 = vpop.f32.mrf.mxu2 }
 0x21a   :  { %v651_v28 = vpop.f32.mrf.mxu3 }
 0x21b   :  { %v652_v30 = vadd.f32 %v651_v28, %v626_v20 }
 0x220   :  { %v684_v24 = vpop.f32.mrf.mxu2 }
 0x221   :  { %v689_v25 = vadd.f32 %v684_v24, %v650_v22 }
 0x223   :  { %v695_v27 = vmul.f32 %v1033_v23, %v689_v25 }
 0x225   :  { %v701_v29 = vadd.f32 %v1034_v26, %v695_v27 }
 0x227   :  { %v703_v31 = vmax.f32 %v701_v29, 0.0 }
 0x228   :  { %v686_v32 = vpop.f32.mrf.mxu2 }
 0x229   :  { %v690_v33 = vadd.f32 %v686_v32, %v652_v30  ;;  %706 = vst.msk [vmem:[#allocation2] sm:$0xff] %vm705_vm7, %v703_v31 }
 0x22b   :  { %v696_v34 = vmul.f32 %v1033_v23, %v690_v33 }
 0x22d   :  { %v702_v35 = vadd.f32 %v1034_v26, %v696_v34 }
 0x22f   :  { %v704_v36 = vmax.f32 %v702_v35, 0.0 }
 0x231   :  { %707 = vst.msk [vmem:[#allocation2 + $0x8] sm:$0xff] %vm705_vm7, %v704_v36 }
 0x238   :  { %v708_v37 = vld [vmem:[#allocation2] ss:$2 sm:$0xff]  ;;  %v709_v38 = vld [vmem:[#allocation2 + $0x1] ss:$2 sm:$0xff] }
 0x239   :  { %v710_v39 = vmax.f32 %v708_v37, %v709_v38 }
 0x23b   :  { %711 = vst.msk [vmem:[#allocation2] sm:$0xff] %vm705_vm7, %v710_v39 }
 0x242   :  { %v716_v40 = vld [vmem:[#allocation2 + $0x1] ss:$4 sm:$0x3]  ;;  %v712_v41 = vld [vmem:[#allocation2] ss:$4 sm:$0x3] }
 0x243   :  { %v717_v42 = vpack.c.bf16 %v716_v40, %v716_v40  ;;  %v713_v43 = vpack.c.bf16 %v712_v41, %v712_v41  ;;  %v766_v44 = vld [vmem:[#allocation2 + $0x2] ss:$4 sm:$0x3]  ;;  %v795_v45 = vld [vmem:[#allocation2 + $0x3] ss:$4 sm:$0x3] }
 0x244   :  { %v767_v46 = vpack.c.bf16 %v766_v44, %v766_v44  ;;  %v796_v47 = vpack.c.bf16 %v795_v45, %v795_v45 }
 0x245   :  { %967 = vmatmul.msk.bf16.vlgmr.msra.gmra.mxu3 %vm705_vm7, %v717_v42  ;;  %972 = vmatmul.msk.bf16.vlgmr.msra.gmra.mxu0 %vm705_vm7, %v713_v43 }
 0x246   :  { %979 = vmatmul.msk.bf16.vlgmr.msra.gmra.mxu1 %vm705_vm7, %v767_v46  ;;  %986 = vmatmul.msk.bf16.vlgmr.msrb.gmra.mxu2 %vm705_vm7, %v796_v47 }
 0x2c2   :  { %v761_v51 = vpop.f32.mrf.mxu0 }
 0x2c3   :  { %v789_v52 = vpop.f32.mrf.mxu1 }
 0x2c8   :  { %v739_v53 = vpop.f32.mrf.mxu3 }
 0x2c9   :  { %v762_v54 = vadd.f32 %v761_v51, %v739_v53  ;;  %v818_v55 = vpop.f32.mrf.mxu2 }
 0x2ca   :  { %v763_v56 = vpop.f32.mrf.mxu0 }
 0x2cb   :  { %v793_v57 = vadd.f32 %v789_v52, %v762_v54  ;;  %v791_v59 = vpop.f32.mrf.mxu1 }
 0x2cd   :  { %v822_v60 = vadd.f32 %v818_v55, %v793_v57 }
 0x2cf   :  { %v827_v62 = vmul.f32 %v1035_v58, %v822_v60 }
 0x2d0   :  { %v741_v63 = vpop.f32.mrf.mxu3 }
 0x2d1   :  { %v832_v0 = vadd.f32 %v1036_v61, %v827_v62  ;;  %v820_v2 = vpop.f32.mrf.mxu2 }
 0x2d3   :  { %v833_v3 = vmul.f32 0.01, %v832_v0 }
 0x2d5   :  { %v834_v1 = vmax.f32 %v832_v0, %v833_v3 }
 0x2d7   :  { %v835_v4 = vpack.c.bf16 %v834_v1, %v834_v1 }
 0x2d9   :  { %995 = vmatmul.msk.bf16.vlgmr.msrb.gmra.mxu3 %vm852_vm8, %v835_v4 }
 0x35c   :  { %v865_v8 = vpop.f32.mrf.mxu3 }
 0x35d   :  { %v873_v9 = vmul.f32 %v1037_v6, %v865_v8 }
 0x35f   :  { %v878_v10 = vadd.f32 %v1038_v7, %v873_v9 }
 0x361   :  { %v879_v11 = vmul.f32 0.01, %v878_v10 }
 0x363   :  { %v880_v12 = vmax.f32 %v878_v10, %v879_v11 }
 0x364   :  { %v867_v13 = vpop.f32.mrf.mxu3 }
 0x365   :  { %v881_v14 = vpack.c.bf16 %v880_v12, %v880_v12 }
 0x367   :  { %1004 = vmatmul.msk.bf16.vlgmr.msrb.gmra.mxu0 %vm852_vm8, %v881_v14 }
 0x3e4   :  { %v914_v16 = vpop.f32.mrf.mxu0 }
 0x3e5   :  { %v915_v17 = vadd.f32 %v1039_v15, %v914_v16 }
 0x3e7   :  { %v919_v18 = vrot.slane %v915_v17, 1  ;;  %921 = vst [vmem:[#allocation18] sm:$0x1] %v915_v17 }
 0x3e9   :  { %922 = vst [vmem:[#allocation18 + $0x1] sm:$0x1] %v919_v18 }
 0x3ea   :  { %935 = dma.vmem_to_hbm [thread:$0]  %s928_s27, 32, %s930_s19, [#allocation5], %s1306_s15, %s1306_s15, %s1307_s28  }
 0x3ec   :  { %v916_v19 = vpop.f32.mrf.mxu0 }
 0x3ed   :  { %1290 = dma.done.wait [#allocation5], 32  }
 0x3ee   :  { %1291 = vsyncadd [#allocation5], 4294967264 }
 0x3ef   :  { %940 = vsyncpa [#allocation4], 1 }
 0x3f0   :  { %941 = vsyncpa [#allocation7], 1 }
 0x3f1   :  { %942 = vsyncpa [#allocation10], 1 }
 0x3f2   :  { %943 = vsyncpa [#allocation13], 1 }
 0x3f3   :  { %944 = vsyncpa [#allocation16], 1 }
 0x3f4   :  { %945 = vsyncpa [#allocation5], 1 }

</bundles_post_ra>
